<compile_context>
chip_gen: v5e
topology: v5e:2x2
jax: 0.10.0
libtpu: 0.0.40
codegen_flags: <defaults>
</compile_context>

<pallas_src>
import math
from functools import partial

import numpy as np

import jax
import jax.numpy as jnp
from jax import lax
from jax.experimental import pallas as pl
from jax.experimental.pallas import tpu as pltpu

REPR_SIZE   = 256    # repr_size
EMBED_DIM   = 256    # detector hidden dim (embeds)
NUM_VERBS   = 16
NUM_OBJECTS = 5
HUMAN_IDX   = 0
NUM_HEADS   = 8
FFN_DIM     = 512
LN_EPS      = 1e-5
SPATIAL_DIM = 36
SP_PAD      = 128                    # spatial features zero-padded to K=128
MLP_HIDDEN  = int(REPR_SIZE * 1.5)   # 384

PAIR_TILE = 256                      # same on v5e / v6e / v7x (MXU streams M)

# rows of the packed bias / LayerNorm parameter table
TBL_S1B, TBL_S2B, TBL_S3B, TBL_FC1B = 0, 1, 2, 3
TBL_LN1G, TBL_LN1B, TBL_LN2G, TBL_LN2B = 4, 5, 6, 7
TBL_FC2B, TBL_M1B, TBL_M2B = 8, 9, 10


def _round_up(x, m):
    return ((x + m - 1) // m) * m


def _choose_tile(p):
    # >=2 grid blocks whenever P > 16 (keeps both v7x TensorCores busy),
    # 16-row granularity for clean bf16 sublane packing, capped at 256 rows.
    t = _round_up(max((p + 1) // 2, 16), 16)
    return min(PAIR_TILE, t)


def _full_spec(a):
    zeros = (0,) * a.ndim
    return pl.BlockSpec(a.shape, lambda i, z=zeros: z)


# ----------------------------------------------------------------------------
# Pallas kernel: fused pair gather + spatial_head + MultiModalFusion
# ----------------------------------------------------------------------------
def _pair_fused_kernel(sp_ref, xi_ref, yi_ref, ta_ref, tb_ref,
                       s1w, s2w, s3w, fc2w, m1wa, m1wb, m2w, tbl, o_ref):
    """One row-tile of human-object pairs.

    sp_ref : (tile, 128)  bf16  zero-padded pair spatial features
    xi/yi  : (tile, 1)    int32 global token index of the human / object
    ta/tb  : (Npad, 256)  bf16  per-token  emb_enc @ fc1W[:256] / fc1W[256:]
                                (resident across the whole grid)
    weights: bf16 matmul weights; tbl is the packed f32 bias / LN table.
    """
    f32 = jnp.float32
    bf16 = jnp.bfloat16

    def mm(x, w):
        return jnp.dot(x.astype(bf16), w[...], preferred_element_type=f32)

    def row(i, d):
        return tbl[i:i + 1, :d]

    def ln(v, gi, bi):
        mu = jnp.mean(v, axis=-1, keepdims=True)
        var = jnp.mean(jnp.square(v - mu), axis=-1, keepdims=True)
        d = v.shape[-1]
        return (v - mu) * lax.rsqrt(var + LN_EPS) * row(gi, d) + row(bi, d)

    tile = sp_ref.shape[0]
    npad = ta_ref.shape[0]

    # --- exact in-kernel pair gather via one-hot MXU matmul ------------------
    iota_n = lax.broadcasted_iota(jnp.int32, (tile, npad), 1)
    oh_x = jnp.where(xi_ref[...] == iota_n, 1.0, 0.0).astype(bf16)
    oh_y = jnp.where(yi_ref[...] == iota_n, 1.0, 0.0).astype(bf16)

    # appearance path: fc1(cat(e[x], e[y])) == (e @ Wa)[x] + (e @ Wb)[y] + b
    a = mm(oh_x, ta_ref) + mm(oh_y, tb_ref) + row(TBL_FC1B, REPR_SIZE)
    a = ln(a, TBL_LN1G, TBL_LN1B)

    # spatial_head: 36(->128 padded) -> 128 -> 256 -> 256, ReLU between
    h = jnp.maximum(mm(sp_ref[...], s1w) + row(TBL_S1B, 128), 0.0)
    h = jnp.maximum(mm(h, s2w) + row(TBL_S2B, 256), 0.0)
    sp = jnp.maximum(mm(h, s3w) + row(TBL_S3B, REPR_SIZE), 0.0)

    # MultiModalFusion second branch + MLP
    b = ln(mm(sp, fc2w) + row(TBL_FC2B, REPR_SIZE), TBL_LN2G, TBL_LN2B)
    z = jnp.maximum(mm(jnp.maximum(a, 0.0), m1wa)
                    + mm(jnp.maximum(b, 0.0), m1wb)
                    + row(TBL_M1B, MLP_HIDDEN), 0.0)
    z = mm(z, m2w) + row(TBL_M2B, REPR_SIZE)
    o_ref[...] = jnp.maximum(z, 0.0)


def pair_fused_head(sp_pad, gx2, gy2, ta, tb, fused_params, tile):
    """sp_pad: (P_pad, 128) bf16; gx2/gy2: (P_pad, 1) int32; ta/tb: (Npad, 256) bf16.

    Returns (P_pad, REPR_SIZE) f32 ho_queries.  P_pad is a multiple of tile,
    so there are no partial blocks; padded rows gather token 0 (valid data)
    and are sliced off by the caller.
    """
    p_pad = sp_pad.shape[0]
    grid = (p_pad // tile,)
    weight_specs = [_full_spec(w) for w in fused_params]
    return pl.pallas_call(
        _pair_fused_kernel,
        out_shape=jax.ShapeDtypeStruct((p_pad, REPR_SIZE), jnp.float32),
        grid=grid,
        in_specs=[pl.BlockSpec((tile, SP_PAD), lambda i: (i, 0)),
                  pl.BlockSpec((tile, 1), lambda i: (i, 0)),
                  pl.BlockSpec((tile, 1), lambda i: (i, 0)),
                  _full_spec(ta), _full_spec(tb)] + weight_specs,
        out_specs=pl.BlockSpec((tile, REPR_SIZE), lambda i: (i, 0)),
        compiler_params=pltpu.CompilerParams(
            dimension_semantics=("parallel",)),
    )(sp_pad, gx2, gy2, ta, tb, *fused_params)


# ----------------------------------------------------------------------------
# Plain-JAX glue (PEs, ref_anchor_head, tiny transformer encoder, priors)
# ----------------------------------------------------------------------------
def compute_sinusoidal_pe(pos, temperature=20.0):
    """pos: (..., 2) -> (..., 256) [y-part | x-part], matches PViC's ops."""
    scale = 2.0 * math.pi
    dim_t = jnp.arange(128, dtype=jnp.float32)
    dim_t = temperature ** (2.0 * jnp.floor(dim_t / 2.0) / 128.0)
    px = pos[..., 0:1] * scale / dim_t            # (..., 128)
    py = pos[..., 1:2] * scale / dim_t
    pe_x = jnp.stack([jnp.sin(px[..., 0::2]), jnp.cos(px[..., 1::2])], axis=-1)
    pe_x = pe_x.reshape(px.shape[:-1] + (128,))
    pe_y = jnp.stack([jnp.sin(py[..., 0::2]), jnp.cos(py[..., 1::2])], axis=-1)
    pe_y = pe_y.reshape(py.shape[:-1] + (128,))
    return jnp.concatenate([pe_y, pe_x], axis=-1)


def compute_box_pe(boxes, embeds, hw, valid, ref_params):
    """boxes: (B,N,4); embeds: (B,N,256); hw: (B,2)=(h,w); valid: (B,N) bool."""
    whwh = jnp.concatenate([hw[:, ::-1], hw[:, ::-1]], axis=-1)[:, None, :]  # (B,1,4)
    bx_norm = boxes / whwh
    bx_c = (bx_norm[..., :2] + bx_norm[..., 2:]) / 2.0
    b_wh = bx_norm[..., 2:] - bx_norm[..., :2]
    c_pe = compute_sinusoidal_pe(bx_c, 20.0)
    wh_pe = compute_sinusoidal_pe(b_wh, 20.0)
    box_pe = jnp.concatenate([c_pe, wh_pe], axis=-1)                        # (B,N,512)

    # ref_anchor_head: tiny 256->256->2 MLP; XLA fuses this with the PE math.
    w1, b1, w2, b2 = ref_params
    ref_hw = jax.nn.sigmoid(jnp.maximum(embeds @ w1 + b1, 0.0) @ w2 + b2)   # (B,N,2)

    # padded rows have zero-size boxes; keep their conditioning finite
    b_wh_safe = jnp.where(valid[..., None], b_wh, 1.0)
    c_pe_cond = jnp.concatenate([
        c_pe[..., :128] * (ref_hw[..., 1] / b_wh_safe[..., 1])[..., None],
        c_pe[..., 128:] * (ref_hw[..., 0] / b_wh_safe[..., 0])[..., None]], axis=-1)
    return box_pe, c_pe_cond


def compute_spatial_encodings(b1, b2, hw, eps=1e-10):
    """b1, b2: (P, 4); hw: (P, 2) per-pair (h, w) -> (P, 36)."""
    h = hw[:, 0]
    w = hw[:, 1]
    c1_x = (b1[:, 0] + b1[:, 2]) / 2; c1_y = (b1[:, 1] + b1[:, 3]) / 2
    c2_x = (b2[:, 0] + b2[:, 2]) / 2; c2_y = (b2[:, 1] + b2[:, 3]) / 2
    b1_w = b1[:, 2] - b1[:, 0]; b1_h = b1[:, 3] - b1[:, 1]
    b2_w = b2[:, 2] - b2[:, 0]; b2_h = b2[:, 3] - b2[:, 1]
    d_x = jnp.abs(c2_x - c1_x) / (b1_w + eps)
    d_y = jnp.abs(c2_y - c1_y) / (b1_h + eps)
    lt = jnp.maximum(b1[:, :2], b2[:, :2])
    rb = jnp.minimum(b1[:, 2:], b2[:, 2:])
    wh = jnp.clip(rb - lt, 0.0, None)
    inter = wh[:, 0] * wh[:, 1]
    area1 = b1_w * b1_h
    area2 = b2_w * b2_h
    iou = inter / (area1 + area2 - inter + eps)
    f = jnp.stack([
        c1_x / w, c1_y / h, c2_x / w, c2_y / h,
        b1_w / w, b1_h / h, b2_w / w, b2_h / h,
        area1 / (h * w), area2 / (h * w),
        area2 / (area1 + eps),
        b1_w / (b1_h + eps), b2_w / (b2_h + eps),
        iou,
        (c2_x > c1_x).astype(jnp.float32) * d_x,
        (c2_x < c1_x).astype(jnp.float32) * d_x,
        (c2_y > c1_y).astype(jnp.float32) * d_y,
        (c2_y < c1_y).astype(jnp.float32) * d_y,
    ], axis=1)
    return jnp.concatenate([f, jnp.log(f + eps)], axis=1)                   # (P, 36)


def layer_norm(x, g, b, eps=LN_EPS):
    mu = jnp.mean(x, axis=-1, keepdims=True)
    var = jnp.mean((x - mu) ** 2, axis=-1, keepdims=True)
    return (x - mu) / jnp.sqrt(var + eps) * g + b


def _encoder_layer(x, pos, kmask, p):
    b, n, d = x.shape
    dh = d // NUM_HEADS
    q = (x + pos) @ p['wq'] + p['bq']
    k = (x + pos) @ p['wk'] + p['bk']
    v = x @ p['wv'] + p['bv']
    qh = q.reshape(b, n, NUM_HEADS, dh)
    kh = k.reshape(b, n, NUM_HEADS, dh)
    vh = v.reshape(b, n, NUM_HEADS, dh)
    logits = jnp.einsum('bqhd,bkhd->bhqk', qh, kh) / math.sqrt(dh)
    logits = jnp.where(kmask[:, None, None, :], logits, -1e30)
    att = jax.nn.softmax(logits, axis=-1)
    o = jnp.einsum('bhqk,bkhd->bqhd', att, vh).reshape(b, n, d)
    o = o @ p['wo'] + p['bo']
    x = layer_norm(x + o, p['ln1g'], p['ln1b'])
    hdn = jnp.maximum(x @ p['f1w'] + p['f1b'], 0.0)
    hdn = hdn @ p['f2w'] + p['f2b']
    return layer_norm(x + hdn, p['ln2g'], p['ln2b'])


def transformer_encoder(x, box_pe, valid, params):
    # TODO(synk): exact TransformerEncoder definition is not in the provided
    # snippet; a standard DETR-style 2-layer post-norm encoder with a learned
    # projection of the 512-d box PE onto the 256-d token stream is used.
    pos = box_pe @ params['pos_w'] + params['pos_b']
    for lp in params['layers']:
        x = _encoder_layer(x, pos, valid, lp)
    return x


def compute_prior_scores(gx, gy, scores_flat, labels_flat, obj_to_verb_mask,
                         training=False):
    # TODO(synk): checkpoint version fuses CLIP global-image similarity via
    # hoi_to_verb / hoi_to_object .npy tables; only the detection-score base
    # prior is reproduced here.
    p = 1.0 if training else 2.8
    s_h = scores_flat[gx] ** p
    s_o = scores_flat[gy] ** p
    mask = obj_to_verb_mask[labels_flat[gy]]                 # (P, NUM_VERBS)
    return jnp.stack([mask * s_h[:, None], mask * s_o[:, None]], axis=1)


# ----------------------------------------------------------------------------
# Parameters (deterministic synthetic init)
# ----------------------------------------------------------------------------
def init_linear(key, d_in, d_out, scale=0.05):
    kw, kb = jax.random.split(key)
    w = (jax.random.normal(kw, (d_in, d_out)) * scale).astype(jnp.float32)
    b = (jax.random.normal(kb, (1, d_out)) * scale).astype(jnp.float32)
    return w, b


def init_params(key):
    keys = iter(jax.random.split(key, 32))
    params = {}
    f32, bf16 = jnp.float32, jnp.bfloat16

    # ref_anchor_head: 256 -> 256 -> 2 (plain JAX inside the jit).
    w1, b1 = init_linear(next(keys), EMBED_DIM, 256)
    w2, b2 = init_linear(next(keys), 256, 2)
    params['ref_anchor_head'] = (w1, b1, w2, b2)

    # fused spatial_head + MultiModalFusion weights.
    s1w, s1b = init_linear(next(keys), SPATIAL_DIM, 128)
    s2w, s2b = init_linear(next(keys), 128, 256)
    s3w, s3b = init_linear(next(keys), 256, REPR_SIZE)
    fc1w, fc1b = init_linear(next(keys), 2 * EMBED_DIM, REPR_SIZE)
    fc2w, fc2b = init_linear(next(keys), REPR_SIZE, REPR_SIZE)
    m1w, m1b = init_linear(next(keys), 2 * REPR_SIZE, MLP_HIDDEN)
    m2w, m2b = init_linear(next(keys), MLP_HIDDEN, REPR_SIZE)

    # zero-pad the 36-wide spatial input weight to a clean K=128 MXU pass
    s1w_pad = jnp.zeros((SP_PAD, 128), f32).at[:SPATIAL_DIM].set(s1w)

    # fc1 is applied per unary token in XLA (builds the ta/tb gather tables)
    params['fc1'] = (fc1w[:EMBED_DIM], fc1w[EMBED_DIM:])

    # packed bias / LayerNorm parameter table: one operand instead of 11
    ln1g = jnp.ones((REPR_SIZE,), f32); ln1b = jnp.zeros((REPR_SIZE,), f32)
    ln2g = jnp.ones((REPR_SIZE,), f32); ln2b = jnp.zeros((REPR_SIZE,), f32)
    rows = [s1b, s2b, s3b, fc1b, ln1g, ln1b, ln2g, ln2b, fc2b, m1b, m2b]
    tbl = jnp.zeros((16, MLP_HIDDEN), f32)
    for ri, r in enumerate(rows):
        r = jnp.reshape(r, (-1,))
        tbl = tbl.at[ri, :r.shape[0]].set(r)

    params['fused'] = (s1w_pad.astype(bf16), s2w.astype(bf16), s3w.astype(bf16),
                       fc2w.astype(bf16),
                       m1w[:REPR_SIZE].astype(bf16), m1w[REPR_SIZE:].astype(bf16),
                       m2w.astype(bf16), tbl)

    # 2-layer transformer encoder (plain JAX, f32).
    pos_w, pos_b = init_linear(next(keys), 2 * EMBED_DIM, EMBED_DIM)
    layers = []
    for _ in range(2):
        lp = {}
        lp['wq'], lp['bq'] = init_linear(next(keys), EMBED_DIM, EMBED_DIM)
        lp['wk'], lp['bk'] = init_linear(next(keys), EMBED_DIM, EMBED_DIM)
        lp['wv'], lp['bv'] = init_linear(next(keys), EMBED_DIM, EMBED_DIM)
        lp['wo'], lp['bo'] = init_linear(next(keys), EMBED_DIM, EMBED_DIM)
        lp['f1w'], lp['f1b'] = init_linear(next(keys), EMBED_DIM, FFN_DIM)
        lp['f2w'], lp['f2b'] = init_linear(next(keys), FFN_DIM, EMBED_DIM)
        lp['ln1g'] = jnp.ones((1, EMBED_DIM), f32)
        lp['ln1b'] = jnp.zeros((1, EMBED_DIM), f32)
        lp['ln2g'] = jnp.ones((1, EMBED_DIM), f32)
        lp['ln2b'] = jnp.zeros((1, EMBED_DIM), f32)
        layers.append(lp)
    params['encoder'] = {'pos_w': pos_w, 'pos_b': pos_b, 'layers': layers}

    m = np.zeros((NUM_OBJECTS, NUM_VERBS), np.float32)
    for o in range(NUM_OBJECTS):
        for v in range(NUM_VERBS):
            if (o + v) % 3 == 0:
                m[o, v] = 1.0
    params['obj_to_verb_mask'] = jnp.asarray(m)
    return params


# ----------------------------------------------------------------------------
# One batched device dispatch for the whole image list
# (re-traced only per unique (B, n_max, P_pad) shape combination).
# ----------------------------------------------------------------------------
@partial(jax.jit, static_argnames=("tile",))
def _batched_compute(params, boxes_b, scores_b, labels_b, embeds_b, valid_b,
                     hw_b, gx, gy, *, tile):
    f32 = jnp.float32
    bf16 = jnp.bfloat16
    b, nm, _ = boxes_b.shape

    # box positional encodings + ref_anchor conditioning (plain JAX, fused by XLA)
    box_pe, c_pe = compute_box_pe(boxes_b, embeds_b, hw_b, valid_b,
                                  params['ref_anchor_head'])

    # 2-layer transformer encoder over unary tokens (block-diagonal via key mask)
    emb_enc = transformer_encoder(embeds_b, box_pe, valid_b, params['encoder'])

    # flatten tokens; pairs index into the flattened (B*n_max) token axis
    emb_flat = emb_enc.reshape(b * nm, EMBED_DIM)
    boxes_flat = boxes_b.reshape(b * nm, 4)
    hw_flat = jnp.repeat(hw_b, nm, axis=0)
    scores_flat = scores_b.reshape(-1)
    labels_flat = labels_b.reshape(-1)
    c_pe_flat = c_pe.reshape(b * nm, EMBED_DIM)
    box_pe_flat = box_pe.reshape(b * nm, 2 * EMBED_DIM)

    # pair spatial features ONLY for kept pairs (never n*n*256 in HBM),
    # zero-padded 36 -> 128 for a lane-aligned K=128 first matmul
    sp = compute_spatial_encodings(boxes_flat[gx], boxes_flat[gy], hw_flat[gx])
    p_pad = sp.shape[0]
    sp_pad = jnp.zeros((p_pad, SP_PAD), f32).at[:, :SPATIAL_DIM].set(sp).astype(bf16)

    # per-token fc1 halves: fc1(cat(e[x],e[y])) == ta[x] + tb[y] + fc1b,
    # so the kernel only needs an exact gather (one-hot MXU matmul)
    fc1wa, fc1wb = params['fc1']
    npad = _round_up(b * nm, 128)
    ta = jnp.zeros((npad, REPR_SIZE), f32).at[:b * nm].set(emb_flat @ fc1wa).astype(bf16)
    tb = jnp.zeros((npad, REPR_SIZE), f32).at[:b * nm].set(emb_flat @ fc1wb).astype(bf16)

    gx2 = gx.reshape(-1, 1).astype(jnp.int32)
    gy2 = gy.reshape(-1, 1).astype(jnp.int32)
    ho_q = pair_fused_head(sp_pad, gx2, gy2, ta, tb, params['fused'], tile)

    prior = compute_prior_scores(gx, gy, scores_flat, labels_flat,
                                 params['obj_to_verb_mask'], training=False)
    c_pe_pair = jnp.concatenate([c_pe_flat[gx], c_pe_flat[gy]], axis=-1)[:, None, :]
    box_pe_pair = jnp.concatenate([box_pe_flat[gx], box_pe_flat[gy]], axis=-1)[:, None, :]
    obj_types = labels_flat[gy]
    return ho_q, prior, c_pe_pair, box_pe_pair, obj_types


# ----------------------------------------------------------------------------
# HumanObjectMatcher.forward
# ----------------------------------------------------------------------------
def human_object_matcher_forward(params, region_props, image_sizes):
    num_imgs = len(region_props)
    boxes_np = [np.asarray(rp['boxes'], np.float32) for rp in region_props]
    scores_np = [np.asarray(rp['scores'], np.float32) for rp in region_props]
    labels_np = [np.asarray(rp['labels']).astype(np.int32) for rp in region_props]
    embeds_np = [np.asarray(rp['hidden_states'], np.float32) for rp in region_props]

    ns = [bx.shape[0] for bx in boxes_np]
    n_max = max(max(ns) if ns else 1, 1)

    # host-side pair selection (labels stay on host; no kernel work here)
    pair_x, pair_y, counts = [], [], []
    for i in range(num_imgs):
        lab = labels_np[i]
        n = ns[i]
        nh = int((lab == HUMAN_IDX).sum())
        if not np.all(lab[:nh] == HUMAN_IDX):
            raise AssertionError('Human instances are not permuted to the top!')
        xs, ys = np.meshgrid(np.arange(n), np.arange(n), indexing='ij')
        keep = np.logical_and(xs != ys, xs < nh)
        xk, yk = np.nonzero(keep)
        pair_x.append(xk.astype(np.int64))
        pair_y.append(yk.astype(np.int64))
        counts.append(len(xk))
    p_total = int(sum(counts))

    # TODO(synk): frozen CLIP global prior / patch features (encode_image,
    # preprocess, SHA-1 caches) cannot be reproduced here; zeros returned.
    clip_patch_feat = jnp.zeros((1, 196, 512), jnp.float32)
    clip_pos = jnp.zeros((1, 196, 768), jnp.float32)

    ho_queries, paired_indices, prior_scores_out = [], [], []
    object_types, positional_embeds = [], []
    clip_patch_features, clip_pos_list = [], []

    if p_total > 0:
        # pack all images into one padded batch (single jit + single pallas_call)
        boxes_b = np.zeros((num_imgs, n_max, 4), np.float32)
        scores_b = np.zeros((num_imgs, n_max), np.float32)
        labels_b = np.zeros((num_imgs, n_max), np.int32)
        embeds_b = np.zeros((num_imgs, n_max, EMBED_DIM), np.float32)
        valid_b = np.zeros((num_imgs, n_max), bool)
        hw_b = np.zeros((num_imgs, 2), np.float32)
        for i in range(num_imgs):
            n = ns[i]
            boxes_b[i, :n] = boxes_np[i]
            scores_b[i, :n] = scores_np[i]
            labels_b[i, :n] = labels_np[i]
            embeds_b[i, :n] = embeds_np[i]
            valid_b[i, :n] = True
            hw_b[i] = np.asarray(image_sizes[i], np.float32)

        gx = np.concatenate([pair_x[i] + i * n_max for i in range(num_imgs)])
        gy = np.concatenate([pair_y[i] + i * n_max for i in range(num_imgs)])

        tile = _choose_tile(p_total)
        p_pad = _round_up(p_total, tile)
        gx_pad = np.zeros((p_pad,), np.int32); gx_pad[:p_total] = gx
        gy_pad = np.zeros((p_pad,), np.int32); gy_pad[:p_total] = gy

        ho_all, prior_all, cpe_all, bpe_all, obj_all = _batched_compute(
            params, jnp.asarray(boxes_b), jnp.asarray(scores_b),
            jnp.asarray(labels_b), jnp.asarray(embeds_b), jnp.asarray(valid_b),
            jnp.asarray(hw_b), jnp.asarray(gx_pad), jnp.asarray(gy_pad),
            tile=tile)

    offsets = np.cumsum([0] + counts)
    for i in range(num_imgs):
        cnt = counts[i]
        if cnt == 0:
            ho_queries.append(jnp.zeros((0, REPR_SIZE), jnp.float32))
            paired_indices.append(jnp.zeros((0, 2), jnp.int32))
            prior_scores_out.append(jnp.zeros((0, 2, NUM_VERBS), jnp.float32))
            object_types.append(jnp.zeros((0,), jnp.int32))
            positional_embeds.append({})
            clip_patch_features.append(clip_patch_feat)
            clip_pos_list.append(clip_pos)
            continue
        s, e = int(offsets[i]), int(offsets[i + 1])
        ho_queries.append(ho_all[s:e])
        paired_indices.append(jnp.asarray(
            np.stack([pair_x[i], pair_y[i]], axis=1).astype(np.int32)))
        prior_scores_out.append(prior_all[s:e])
        object_types.append(obj_all[s:e])
        positional_embeds.append({'centre': cpe_all[s:e], 'box': bpe_all[s:e]})
        clip_patch_features.append(clip_patch_feat)
        clip_pos_list.append(clip_pos)

    return (ho_queries, paired_indices, prior_scores_out, object_types,
            positional_embeds, clip_patch_features, clip_pos_list)


# ----------------------------------------------------------------------------
if __name__ == "__main__":
    key = jax.random.PRNGKey(0)
    kp, kd = jax.random.split(key)
    params = init_params(kp)

    region_props, image_sizes = [], []
    n, nh = 8, 3
    for i in range(2):
        kd, kb, ks, kl, ke = jax.random.split(kd, 5)
        H, W = 480.0, 640.0
        cx = jax.random.uniform(kb, (n,), minval=0.25, maxval=0.75) * W
        cy = jax.random.uniform(jax.random.fold_in(kb, 1), (n,), minval=0.25, maxval=0.75) * H
        bw = jax.random.uniform(jax.random.fold_in(kb, 2), (n,), minval=0.10, maxval=0.35) * W
        bh = jax.random.uniform(jax.random.fold_in(kb, 3), (n,), minval=0.10, maxval=0.35) * H
        boxes = jnp.stack([cx - bw / 2, cy - bh / 2, cx + bw / 2, cy + bh / 2], axis=1)
        scores = jax.random.uniform(ks, (n,), minval=0.3, maxval=0.99)
        obj_labels = np.asarray(jax.random.randint(kl, (n - nh,), 1, NUM_OBJECTS))
        labels = np.concatenate(
            [np.full((nh,), HUMAN_IDX, np.int32), obj_labels.astype(np.int32)])
        embeds = jax.random.normal(ke, (n, EMBED_DIM), jnp.float32)
        region_props.append({'boxes': boxes, 'scores': scores,
                             'labels': labels, 'hidden_states': embeds})
        image_sizes.append((H, W))

    outs = human_object_matcher_forward(params, region_props, image_sizes)
    jax.block_until_ready(outs)

    # sanity checks on shapes / finiteness
    assert all(q.shape == (nh * (n - 1), REPR_SIZE) for q in outs[0])
    assert all(p.shape == (nh * (n - 1), 2, NUM_VERBS) for p in outs[2])
    assert all(pe['centre'].shape == (nh * (n - 1), 1, 2 * EMBED_DIM) for pe in outs[4])
    assert all(bool(jnp.all(jnp.isfinite(q))) for q in outs[0])
    assert all(bool(jnp.all(jnp.isfinite(p))) for p in outs[2])
    print("KERNEL_OK")
</pallas_src>

<mosaic_0001>
module attributes {stable_mosaic.version = 11 : i64} {
  func.func @_pair_fused_kernel(%arg0: i32, %arg1: memref<32x128xbf16, #tpu.memory_space<vmem>>, %arg2: memref<32x1xi32, #tpu.memory_space<vmem>>, %arg3: memref<32x1xi32, #tpu.memory_space<vmem>>, %arg4: memref<128x256xbf16, #tpu.memory_space<vmem>>, %arg5: memref<128x256xbf16, #tpu.memory_space<vmem>>, %arg6: memref<128x128xbf16, #tpu.memory_space<vmem>>, %arg7: memref<128x256xbf16, #tpu.memory_space<vmem>>, %arg8: memref<256x256xbf16, #tpu.memory_space<vmem>>, %arg9: memref<256x256xbf16, #tpu.memory_space<vmem>>, %arg10: memref<256x384xbf16, #tpu.memory_space<vmem>>, %arg11: memref<256x384xbf16, #tpu.memory_space<vmem>>, %arg12: memref<384x256xbf16, #tpu.memory_space<vmem>>, %arg13: memref<16x384xf32, #tpu.memory_space<vmem>>, %arg14: memref<32x256xf32, #tpu.memory_space<vmem>>) attributes {dimension_semantics = [#tpu.dimension_semantics<parallel>], iteration_bounds = array<i64: 2>, scalar_prefetch = 0 : i64, scratch_operands = 0 : i64, tpu.core_type = #tpu.core_type<tc>, window_params = [{transform_indices = @transform_0, window_bounds = array<i64: 32, 128>}, {transform_indices = @transform_1, window_bounds = array<i64: 32, 1>}, {transform_indices = @transform_2, window_bounds = array<i64: 32, 1>}, {pipeline_mode = #tpu.pipeline_mode<synchronous>, transform_indices = @transform_3, window_bounds = array<i64: 128, 256>}, {pipeline_mode = #tpu.pipeline_mode<synchronous>, transform_indices = @transform_4, window_bounds = array<i64: 128, 256>}, {pipeline_mode = #tpu.pipeline_mode<synchronous>, transform_indices = @transform_5, window_bounds = array<i64: 128, 128>}, {pipeline_mode = #tpu.pipeline_mode<synchronous>, transform_indices = @transform_6, window_bounds = array<i64: 128, 256>}, {pipeline_mode = #tpu.pipeline_mode<synchronous>, transform_indices = @transform_7, window_bounds = array<i64: 256, 256>}, {pipeline_mode = #tpu.pipeline_mode<synchronous>, transform_indices = @transform_8, window_bounds = array<i64: 256, 256>}, {pipeline_mode = #tpu.pipeline_mode<synchronous>, transform_indices = @transform_9, window_bounds = array<i64: 256, 384>}, {pipeline_mode = #tpu.pipeline_mode<synchronous>, transform_indices = @transform_10, window_bounds = array<i64: 256, 384>}, {pipeline_mode = #tpu.pipeline_mode<synchronous>, transform_indices = @transform_11, window_bounds = array<i64: 384, 256>}, {pipeline_mode = #tpu.pipeline_mode<synchronous>, transform_indices = @transform_12, window_bounds = array<i64: 16, 384>}, {transform_indices = @transform_13, window_bounds = array<i64: 32, 256>}]} {
    %0 = tpu.iota {dimensions = array<i32: 1>} : vector<32x128xi32>
    %c0 = arith.constant 0 : index
    %c0_0 = arith.constant 0 : index
    %1 = vector.load %arg2[%c0, %c0_0] : memref<32x1xi32, #tpu.memory_space<vmem>>, vector<32x1xi32>
    %2 = vector.broadcast %1 : vector<32x1xi32> to vector<32x128xi32>
    %3 = arith.cmpi eq, %2, %0 : vector<32x128xi32>
    %cst = arith.constant 1.000000e+00 : f32
    %cst_1 = arith.constant 0.000000e+00 : f32
    %4 = vector.broadcast %cst : f32 to vector<32x128xf32>
    %5 = vector.broadcast %cst_1 : f32 to vector<32x128xf32>
    %6 = arith.select %3, %4, %5 : vector<32x128xi1>, vector<32x128xf32>
    %7 = arith.truncf %6 : vector<32x128xf32> to vector<32x128xbf16>
    %c0_2 = arith.constant 0 : index
    %c0_3 = arith.constant 0 : index
    %8 = vector.load %arg3[%c0_2, %c0_3] : memref<32x1xi32, #tpu.memory_space<vmem>>, vector<32x1xi32>
    %9 = vector.broadcast %8 : vector<32x1xi32> to vector<32x128xi32>
    %10 = arith.cmpi eq, %9, %0 : vector<32x128xi32>
    %cst_4 = arith.constant 1.000000e+00 : f32
    %cst_5 = arith.constant 0.000000e+00 : f32
    %11 = vector.broadcast %cst_4 : f32 to vector<32x128xf32>
    %12 = vector.broadcast %cst_5 : f32 to vector<32x128xf32>
    %13 = arith.select %10, %11, %12 : vector<32x128xi1>, vector<32x128xf32>
    %14 = arith.truncf %13 : vector<32x128xf32> to vector<32x128xbf16>
    %c0_6 = arith.constant 0 : index
    %c0_7 = arith.constant 0 : index
    %15 = vector.load %arg4[%c0_6, %c0_7] : memref<128x256xbf16, #tpu.memory_space<vmem>>, vector<128x256xbf16>
    %cst_8 = arith.constant dense<0.000000e+00> : vector<32x256xf32>
    %16 = tpu.matmul %7, %15, %cst_8 {dimension_numbers = #tpu.dot_dimension_numbers<[1], [0], [0], [1], [0, 0, 1, 1], [], []>} : vector<32x128xbf16>, vector<128x256xbf16>, vector<32x256xf32> -> vector<32x256xf32>
    %c0_9 = arith.constant 0 : index
    %c0_10 = arith.constant 0 : index
    %17 = vector.load %arg5[%c0_9, %c0_10] : memref<128x256xbf16, #tpu.memory_space<vmem>>, vector<128x256xbf16>
    %cst_11 = arith.constant dense<0.000000e+00> : vector<32x256xf32>
    %18 = tpu.matmul %14, %17, %cst_11 {dimension_numbers = #tpu.dot_dimension_numbers<[1], [0], [0], [1], [0, 0, 1, 1], [], []>} : vector<32x128xbf16>, vector<128x256xbf16>, vector<32x256xf32> -> vector<32x256xf32>
    %19 = arith.addf %16, %18 : vector<32x256xf32>
    %c3 = arith.constant 3 : index
    %c0_12 = arith.constant 0 : index
    %20 = vector.load %arg13[%c3, %c0_12] : memref<16x384xf32, #tpu.memory_space<vmem>>, vector<1x256xf32>
    %21 = vector.broadcast %20 : vector<1x256xf32> to vector<32x256xf32>
    %22 = arith.addf %19, %21 : vector<32x256xf32>
    %cst_13 = arith.constant dense<0.000000e+00> : vector<32xf32>
    %23 = vector.multi_reduction <add>, %22, %cst_13 [1] : vector<32x256xf32> to vector<32xf32>
    %24 = vector.shape_cast %23 : vector<32xf32> to vector<32x1xf32>
    %cst_14 = arith.constant 2.560000e+02 : f32
    %25 = vector.broadcast %cst_14 : f32 to vector<32x1xf32>
    %26 = arith.divf %24, %25 : vector<32x1xf32>
    %27 = vector.broadcast %26 : vector<32x1xf32> to vector<32x256xf32>
    %28 = arith.subf %22, %27 : vector<32x256xf32>
    %29 = arith.mulf %28, %28 : vector<32x256xf32>
    %cst_15 = arith.constant dense<0.000000e+00> : vector<32xf32>
    %30 = vector.multi_reduction <add>, %29, %cst_15 [1] : vector<32x256xf32> to vector<32xf32>
    %31 = vector.shape_cast %30 : vector<32xf32> to vector<32x1xf32>
    %cst_16 = arith.constant 2.560000e+02 : f32
    %32 = vector.broadcast %cst_16 : f32 to vector<32x1xf32>
    %33 = arith.divf %31, %32 : vector<32x1xf32>
    %34 = vector.broadcast %26 : vector<32x1xf32> to vector<32x256xf32>
    %35 = arith.subf %22, %34 : vector<32x256xf32>
    %cst_17 = arith.constant 9.99999974E-6 : f32
    %36 = vector.broadcast %cst_17 : f32 to vector<32x1xf32>
    %37 = arith.addf %33, %36 : vector<32x1xf32>
    %38 = math.rsqrt %37 : vector<32x1xf32>
    %39 = vector.broadcast %38 : vector<32x1xf32> to vector<32x256xf32>
    %40 = arith.mulf %35, %39 : vector<32x256xf32>
    %c4 = arith.constant 4 : index
    %c0_18 = arith.constant 0 : index
    %41 = vector.load %arg13[%c4, %c0_18] : memref<16x384xf32, #tpu.memory_space<vmem>>, vector<1x256xf32>
    %42 = vector.broadcast %41 : vector<1x256xf32> to vector<32x256xf32>
    %43 = arith.mulf %40, %42 : vector<32x256xf32>
    %c5 = arith.constant 5 : index
    %c0_19 = arith.constant 0 : index
    %44 = vector.load %arg13[%c5, %c0_19] : memref<16x384xf32, #tpu.memory_space<vmem>>, vector<1x256xf32>
    %45 = vector.broadcast %44 : vector<1x256xf32> to vector<32x256xf32>
    %46 = arith.addf %43, %45 : vector<32x256xf32>
    %c0_20 = arith.constant 0 : index
    %c0_21 = arith.constant 0 : index
    %47 = vector.load %arg1[%c0_20, %c0_21] : memref<32x128xbf16, #tpu.memory_space<vmem>>, vector<32x128xbf16>
    %c0_22 = arith.constant 0 : index
    %c0_23 = arith.constant 0 : index
    %48 = vector.load %arg6[%c0_22, %c0_23] : memref<128x128xbf16, #tpu.memory_space<vmem>>, vector<128x128xbf16>
    %cst_24 = arith.constant dense<0.000000e+00> : vector<32x128xf32>
    %49 = tpu.matmul %47, %48, %cst_24 {dimension_numbers = #tpu.dot_dimension_numbers<[1], [0], [0], [1], [0, 0, 1, 1], [], []>} : vector<32x128xbf16>, vector<128x128xbf16>, vector<32x128xf32> -> vector<32x128xf32>
    %c0_25 = arith.constant 0 : index
    %c0_26 = arith.constant 0 : index
    %50 = vector.load %arg13[%c0_25, %c0_26] : memref<16x384xf32, #tpu.memory_space<vmem>>, vector<1x128xf32>
    %51 = vector.broadcast %50 : vector<1x128xf32> to vector<32x128xf32>
    %52 = arith.addf %49, %51 : vector<32x128xf32>
    %cst_27 = arith.constant 0.000000e+00 : f32
    %53 = vector.broadcast %cst_27 : f32 to vector<32x128xf32>
    %54 = arith.maximumf %52, %53 : vector<32x128xf32>
    %55 = arith.truncf %54 : vector<32x128xf32> to vector<32x128xbf16>
    %c0_28 = arith.constant 0 : index
    %c0_29 = arith.constant 0 : index
    %56 = vector.load %arg7[%c0_28, %c0_29] : memref<128x256xbf16, #tpu.memory_space<vmem>>, vector<128x256xbf16>
    %cst_30 = arith.constant dense<0.000000e+00> : vector<32x256xf32>
    %57 = tpu.matmul %55, %56, %cst_30 {dimension_numbers = #tpu.dot_dimension_numbers<[1], [0], [0], [1], [0, 0, 1, 1], [], []>} : vector<32x128xbf16>, vector<128x256xbf16>, vector<32x256xf32> -> vector<32x256xf32>
    %c1 = arith.constant 1 : index
    %c0_31 = arith.constant 0 : index
    %58 = vector.load %arg13[%c1, %c0_31] : memref<16x384xf32, #tpu.memory_space<vmem>>, vector<1x256xf32>
    %59 = vector.broadcast %58 : vector<1x256xf32> to vector<32x256xf32>
    %60 = arith.addf %57, %59 : vector<32x256xf32>
    %cst_32 = arith.constant 0.000000e+00 : f32
    %61 = vector.broadcast %cst_32 : f32 to vector<32x256xf32>
    %62 = arith.maximumf %60, %61 : vector<32x256xf32>
    %63 = arith.truncf %62 : vector<32x256xf32> to vector<32x256xbf16>
    %c0_33 = arith.constant 0 : index
    %c0_34 = arith.constant 0 : index
    %64 = vector.load %arg8[%c0_33, %c0_34] : memref<256x256xbf16, #tpu.memory_space<vmem>>, vector<256x256xbf16>
    %cst_35 = arith.constant dense<0.000000e+00> : vector<32x256xf32>
    %65 = tpu.matmul %63, %64, %cst_35 {dimension_numbers = #tpu.dot_dimension_numbers<[1], [0], [0], [1], [0, 0, 1, 1], [], []>} : vector<32x256xbf16>, vector<256x256xbf16>, vector<32x256xf32> -> vector<32x256xf32>
    %c2 = arith.constant 2 : index
    %c0_36 = arith.constant 0 : index
    %66 = vector.load %arg13[%c2, %c0_36] : memref<16x384xf32, #tpu.memory_space<vmem>>, vector<1x256xf32>
    %67 = vector.broadcast %66 : vector<1x256xf32> to vector<32x256xf32>
    %68 = arith.addf %65, %67 : vector<32x256xf32>
    %cst_37 = arith.constant 0.000000e+00 : f32
    %69 = vector.broadcast %cst_37 : f32 to vector<32x256xf32>
    %70 = arith.maximumf %68, %69 : vector<32x256xf32>
    %71 = arith.truncf %70 : vector<32x256xf32> to vector<32x256xbf16>
    %c0_38 = arith.constant 0 : index
    %c0_39 = arith.constant 0 : index
    %72 = vector.load %arg9[%c0_38, %c0_39] : memref<256x256xbf16, #tpu.memory_space<vmem>>, vector<256x256xbf16>
    %cst_40 = arith.constant dense<0.000000e+00> : vector<32x256xf32>
    %73 = tpu.matmul %71, %72, %cst_40 {dimension_numbers = #tpu.dot_dimension_numbers<[1], [0], [0], [1], [0, 0, 1, 1], [], []>} : vector<32x256xbf16>, vector<256x256xbf16>, vector<32x256xf32> -> vector<32x256xf32>
    %c8 = arith.constant 8 : index
    %c0_41 = arith.constant 0 : index
    %74 = vector.load %arg13[%c8, %c0_41] : memref<16x384xf32, #tpu.memory_space<vmem>>, vector<1x256xf32>
    %75 = vector.broadcast %74 : vector<1x256xf32> to vector<32x256xf32>
    %76 = arith.addf %73, %75 : vector<32x256xf32>
    %cst_42 = arith.constant dense<0.000000e+00> : vector<32xf32>
    %77 = vector.multi_reduction <add>, %76, %cst_42 [1] : vector<32x256xf32> to vector<32xf32>
    %78 = vector.shape_cast %77 : vector<32xf32> to vector<32x1xf32>
    %cst_43 = arith.constant 2.560000e+02 : f32
    %79 = vector.broadcast %cst_43 : f32 to vector<32x1xf32>
    %80 = arith.divf %78, %79 : vector<32x1xf32>
    %81 = vector.broadcast %80 : vector<32x1xf32> to vector<32x256xf32>
    %82 = arith.subf %76, %81 : vector<32x256xf32>
    %83 = arith.mulf %82, %82 : vector<32x256xf32>
    %cst_44 = arith.constant dense<0.000000e+00> : vector<32xf32>
    %84 = vector.multi_reduction <add>, %83, %cst_44 [1] : vector<32x256xf32> to vector<32xf32>
    %85 = vector.shape_cast %84 : vector<32xf32> to vector<32x1xf32>
    %cst_45 = arith.constant 2.560000e+02 : f32
    %86 = vector.broadcast %cst_45 : f32 to vector<32x1xf32>
    %87 = arith.divf %85, %86 : vector<32x1xf32>
    %88 = vector.broadcast %80 : vector<32x1xf32> to vector<32x256xf32>
    %89 = arith.subf %76, %88 : vector<32x256xf32>
    %cst_46 = arith.constant 9.99999974E-6 : f32
    %90 = vector.broadcast %cst_46 : f32 to vector<32x1xf32>
    %91 = arith.addf %87, %90 : vector<32x1xf32>
    %92 = math.rsqrt %91 : vector<32x1xf32>
    %93 = vector.broadcast %92 : vector<32x1xf32> to vector<32x256xf32>
    %94 = arith.mulf %89, %93 : vector<32x256xf32>
    %c6 = arith.constant 6 : index
    %c0_47 = arith.constant 0 : index
    %95 = vector.load %arg13[%c6, %c0_47] : memref<16x384xf32, #tpu.memory_space<vmem>>, vector<1x256xf32>
    %96 = vector.broadcast %95 : vector<1x256xf32> to vector<32x256xf32>
    %97 = arith.mulf %94, %96 : vector<32x256xf32>
    %c7 = arith.constant 7 : index
    %c0_48 = arith.constant 0 : index
    %98 = vector.load %arg13[%c7, %c0_48] : memref<16x384xf32, #tpu.memory_space<vmem>>, vector<1x256xf32>
    %99 = vector.broadcast %98 : vector<1x256xf32> to vector<32x256xf32>
    %100 = arith.addf %97, %99 : vector<32x256xf32>
    %cst_49 = arith.constant 0.000000e+00 : f32
    %101 = vector.broadcast %cst_49 : f32 to vector<32x256xf32>
    %102 = arith.maximumf %46, %101 : vector<32x256xf32>
    %103 = arith.truncf %102 : vector<32x256xf32> to vector<32x256xbf16>
    %c0_50 = arith.constant 0 : index
    %c0_51 = arith.constant 0 : index
    %104 = vector.load %arg10[%c0_50, %c0_51] : memref<256x384xbf16, #tpu.memory_space<vmem>>, vector<256x384xbf16>
    %cst_52 = arith.constant dense<0.000000e+00> : vector<32x384xf32>
    %105 = tpu.matmul %103, %104, %cst_52 {dimension_numbers = #tpu.dot_dimension_numbers<[1], [0], [0], [1], [0, 0, 1, 1], [], []>} : vector<32x256xbf16>, vector<256x384xbf16>, vector<32x384xf32> -> vector<32x384xf32>
    %cst_53 = arith.constant 0.000000e+00 : f32
    %106 = vector.broadcast %cst_53 : f32 to vector<32x256xf32>
    %107 = arith.maximumf %100, %106 : vector<32x256xf32>
    %108 = arith.truncf %107 : vector<32x256xf32> to vector<32x256xbf16>
    %c0_54 = arith.constant 0 : index
    %c0_55 = arith.constant 0 : index
    %109 = vector.load %arg11[%c0_54, %c0_55] : memref<256x384xbf16, #tpu.memory_space<vmem>>, vector<256x384xbf16>
    %cst_56 = arith.constant dense<0.000000e+00> : vector<32x384xf32>
    %110 = tpu.matmul %108, %109, %cst_56 {dimension_numbers = #tpu.dot_dimension_numbers<[1], [0], [0], [1], [0, 0, 1, 1], [], []>} : vector<32x256xbf16>, vector<256x384xbf16>, vector<32x384xf32> -> vector<32x384xf32>
    %111 = arith.addf %105, %110 : vector<32x384xf32>
    %c9 = arith.constant 9 : index
    %c0_57 = arith.constant 0 : index
    %112 = vector.load %arg13[%c9, %c0_57] : memref<16x384xf32, #tpu.memory_space<vmem>>, vector<1x384xf32>
    %113 = vector.broadcast %112 : vector<1x384xf32> to vector<32x384xf32>
    %114 = arith.addf %111, %113 : vector<32x384xf32>
    %cst_58 = arith.constant 0.000000e+00 : f32
    %115 = vector.broadcast %cst_58 : f32 to vector<32x384xf32>
    %116 = arith.maximumf %114, %115 : vector<32x384xf32>
    %117 = arith.truncf %116 : vector<32x384xf32> to vector<32x384xbf16>
    %c0_59 = arith.constant 0 : index
    %c0_60 = arith.constant 0 : index
    %118 = vector.load %arg12[%c0_59, %c0_60] : memref<384x256xbf16, #tpu.memory_space<vmem>>, vector<384x256xbf16>
    %cst_61 = arith.constant dense<0.000000e+00> : vector<32x256xf32>
    %119 = tpu.matmul %117, %118, %cst_61 {dimension_numbers = #tpu.dot_dimension_numbers<[1], [0], [0], [1], [0, 0, 1, 1], [], []>} : vector<32x384xbf16>, vector<384x256xbf16>, vector<32x256xf32> -> vector<32x256xf32>
    %c10 = arith.constant 10 : index
    %c0_62 = arith.constant 0 : index
    %120 = vector.load %arg13[%c10, %c0_62] : memref<16x384xf32, #tpu.memory_space<vmem>>, vector<1x256xf32>
    %121 = vector.broadcast %120 : vector<1x256xf32> to vector<32x256xf32>
    %122 = arith.addf %119, %121 : vector<32x256xf32>
    %cst_63 = arith.constant 0.000000e+00 : f32
    %123 = vector.broadcast %cst_63 : f32 to vector<32x256xf32>
    %124 = arith.maximumf %122, %123 : vector<32x256xf32>
    %c0_64 = arith.constant 0 : index
    %c0_65 = arith.constant 0 : index
    %125 = vector.load %arg14[%c0_64, %c0_65] : memref<32x256xf32, #tpu.memory_space<vmem>>, vector<32x256xf32>
    tpu.vector_store %arg14[%c0_64, %c0_65], %124 {strides = array<i32>} : memref<32x256xf32, #tpu.memory_space<vmem>>, vector<32x256xf32>,
    return
  }
  func.func @transform_0(%arg0: i32) -> (i32, i32) {
    %c0_i32 = arith.constant 0 : i32
    %c0_i32_0 = arith.constant 0 : i32
    return %arg0, %c0_i32 : i32, i32
  }
  func.func @transform_1(%arg0: i32) -> (i32, i32) {
    %c0_i32 = arith.constant 0 : i32
    %c0_i32_0 = arith.constant 0 : i32
    return %arg0, %c0_i32 : i32, i32
  }
  func.func @transform_2(%arg0: i32) -> (i32, i32) {
    %c0_i32 = arith.constant 0 : i32
    %c0_i32_0 = arith.constant 0 : i32
    return %arg0, %c0_i32 : i32, i32
  }
  func.func @transform_3(%arg0: i32) -> (i32, i32) {
    %c0_i32 = arith.constant 0 : i32
    %c0_i32_0 = arith.constant 0 : i32
    %c0_i32_1 = arith.constant 0 : i32
    return %c0_i32, %c0_i32_0 : i32, i32
  }
  func.func @transform_4(%arg0: i32) -> (i32, i32) {
    %c0_i32 = arith.constant 0 : i32
    %c0_i32_0 = arith.constant 0 : i32
    %c0_i32_1 = arith.constant 0 : i32
    return %c0_i32, %c0_i32_0 : i32, i32
  }
  func.func @transform_5(%arg0: i32) -> (i32, i32) {
    %c0_i32 = arith.constant 0 : i32
    %c0_i32_0 = arith.constant 0 : i32
    %c0_i32_1 = arith.constant 0 : i32
    return %c0_i32, %c0_i32_0 : i32, i32
  }
  func.func @transform_6(%arg0: i32) -> (i32, i32) {
    %c0_i32 = arith.constant 0 : i32
    %c0_i32_0 = arith.constant 0 : i32
    %c0_i32_1 = arith.constant 0 : i32
    return %c0_i32, %c0_i32_0 : i32, i32
  }
  func.func @transform_7(%arg0: i32) -> (i32, i32) {
    %c0_i32 = arith.constant 0 : i32
    %c0_i32_0 = arith.constant 0 : i32
    %c0_i32_1 = arith.constant 0 : i32
    return %c0_i32, %c0_i32_0 : i32, i32
  }
  func.func @transform_8(%arg0: i32) -> (i32, i32) {
    %c0_i32 = arith.constant 0 : i32
    %c0_i32_0 = arith.constant 0 : i32
    %c0_i32_1 = arith.constant 0 : i32
    return %c0_i32, %c0_i32_0 : i32, i32
  }
  func.func @transform_9(%arg0: i32) -> (i32, i32) {
    %c0_i32 = arith.constant 0 : i32
    %c0_i32_0 = arith.constant 0 : i32
    %c0_i32_1 = arith.constant 0 : i32
    return %c0_i32, %c0_i32_0 : i32, i32
  }
  func.func @transform_10(%arg0: i32) -> (i32, i32) {
    %c0_i32 = arith.constant 0 : i32
    %c0_i32_0 = arith.constant 0 : i32
    %c0_i32_1 = arith.constant 0 : i32
    return %c0_i32, %c0_i32_0 : i32, i32
  }
  func.func @transform_11(%arg0: i32) -> (i32, i32) {
    %c0_i32 = arith.constant 0 : i32
    %c0_i32_0 = arith.constant 0 : i32
    %c0_i32_1 = arith.constant 0 : i32
    return %c0_i32, %c0_i32_0 : i32, i32
  }
  func.func @transform_12(%arg0: i32) -> (i32, i32) {
    %c0_i32 = arith.constant 0 : i32
    %c0_i32_0 = arith.constant 0 : i32
    %c0_i32_1 = arith.constant 0 : i32
    return %c0_i32, %c0_i32_0 : i32, i32
  }
  func.func @transform_13(%arg0: i32) -> (i32, i32) {
    %c0_i32 = arith.constant 0 : i32
    %c0_i32_0 = arith.constant 0 : i32
    return %arg0, %c0_i32 : i32, i32
  }
}

</mosaic_0001>

<bundles_post_ra>
// kernel: _batched_compute.1
= control target key start
LH: loop header
LB: loop body
LE: loop exit
PB: predicated region body
PF: predicated region fallthrough
CT: control target
= control target key end

     0   :  { %18 = vsyncpa [#allocation3], 0  ;;  %s7099_s0 = inlined_call_operand.vmem [shape: bf16[64,128], index: 0, kind: input, shape index: {}]   ;;  %s7100_s1 = inlined_call_operand.vmem [shape: s32[64,1], index: 1, kind: input, shape index: {}]   ;;  %s7101_s2 = inlined_call_operand.vmem [shape: s32[64,1], index: 2, kind: input, shape index: {}]   ;;  %s7102_s3 = inlined_call_operand.vmem [shape: bf16[128,256], index: 3, kind: input, shape index: {}]   ;;  %s7103_s4 = inlined_call_operand.vmem [shape: bf16[128,256], index: 4, kind: input, shape index: {}]   ;;  %s7104_s5 = inlined_call_operand.vmem [shape: bf16[128,128], index: 5, kind: input, shape index: {}]   ;;  %s7105_s6 = inlined_call_operand.vmem [shape: bf16[128,256], index: 6, kind: input, shape index: {}]   ;;  %s7106_s7 = inlined_call_operand.vmem [shape: bf16[256,256], index: 7, kind: input, shape index: {}]   ;;  %s7107_s8 = inlined_call_operand.vmem [shape: bf16[256,256], index: 8, kind: input, shape index: {}]   ;;  %s7108_s9 = inlined_call_operand.vmem [shape: bf16[256,384], index: 9, kind: input, shape index: {}]   ;;  %s7109_s10 = inlined_call_operand.vmem [shape: bf16[256,384], index: 10, kind: input, shape index: {}]   ;;  %s7110_s11 = inlined_call_operand.vmem [shape: bf16[384,256], index: 11, kind: input, shape index: {}]   ;;  %s7111_s12 = inlined_call_operand.vmem [shape: f32[16,384], index: 12, kind: input, shape index: {}]   ;;  %s7112_s13 = inlined_call_operand.hbm [shape: f32[64,256], index: 13, kind: output, shape index: {}]  }
   0x1   :  { %20 = vsyncpa [#allocation3 + $0x1], 0  ;;  %s4957_s25 = smov 0   ;;  %s4959_s26 = smov 0  }
   0x2   :  { %s4961_s27 = smov 0   ;;  %s4963_s28 = smov 0  }
   0x3 LB: > { %7119 = sst [smem:[#allocation5_spill]] %s4868_s25  ;;  %s4978_s29 = sadd.s32 4294967295, %s4880_s28   ;;  %s4880_s28 = sphi %s4963_s28, %s7130_s28   ;;  %s4876_s27 = sphi %s4961_s27, %s7132_s27   ;;  %s4872_s26 = sphi %s4959_s26, %s7134_s26   ;;  %s4868_s25 = sphi %s4957_s25, %s7133_s25  }
   0x4   : > { %7120 = sst [smem:[#allocation6_spill]] %s4876_s27  ;;  %s3370_s30 = sadd.s32 4294967294, %s4880_s28  }
   0x5   : > { %7121 = sst [smem:[#allocation7_spill]] %s4880_s28  ;;  %s4982_s14 = sadd.s32 1, %s4880_s28  }
   0x6   : > { %7122 = sst [smem:[#allocation8_spill]] %s4982_s14  ;;  %s321_s15 = sadd.s32 1, %s4876_s27 }
   0x7   : > { %s318_s16 = ssub.s32 %s4880_s28, %s4982_s14  ;;  %p331_p0 = scmp.ne.s32.totalorder %s4876_s27, %s4872_s26 }
   0x8   : > { %p319_p1 = scmp.eq.s32.totalorder %s318_s16, 0  ;;  %p332_p2 = scmp.eq.s32.totalorder %s4978_s29, 1 }
   0x9   : > { %p337_p3 = scmp.ne.s32.totalorder %s4872_s26, %s4868_s25  ;;  %p338_p4 = scmp.eq.s32.totalorder %s3370_s30, 1 }
   0xa   : > { %s4993_s17 = scalar_select %p319_p1, %s4876_s27, %s321_s15  }
   0xb   : > { %p4995_p5 = por %p332_p2, %p331_p0  ;;  %p4999_p6 = por %p338_p4, %p337_p3 }
   0xc   : > { %7123 = sst [smem:[#allocation9_spill]] %s4993_s17  ;;  %p3373_p7 = scmp.ge.s32.totalorder %s4880_s28, 1 }
   0xd   : > { %s7125_s19 = scalar_select %p4999_p6, 1, 0 }
   0xe   : > { %p413_p8 = scmp.lt.s32.totalorder %s4880_s28, 3 }
   0xf   : > { %7126 = sst [smem:[#allocation10_spill]] %s7125_s19 }
  0x10   : > { %p414_p9 = pnand %p3373_p7, %p413_p8 }
  0x11   : > { %s3375_s20 = sshll.u32 (!%p414_p9), %s4978_s29, 2  ;;  %s464_s17 = sand.u32 (!%p414_p9), 1, %s4872_s26  }
  0x12   : > { %417 = sbr.rel (%p414_p9) target bundleno = 1498 (0x5da), region = 72  ;;  %p468_p10 = scmp.lt.s32.totalorder (!%p414_p9), %s3375_s20, 7 }
  0x13   : > { %s3374_s30 = sshll.u32 (!%p414_p9), %s464_s17, 6  ;;  %s4744_s16 = sshll.u32 (!%p414_p9), %s4978_s29, 6 }
  0x14   : > { %s3268_s29 = scalar_lea.sflag (!%p414_p9), [#allocation3], %s464_s17  ;;  %s4838_s24 = scalar_lea.hbm (!%p414_p9), %s7112_s13, 128 }
  0x17   : > { %v3511_v0 = vld [vmem:[%s7102_s3 + $0x70] sm:$0xf]  ;;  %v4492_v1 = vld [vmem:[%s7102_s3 + $0x74] sm:$0xf0]  ;;  %v4882_v2 = vmov 0   ;;  %s7136_s20 = smov (!%p468_p10, %s3375_s20), 7 }
  0x18   : > { %4798 = vset.pattern.permute.xlu1 %v4882_v2  ;;  %4797 = vset.pattern.permute.xlu0 %v4882_v2  ;;  %v3512_v3 = vor.u32 %v4492_v1, %v3511_v0  ;;  %v4491_v4 = vld [vmem:[%s7102_s3 + $0x74] sm:$0xf]  ;;  %v3513_v5 = vld [vmem:[%s7102_s3 + $0x78] sm:$0xf0]  ;;  %v3503_v7 = vld [vmem:[%s7102_s3 + $0x60] sm:$0xf] }
  0x19   : > { %4799 = vset.pattern.permute.xlu2 %v4882_v2  ;;  %v3516_v6 = vor.u32 %v4491_v4, %v3513_v5  ;;  %v4490_v8 = vld [vmem:[%s7102_s3 + $0x64] sm:$0xf0]  ;;  %v4489_v9 = vld [vmem:[%s7102_s3 + $0x64] sm:$0xf]  ;;  %v3505_v11 = vld [vmem:[%s7102_s3 + $0x68] sm:$0xf0] }
  0x1a   : > { %770 = vmatpush.bf16.msra.mxu2 %v3512_v3  ;;  %v3504_v10 = vor.u32 %v4490_v8, %v3503_v7  ;;  %v3439_v12 = vld [vmem:[%s7103_s4 + $0x70] sm:$0xf]  ;;  %v4508_v13 = vld [vmem:[%s7103_s4 + $0x74] sm:$0xf0]  ;;  %v4507_v14 = vld [vmem:[%s7103_s4 + $0x74] sm:$0xf]  ;;  %v3508_v16 = vor.u32 %v4489_v9, %v3505_v11 }
  0x1b   : > { %789 = vmatpush.bf16.msra.mxu3 %v3516_v6  ;;  %v3441_v15 = vld [vmem:[%s7103_s4 + $0x78] sm:$0xf0]  ;;  %s3378_s19 = sshll.u32 %s7136_s20, 3  ;;  %v3440_v17 = vor.u32 %v4508_v13, %v3439_v12  ;;  %v3495_v19 = vld [vmem:[%s7102_s3 + $0x50] sm:$0xf]  ;;  %s3376_s15 = sshll.u32 %s7136_s20, 2 }
  0x1c   : > { %v3444_v18 = vor.u32 %v4507_v14, %v3441_v15  ;;  %v4488_v20 = vld [vmem:[%s7102_s3 + $0x54] sm:$0xf0]  ;;  %s483_s27 = scalar_lea.vmem %s7101_s2, %s3378_s19  ;;  %s5057_s23 = scalar_lea.vmem %s7100_s1, %s3378_s19  ;;  %v4487_v21 = vld [vmem:[%s7102_s3 + $0x54] sm:$0xf]  ;;  %v3497_v22 = vld [vmem:[%s7102_s3 + $0x58] sm:$0xf0] }
  0x1d   : > { %v516_v23 = vld [vmem:[%s483_s27 + $0x10] sm:$0xff]  ;;  %v514_v24 = vld [vmem:[%s483_s27] sm:$0xff]  ;;  %652 = vmatpush.bf16.msra.mxu0 %v3440_v17  ;;  %v3496_v25 = vor.u32 %v4488_v20, %v3495_v19  ;;  %v3500_v28 = vor.u32 %v4487_v21, %v3497_v22  ;;  %v4506_v29 = vld [vmem:[%s7103_s4 + $0x64] sm:$0xf0]  ;;  %s471_s28 = scalar_lea.vmem %s7099_s0, %s3376_s15  ;;  %s7055_s15 = scalar_lea.vmem [#allocation2], %s3374_s30 }
  0x1e   : > { %771 = vmatpush.bf16.msra.mxu2 %v3504_v10  ;;  %v3431_v26 = vld [vmem:[%s7103_s4 + $0x60] sm:$0xf]  ;;  %525 = vperm.xlu1 %4798, %v516_v23   ;;  %v4505_v31 = vld [vmem:[%s7103_s4 + $0x64] sm:$0xf]  ;;  %v3433_v32 = vld [vmem:[%s7103_s4 + $0x68] sm:$0xf0]  ;;  %s3280_s19 = scalar_lea.hbm %s7112_s13, %s4744_s16 }
  0x1f   : > { %519 = vperm.xlu0 %4797, %v514_v24   ;;  %v488_v27 = vld [vmem:[%s5057_s23] sm:$0xff]  ;;  %790 = vmatpush.bf16.msra.mxu3 %v3508_v16  ;;  %v3432_v30 = vor.u32 %v4506_v29, %v3431_v26  ;;  %v517_v34 = vld [vmem:[%s483_s27 + $0x18] sm:$0xff]  ;;  %v515_v35 = vld [vmem:[%s483_s27 + $0x8] sm:$0xff]  ;;  %v3436_v36 = vor.u32 %v4505_v31, %v3433_v32  ;;  %s3281_s21 = sshll.u32 %s7055_s15, 4  ;;  %s3283_s22 = sshll.u32 %s3280_s19, 4  ;;  %s3282_s21 = int_to_ptr.vmem [resolvable:$true] %s3281_s21  ;;  %s3284_s22 = int_to_ptr.hbm [resolvable:$true] %s3283_s22 }
  0x20   : > { %671 = vmatpush.bf16.msra.mxu1 %v3444_v18  ;;  %493 = vperm.xlu2 %4799, %v488_v27   ;;  %v3487_v33 = vld [vmem:[%s7102_s3 + $0x40] sm:$0xf]  ;;  %v4486_v37 = vld [vmem:[%s7102_s3 + $0x44] sm:$0xf0]  ;;  %v4485_v38 = vld [vmem:[%s7102_s3 + $0x44] sm:$0xf] }
  0x21   : > { %v3489_v39 = vld [vmem:[%s7102_s3 + $0x48] sm:$0xf0]  ;;  %653 = vmatpush.bf16.msra.mxu0 %v3432_v30  ;;  %v3488_v40 = vor.u32 %v4486_v37, %v3487_v33  ;;  %v3423_v41 = vld [vmem:[%s7103_s4 + $0x50] sm:$0xf]  ;;  %v4504_v42 = vld [vmem:[%s7103_s4 + $0x54] sm:$0xf0] }
  0x22   : > { %772 = vmatpush.bf16.msra.mxu2 %v3496_v25  ;;  %v4503_v43 = vld [vmem:[%s7103_s4 + $0x54] sm:$0xf]  ;;  %v489_v44 = vld [vmem:[%s5057_s23 + $0x8] sm:$0xff]  ;;  %v3492_v45 = vor.u32 %v4485_v38, %v3489_v39  ;;  %v3424_v46 = vor.u32 %v4504_v42, %v3423_v41  ;;  %v3425_v47 = vld [vmem:[%s7103_s4 + $0x58] sm:$0xf0]  ;;  %v486_v41 = vlaneseq }
  0x23   : > { %791 = vmatpush.bf16.msra.mxu3 %v3500_v28  ;;  %v3479_v48 = vld [vmem:[%s7102_s3 + $0x30] sm:$0xf]  ;;  %v4484_v49 = vld [vmem:[%s7102_s3 + $0x34] sm:$0xf0]  ;;  %v3428_v50 = vor.u32 %v4503_v43, %v3425_v47  ;;  %v4483_v51 = vld [vmem:[%s7102_s3 + $0x34] sm:$0xf] }
  0x24   : > { %672 = vmatpush.bf16.msra.mxu1 %v3436_v36  ;;  %v3481_v52 = vld [vmem:[%s7102_s3 + $0x38] sm:$0xf0]  ;;  %v3415_v53 = vld [vmem:[%s7103_s4 + $0x40] sm:$0xf]  ;;  %v3480_v54 = vor.u32 %v4484_v49, %v3479_v48  ;;  %v4502_v55 = vld [vmem:[%s7103_s4 + $0x44] sm:$0xf0] }
  0x25   : > { %v4501_v56 = vld [vmem:[%s7103_s4 + $0x44] sm:$0xf]  ;;  %v3417_v57 = vld [vmem:[%s7103_s4 + $0x48] sm:$0xf0]  ;;  %v3471_v58 = vld [vmem:[%s7102_s3 + $0x20] sm:$0xf]  ;;  %654 = vmatpush.bf16.msra.mxu0 %v3424_v46  ;;  %v3484_v60 = vor.u32 %v4483_v51, %v3481_v52  ;;  %v3416_v61 = vor.u32 %v4502_v55, %v3415_v53 }
  0x26   : > { %773 = vmatpush.bf16.msra.mxu2 %v3488_v40  ;;  %528 = vperm.xlu1 %4798, %v517_v34   ;;  %v4482_v59 = vld [vmem:[%s7102_s3 + $0x24] sm:$0xf0]  ;;  %v3420_v62 = vor.u32 %v4501_v56, %v3417_v57  ;;  %v4481_v63 = vld [vmem:[%s7102_s3 + $0x24] sm:$0xf]  ;;  %v3473_v0 = vld [vmem:[%s7102_s3 + $0x28] sm:$0xf0] }
  0x27   : > { %522 = vperm.xlu0 %4797, %v515_v35   ;;  %792 = vmatpush.bf16.msra.mxu3 %v3492_v45  ;;  %v3472_v1 = vor.u32 %v4482_v59, %v3471_v58  ;;  %v491_v2 = vld [vmem:[%s5057_s23 + $0x18] sm:$0xff]  ;;  %v490_v3 = vld [vmem:[%s5057_s23 + $0x10] sm:$0xff]  ;;  %v3476_v4 = vor.u32 %v4481_v63, %v3473_v0  ;;  %v3399_v16 = vld [vmem:[%s7103_s4 + $0x20] sm:$0xf]  ;;  %v4883_v48 = vmov 1.0|1.0  }
  0x28   : > { %496 = vperm.xlu2 %4799, %v489_v44   ;;  %673 = vmatpush.bf16.msra.mxu1 %v3428_v50  ;;  %v3407_v5 = vld [vmem:[%s7103_s4 + $0x30] sm:$0xf]  ;;  %v4500_v6 = vld [vmem:[%s7103_s4 + $0x34] sm:$0xf0]  ;;  %v4499_v7 = vld [vmem:[%s7103_s4 + $0x34] sm:$0xf] }
  0x29   : > { %655 = vmatpush.bf16.msra.mxu0 %v3416_v61  ;;  %v3408_v8 = vor.u32 %v4500_v6, %v3407_v5  ;;  %v3409_v9 = vld [vmem:[%s7103_s4 + $0x38] sm:$0xf0]  ;;  %v3463_v10 = vld [vmem:[%s7102_s3 + $0x10] sm:$0xf]  ;;  %v4480_v11 = vld [vmem:[%s7102_s3 + $0x14] sm:$0xf0] }
  0x2a   : > { %774 = vmatpush.bf16.msra.mxu2 %v3480_v54  ;;  %v3412_v12 = vor.u32 %v4499_v7, %v3409_v9  ;;  %v3464_v13 = vor.u32 %v4480_v11, %v3463_v10  ;;  %v4479_v14 = vld [vmem:[%s7102_s3 + $0x14] sm:$0xf]  ;;  %v3465_v15 = vld [vmem:[%s7102_s3 + $0x18] sm:$0xf0]  ;;  %v4498_v18 = vld [vmem:[%s7103_s4 + $0x24] sm:$0xf0] }
  0x2b   : > { %793 = vmatpush.bf16.msra.mxu3 %v3484_v60  ;;  %v3468_v17 = vor.u32 %v4479_v14, %v3465_v15  ;;  %v4497_v19 = vld [vmem:[%s7103_s4 + $0x24] sm:$0xf]  ;;  %v3401_v20 = vld [vmem:[%s7103_s4 + $0x28] sm:$0xf0]  ;;  %v3400_v21 = vor.u32 %v4498_v18, %v3399_v16  ;;  %v3455_v23 = vld [vmem:[%s7102_s3] sm:$0xf] }
  0x2c   : > { %674 = vmatpush.bf16.msra.mxu1 %v3420_v62  ;;  %v3404_v22 = vor.u32 %v4497_v19, %v3401_v20  ;;  %v4478_v24 = vld [vmem:[%s7102_s3 + $0x4] sm:$0xf0]  ;;  %v4477_v25 = vld [vmem:[%s7102_s3 + $0x4] sm:$0xf]  ;;  %v3457_v27 = vld [vmem:[%s7102_s3 + $0x8] sm:$0xf0] }
  0x2d   : > { %656 = vmatpush.bf16.msra.mxu0 %v3408_v8  ;;  %v3456_v26 = vor.u32 %v4478_v24, %v3455_v23  ;;  %v3460_v28 = vor.u32 %v4477_v25, %v3457_v27  ;;  %v3391_v29 = vld [vmem:[%s7103_s4 + $0x10] sm:$0xf]  ;;  %v4496_v30 = vld [vmem:[%s7103_s4 + $0x14] sm:$0xf0]  ;;  %v4495_v32 = vld [vmem:[%s7103_s4 + $0x14] sm:$0xf] }
  0x2e   : > { %775 = vmatpush.bf16.msra.mxu2 %v3472_v1  ;;  %502 = vperm.xlu1 %4798, %v491_v2   ;;  %v3392_v31 = vor.u32 %v4496_v30, %v3391_v29  ;;  %v3393_v33 = vld [vmem:[%s7103_s4 + $0x18] sm:$0xf0]  ;;  %v3383_v34 = vld [vmem:[%s7103_s4] sm:$0xf]  ;;  %v4494_v36 = vld [vmem:[%s7103_s4 + $0x4] sm:$0xf0] }
  0x2f   : > { %499 = vperm.xlu0 %4797, %v490_v3   ;;  %794 = vmatpush.bf16.msra.mxu3 %v3476_v4  ;;  %v3396_v35 = vor.u32 %v4495_v32, %v3393_v33  ;;  %v4493_v37 = vld [vmem:[%s7103_s4 + $0x4] sm:$0xf]  ;;  %v3385_v38 = vld [vmem:[%s7103_s4 + $0x8] sm:$0xf0]  ;;  %v3384_v39 = vor.u32 %v4494_v36, %v3383_v34  ;;  %v4518_v43 = vld [vmem:[%s7104_s5 + $0x38] sm:$0xff]  ;;  %v487_v44 = vand.u32 127, %v486_v41 }
  0x30   : > { %675 = vmatpush.bf16.msra.mxu1 %v3412_v12  ;;  %v3388_v40 = vor.u32 %v4493_v37, %v3385_v38  ;;  %v4517_v45 = vld [vmem:[%s7104_s5 + $0x30] sm:$0xff]  ;;  %v4516_v47 = vld [vmem:[%s7104_s5 + $0x28] sm:$0xff]  ;;  %v4515_v49 = vld [vmem:[%s7104_s5 + $0x20] sm:$0xff]  ;;  %s4832_s23 = sshra.s32 %s3284_s22, 4  ;;  %s4833_s23 = int_to_ptr.hbm [resolvable:$true] %s4832_s23 }
  0x31   : > { %657 = vmatpush.bf16.msra.mxu0 %v3400_v21  ;;  %v4514_v50 = vld [vmem:[%s7104_s5 + $0x18] sm:$0xff]  ;;  %v4513_v51 = vld [vmem:[%s7104_s5 + $0x10] sm:$0xff]  ;;  %v4512_v54 = vld [vmem:[%s7104_s5 + $0x8] sm:$0xff]  ;;  %s4834_s27 = scalar_lea.hbm %s4833_s23, 64  ;;  %p4839_p0 = scmp.lt.s32.totalorder %s4833_s23, %s7112_s13 }
  0x32   : > { %776 = vmatpush.bf16.msra.mxu2 %v3464_v13  ;;  %v4511_v55 = vld [vmem:[%s7104_s5] sm:$0xff]  ;;  %v4510_v61 = vld [vmem:[%s471_s28 + $0x8] sm:$0xff]  ;;  %v4533_v62 = vld [vmem:[%s7105_s6 + $0x74] sm:$0xf]  ;;  %p4835_p11 = scmp.ne.s32.totalorder %s4833_s23, %s4834_s27  ;;  %p4840_p1 = scmp.lt.s32.totalorder %s4838_s24, %s4834_s27 }
  0x33   : > { %795 = vmatpush.bf16.msra.mxu3 %v3468_v17  ;;  %v4509_v60 = vld [vmem:[%s471_s28] sm:$0xff]  ;;  %v3629_v63 = vld [vmem:[%s7105_s6 + $0x78] sm:$0xf0]  ;;  %v3627_v0 = vld [vmem:[%s7105_s6 + $0x70] sm:$0xf] }
  0x34   : > { %676 = vmatpush.bf16.msra.mxu1 %v3404_v22  ;;  %v3632_v1 = vor.u32 %v4533_v62, %v3629_v63  ;;  %v4534_v2 = vld [vmem:[%s7105_s6 + $0x74] sm:$0xf0]  ;;  %v4531_v4 = vld [vmem:[%s7105_s6 + $0x64] sm:$0xf]  ;;  %v3621_v5 = vld [vmem:[%s7105_s6 + $0x68] sm:$0xf0]  ;;  %p4836_p12 = pnand %p4835_p11, %p4995_p5  ;;  %p4841_p2 = por %p4840_p1, %p4839_p0 }
  0x35   : > { %658 = vmatpush.bf16.msra.mxu0 %v3392_v31  ;;  %v3628_v3 = vor.u32 %v4534_v2, %v3627_v0  ;;  %v3619_v6 = vld [vmem:[%s7105_s6 + $0x60] sm:$0xf]  ;;  %v3624_v7 = vor.u32 %v4531_v4, %v3621_v5  ;;  %v4532_v8 = vld [vmem:[%s7105_s6 + $0x64] sm:$0xf0]  ;;  %v4529_v10 = vld [vmem:[%s7105_s6 + $0x54] sm:$0xf] }
  0x36   : > { %777 = vmatpush.bf16.msra.mxu2 %v3456_v26  ;;  %v3620_v9 = vor.u32 %v4532_v8, %v3619_v6  ;;  %v3613_v11 = vld [vmem:[%s7105_s6 + $0x58] sm:$0xf0]  ;;  %v3611_v12 = vld [vmem:[%s7105_s6 + $0x50] sm:$0xf]  ;;  %v4530_v14 = vld [vmem:[%s7105_s6 + $0x54] sm:$0xf0]  ;;  %p4837_p13 = pneg %p4836_p12 }
  0x37   : > { %796 = vmatpush.bf16.msra.mxu3 %v3460_v28  ;;  %v3616_v13 = vor.u32 %v4529_v10, %v3613_v11  ;;  %v3612_v15 = vor.u32 %v4530_v14, %v3611_v12  ;;  %v4527_v16 = vld [vmem:[%s7105_s6 + $0x44] sm:$0xf]  ;;  %v3605_v17 = vld [vmem:[%s7105_s6 + $0x48] sm:$0xf0]  ;;  %v3603_v18 = vld [vmem:[%s7105_s6 + $0x40] sm:$0xf] }
  0x38   : > { %677 = vmatpush.bf16.msra.mxu1 %v3396_v35  ;;  %v3608_v19 = vor.u32 %v4527_v16, %v3605_v17  ;;  %v4528_v20 = vld [vmem:[%s7105_s6 + $0x44] sm:$0xf0]  ;;  %v4525_v21 = vld [vmem:[%s7105_s6 + $0x34] sm:$0xf]  ;;  %v3597_v22 = vld [vmem:[%s7105_s6 + $0x38] sm:$0xf0]  ;;  %p4842_p3 = pnand %p4841_p2, %p4837_p13 }
  0x39   : > { %659 = vmatpush.bf16.msra.mxu0 %v3384_v39  ;;  %v3604_v25 = vor.u32 %v4528_v20, %v3603_v18  ;;  %v3600_v26 = vor.u32 %v4525_v21, %v3597_v22  ;;  %v3595_v27 = vld [vmem:[%s7105_s6 + $0x30] sm:$0xf]  ;;  %v4526_v28 = vld [vmem:[%s7105_s6 + $0x34] sm:$0xf0]  ;;  %v4523_v34 = vld [vmem:[%s7105_s6 + $0x24] sm:$0xf] }
  0x3a   : > { %1188 = vmatpush.bf16.msrb.mxu2 %v3632_v1  ;;  %v3596_v29 = vor.u32 %v4526_v28, %v3595_v27  ;;  %v3589_v35 = vld [vmem:[%s7105_s6 + $0x28] sm:$0xf0]  ;;  %v3587_v36 = vld [vmem:[%s7105_s6 + $0x20] sm:$0xf]  ;;  %v4524_v38 = vld [vmem:[%s7105_s6 + $0x24] sm:$0xf0] }
  0x3b   : > { %v3592_v37 = vor.u32 %v4523_v34, %v3589_v35  ;;  %v3588_v39 = vor.u32 %v4524_v38, %v3587_v36  ;;  %v3581_v41 = vld [vmem:[%s7105_s6 + $0x18] sm:$0xf0]  ;;  %v3692_v63 = vld [vmem:[%s7106_s7 + $0x70] sm:$0xf]  ;;  %v4550_v0 = vld [vmem:[%s7106_s7 + $0x74] sm:$0xf0] }
  0x3c   : > { %678 = vmatpush.bf16.msra.mxu1 %v3388_v40  ;;  %v4521_v40 = vld [vmem:[%s7105_s6 + $0x14] sm:$0xf]  ;;  %v3694_v4 = vld [vmem:[%s7106_s7 + $0x78] sm:$0xf0]  ;;  %v3684_v5 = vld [vmem:[%s7106_s7 + $0x60] sm:$0xf] }
  0x3d   : > { %1041 = vmatpush.bf16.msrb.mxu0 %v4518_v43  ;;  %v4549_v1 = vld [vmem:[%s7106_s7 + $0x74] sm:$0xf]  ;;  %v4548_v6 = vld [vmem:[%s7106_s7 + $0x64] sm:$0xf0]  ;;  %v4547_v8 = vld [vmem:[%s7106_s7 + $0x64] sm:$0xf] }
  0x3e   : > { %1189 = vmatpush.bf16.msrb.mxu2 %v3624_v7  ;;  %v3697_v7 = vor.u32 %v4549_v1, %v3694_v4  ;;  %v4565_v10 = vld [vmem:[%s7106_s7 + $0xf4] sm:$0xf]  ;;  %v3685_v11 = vor.u32 %v4548_v6, %v3684_v5  ;;  %v3758_v12 = vld [vmem:[%s7106_s7 + $0xf8] sm:$0xf0]  ;;  %v4566_v14 = vld [vmem:[%s7106_s7 + $0xf4] sm:$0xf0] }
  0x3f   : > { %v3761_v17 = vor.u32 %v4565_v10, %v3758_v12  ;;  %v4546_v20 = vld [vmem:[%s7106_s7 + $0x54] sm:$0xf0]  ;;  %v4545_v21 = vld [vmem:[%s7106_s7 + $0x54] sm:$0xf]  ;;  %v3678_v22 = vld [vmem:[%s7106_s7 + $0x58] sm:$0xf0] }
  0x40   : > { %1169 = vmatpush.bf16.msrb.mxu1 %v3628_v3  ;;  %v3693_v3 = vor.u32 %v4550_v0, %v3692_v63  ;;  %v3681_v34 = vor.u32 %v4545_v21, %v3678_v22  ;;  %v4544_v35 = vld [vmem:[%s7106_s7 + $0x44] sm:$0xf0]  ;;  %v4561_v36 = vld [vmem:[%s7106_s7 + $0xd4] sm:$0xf]  ;;  %v3660_v1 = vld [vmem:[%s7106_s7 + $0x30] sm:$0xf] }
  0x41   : > { %1042 = vmatpush.bf16.msrb.mxu0 %v4517_v45  ;;  %v3579_v45 = vld [vmem:[%s7105_s6 + $0x10] sm:$0xf]  ;;  %v3662_v5 = vld [vmem:[%s7106_s7 + $0x38] sm:$0xf0] }
  0x42   : > { %1190 = vmatpush.bf16.msrb.mxu2 %v3616_v13  ;;  %1418 = vmatpush.bf16.msrb.mxu3 %v3693_v3  ;;  %v3756_v13 = vld [vmem:[%s7106_s7 + $0xf0] sm:$0xf]  ;;  %v4541_v3 = vld [vmem:[%s7106_s7 + $0x34] sm:$0xf] }
  0x43   : > { %v3757_v18 = vor.u32 %v4566_v14, %v3756_v13  ;;  %v3665_v6 = vor.u32 %v4541_v3, %v3662_v5  ;;  %v3652_v13 = vld [vmem:[%s7106_s7 + $0x20] sm:$0xf]  ;;  %v4540_v14 = vld [vmem:[%s7106_s7 + $0x24] sm:$0xf0]  ;;  %v3724_v22 = vld [vmem:[%s7106_s7 + $0xb0] sm:$0xf] }
  0x44   : > { %1170 = vmatpush.bf16.msrb.mxu1 %v3620_v9  ;;  %v3686_v9 = vld [vmem:[%s7106_s7 + $0x68] sm:$0xf0]  ;;  %v3821_v5 = vld [vmem:[%s7107_s8 + $0x70] sm:$0xf] }
  0x45   : > { %1043 = vmatpush.bf16.msrb.mxu0 %v4516_v47  ;;  %v3689_v16 = vor.u32 %v4547_v8, %v3686_v9  ;;  %v3734_v8 = vld [vmem:[%s7106_s7 + $0xc8] sm:$0xf0]  ;;  %v3732_v9 = vld [vmem:[%s7106_s7 + $0xc0] sm:$0xf] }
  0x46   : > { %1191 = vmatpush.bf16.msrb.mxu2 %v3608_v19  ;;  %v3676_v19 = vld [vmem:[%s7106_s7 + $0x50] sm:$0xf]  ;;  %1419 = vmatpush.bf16.msrb.mxu3 %v3685_v11  ;;  %v4560_v11 = vld [vmem:[%s7106_s7 + $0xc4] sm:$0xf0] }
  0x47   : > { %v3677_v27 = vor.u32 %v4546_v20, %v3676_v19  ;;  %v3733_v12 = vor.u32 %v4560_v11, %v3732_v9  ;;  %v4557_v19 = vld [vmem:[%s7106_s7 + $0xb4] sm:$0xf]  ;;  %v3726_v20 = vld [vmem:[%s7106_s7 + $0xb8] sm:$0xf0] }
  0x48   : > { %1171 = vmatpush.bf16.msrb.mxu1 %v3612_v15  ;;  %v980_v15 = vld [vmem:[%s7111_s12] ss:$0 sm:$0xff]  ;;  %v3729_v21 = vor.u32 %v4557_v19, %v3726_v20  ;;  %v4597_v11 = vld [vmem:[%s7107_s8 + $0xf4] sm:$0xf] }
  0x49   : > { %1044 = vmatpush.bf16.msrb.mxu0 %v4515_v49 }
  0x4a   : > { %1192 = vmatpush.bf16.msrb.mxu2 %v3600_v26  ;;  %v4564_v26 = vld [vmem:[%s7106_s7 + $0xe4] sm:$0xf0]  ;;  %1420 = vmatpush.bf16.msrb.mxu3 %v3677_v27  ;;  %v4537_v27 = vld [vmem:[%s7106_s7 + $0x14] sm:$0xf] }
  0x4c   : > { %1172 = vmatpush.bf16.msrb.mxu1 %v3604_v25  ;;  %v3748_v25 = vld [vmem:[%s7106_s7 + $0xe0] sm:$0xf] }
  0x4d   : > { %1045 = vmatpush.bf16.msrb.mxu0 %v4514_v50  ;;  %v4519_v50 = vld [vmem:[%s7105_s6 + $0x4] sm:$0xf] }
  0x4e   : > { %1193 = vmatpush.bf16.msrb.mxu2 %v3592_v37  ;;  %v3742_v37 = vld [vmem:[%s7106_s7 + $0xd8] sm:$0xf0] }
  0x50   : > { %1173 = vmatpush.bf16.msrb.mxu1 %v3596_v29  ;;  %v3749_v29 = vor.u32 %v4564_v26, %v3748_v25  ;;  %v3644_v25 = vld [vmem:[%s7106_s7 + $0x10] sm:$0xf]  ;;  %v4538_v26 = vld [vmem:[%s7106_s7 + $0x14] sm:$0xf0] }
  0x51   : > { %1046 = vmatpush.bf16.msrb.mxu0 %v4513_v51  ;;  %v3573_v51 = vld [vmem:[%s7105_s6 + $0x8] sm:$0xf0] }
  0x54   : > { %1174 = vmatpush.bf16.msrb.mxu1 %v3588_v39  ;;  %v3740_v39 = vld [vmem:[%s7106_s7 + $0xd0] sm:$0xf] }
  0x55   : > { %1047 = vmatpush.bf16.msrb.mxu0 %v4512_v54  ;;  %v4520_v54 = vld [vmem:[%s7105_s6 + $0x4] sm:$0xf0] }
  0x59   : > { %1048 = vmatpush.bf16.msrb.mxu0 %v4511_v55 }
  0x7a   : > { %v494_v42 = vpop.permute.xlu2 %493 }
  0x7b   : > { %vm504_vm0 = vcmp.eq.s32.totalorder %v494_v42, %v487_v44  ;;  %v3584_v42 = vor.u32 %v4521_v40, %v3581_v41  ;;  %v4562_v40 = vld [vmem:[%s7106_s7 + $0xd4] sm:$0xf0] }
  0x7d   : > { %1194 = vmatpush.bf16.msrb.mxu2 %v3584_v42  ;;  %v4543_v42 = vld [vmem:[%s7106_s7 + $0x44] sm:$0xf] }
  0x82   : > { %v497_v46 = vpop.permute.xlu2 %496 }
  0x83   : > { %vm505_vm1 = vcmp.eq.s32.totalorder %v497_v46, %v487_v44  ;;  %v4522_v46 = vld [vmem:[%s7105_s6 + $0x14] sm:$0xf0] }
  0x84   : > { %vm3517_vm2 = vmpackc.low %vm505_vm1, %vm504_vm0  ;;  %v3580_v47 = vor.u32 %v4522_v46, %v3579_v45  ;;  %v3670_v45 = vld [vmem:[%s7106_s7 + $0x48] sm:$0xf0]  ;;  %v3745_v46 = vor.u32 %v4561_v36, %v3742_v37  ;;  %v4556_v37 = vld [vmem:[%s7106_s7 + $0xa4] sm:$0xf0] }
  0x85   : > { %3518 = vmatmul.msk.bf16.vlgmr.msra.gmra.mxu2 %vm3517_vm2, %v4883_v48  ;;  %3522 = vmatmul.msk.bf16.vlgmr.msra.gmra.mxu3 %vm3517_vm2, %v4883_v48 }
  0x86   : > { %1175 = vmatpush.bf16.msrb.mxu1 %v3580_v47  ;;  %v3741_v47 = vor.u32 %v4562_v40, %v3740_v39  ;;  %v3636_v39 = vld [vmem:[%s7106_s7] sm:$0xf]  ;;  %v4536_v40 = vld [vmem:[%s7106_s7 + $0x4] sm:$0xf0] }
  0x90   : > { %v526_v52 = vpop.permute.xlu1 %525 }
  0x91   : > { %v520_v53 = vpop.permute.xlu0 %519  ;;  %vm532_vm9 = vcmp.eq.s32.totalorder %v526_v52, %v487_v44  ;;  %v3571_v52 = vld [vmem:[%s7105_s6] sm:$0xf] }
  0x92   : > { %vm530_vm4 = vcmp.eq.s32.totalorder %v520_v53, %v487_v44  ;;  %v3576_v53 = vor.u32 %v4519_v50, %v3573_v51  ;;  %v3572_v55 = vor.u32 %v4520_v54, %v3571_v52 }
  0x94   : > { %1195 = vmatpush.bf16.msrb.mxu2 %v3576_v53  ;;  %1176 = vmatpush.bf16.msrb.mxu1 %v3572_v55  ;;  %v3673_v53 = vor.u32 %v4543_v42, %v3670_v45  ;;  %v3637_v42 = vor.u32 %v4536_v40, %v3636_v39  ;;  %v3638_v45 = vld [vmem:[%s7106_s7 + $0x8] sm:$0xf0] }
  0x98   : > { %v529_v56 = vpop.permute.xlu1 %528  ;;  %1475 = vmatpush.bf16.msra.mxu2 %v3761_v17  ;;  %v3654_v17 = vld [vmem:[%s7106_s7 + $0x28] sm:$0xf0] }
  0x99   : > { %v523_v57 = vpop.permute.xlu0 %522  ;;  %vm533_vm10 = vcmp.eq.s32.totalorder %v529_v56, %v487_v44 }
  0x9a   : > { %vm531_vm3 = vcmp.eq.s32.totalorder %v523_v57, %v487_v44  ;;  %vm3447_vm11 = vmpackc.low %vm533_vm10, %vm532_vm9 }
  0x9b   : > { %vm3445_vm5 = vmpackc.low %vm531_vm3, %vm530_vm4 }
  0x9c   : > { %3446 = vmatmul.msk.bf16.vlgmr.msra.gmra.mxu0 %vm3445_vm5, %v4883_v48  ;;  %3450 = vmatmul.msk.bf16.vlgmr.msra.gmra.mxu1 %vm3445_vm5, %v4883_v48 }
  0x9d   : > { %1456 = vmatpush.bf16.msra.mxu1 %v3697_v7  ;;  %1437 = vmatpush.bf16.msra.mxu0 %v3757_v18  ;;  %v4559_v7 = vld [vmem:[%s7106_s7 + $0xc4] sm:$0xf] }
  0x9e   : > { %v3737_v10 = vor.u32 %v4559_v7, %v3734_v8  ;;  %v4581_v7 = vld [vmem:[%s7107_s8 + $0x74] sm:$0xf] }
  0xa0   : > { %v503_v58 = vpop.permute.xlu1 %502 }
  0xa1   : > { %v500_v59 = vpop.permute.xlu0 %499  ;;  %vm507_vm6 = vcmp.eq.s32.totalorder %v503_v58, %v487_v44  ;;  %1457 = vmatpush.bf16.msra.mxu1 %v3689_v16  ;;  %1438 = vmatpush.bf16.msra.mxu0 %v3749_v29  ;;  %v3653_v16 = vor.u32 %v4540_v14, %v3652_v13  ;;  %v3646_v29 = vld [vmem:[%s7106_s7 + $0x18] sm:$0xf0] }
  0xa2   : > { %vm506_vm7 = vcmp.eq.s32.totalorder %v500_v59, %v487_v44 }
  0xa3   : > { %vm3519_vm8 = vmpackc.low %vm507_vm6, %vm506_vm7 }
  0xa4   : > { %3520 = vmatmul.msk.bf16.gmra.mxu2 %vm3519_vm8, %v4883_v48  ;;  %3524 = vmatmul.msk.bf16.gmra.mxu3 %vm3519_vm8, %v4883_v48 }
  0xa5   : > { %1458 = vmatpush.bf16.msra.mxu1 %v3681_v34  ;;  %1439 = vmatpush.bf16.msra.mxu0 %v3741_v47  ;;  %v3718_v34 = vld [vmem:[%s7106_s7 + $0xa8] sm:$0xf0]  ;;  %v4553_v47 = vld [vmem:[%s7106_s7 + $0x94] sm:$0xf] }
  0xa9   : > { %1459 = vmatpush.bf16.msra.mxu1 %v3673_v53  ;;  %1440 = vmatpush.bf16.msra.mxu0 %v3733_v12  ;;  %v4554_v53 = vld [vmem:[%s7106_s7 + $0x94] sm:$0xf0]  ;;  %v3887_v12 = vld [vmem:[%s7107_s8 + $0xf8] sm:$0xf0] }
  0xac   : > { %3448 = vmatmul.msk.bf16.gmra.mxu0 %vm3447_vm11, %v4883_v48  ;;  %3452 = vmatmul.msk.bf16.gmra.mxu1 %vm3447_vm11, %v4883_v48 }
  0xad   : > { %1460 = vmatpush.bf16.msra.mxu1 %v3665_v6  ;;  %v4582_v6 = vld [vmem:[%s7107_s8 + $0x74] sm:$0xf0] }
  0xae   : > { %v3822_v9 = vor.u32 %v4582_v6, %v3821_v5  ;;  %v4596_v5 = vld [vmem:[%s7107_s8 + $0xe4] sm:$0xf0]  ;;  %v4577_v6 = vld [vmem:[%s7107_s8 + $0x54] sm:$0xf] }
  0xbc   : > { %1049 = vmatmul.bf16.vlgmr.msrb.gmra.mxu0 %v4509_v60 }
  0xcc   : > { %1054 = vmatmul.bf16.gmra.mxu0 %v4510_v61 }
 0x108   : > { %v779_v23 = vpop.f32.mrf.mxu2  ;;  %v798_v24 = vpop.f32.mrf.mxu3 }
 0x110   : > { %v5323_v43 = vpop.f32.mrf.mxu2  ;;  %v5325_v44 = vpop.f32.mrf.mxu3 }
 0x119   : > { %v661_v30 = vpop.f32.mrf.mxu0  ;;  %v680_v31 = vpop.f32.mrf.mxu1 }
 0x11a   : > { %v5301_v32 = vadd.f32 %v779_v23, %v661_v30  ;;  %v5303_v33 = vadd.f32 %v798_v24, %v680_v31  ;;  %v4563_v23 = vld [vmem:[%s7106_s7 + $0xe4] sm:$0xf]  ;;  %v3750_v24 = vld [vmem:[%s7106_s7 + $0xe8] sm:$0xf0]  ;;  %v3668_v30 = vld [vmem:[%s7106_s7 + $0x40] sm:$0xf] }
 0x11b   : > { %v3753_v28 = vor.u32 %v4563_v23, %v3750_v24  ;;  %v3669_v50 = vor.u32 %v4544_v35, %v3668_v30  ;;  %v4558_v23 = vld [vmem:[%s7106_s7 + $0xb4] sm:$0xf0]  ;;  %v3649_v30 = vor.u32 %v4537_v27, %v3646_v29  ;;  %v3716_v35 = vld [vmem:[%s7106_s7 + $0xa0] sm:$0xf]  ;;  %v3879_v29 = vld [vmem:[%s7107_s8 + $0xe8] sm:$0xf0] }
 0x11c   : > { %v3725_v24 = vor.u32 %v4558_v23, %v3724_v22  ;;  %v4579_v22 = vld [vmem:[%s7107_s8 + $0x64] sm:$0xf]  ;;  %v3815_v23 = vld [vmem:[%s7107_s8 + $0x68] sm:$0xf0] }
 0x11d   : > { %1476 = vmatpush.bf16.msra.mxu2 %v3753_v28  ;;  %1421 = vmatpush.bf16.msrb.mxu3 %v3669_v50  ;;  %v3645_v28 = vor.u32 %v4538_v26, %v3644_v25  ;;  %v3710_v50 = vld [vmem:[%s7106_s7 + $0x98] sm:$0xf0]  ;;  %v3818_v27 = vor.u32 %v4579_v22, %v3815_v23  ;;  %v4591_v22 = vld [vmem:[%s7107_s8 + $0xc4] sm:$0xf]  ;;  %v3863_v23 = vld [vmem:[%s7107_s8 + $0xc8] sm:$0xf0] }
 0x11e   : > { %1441 = vmatpush.bf16.msra.mxu0 %v3725_v24 }
 0x121   : > { %v5333_v48 = vpop.f32.mrf.mxu0  ;;  %v5335_v49 = vpop.f32.mrf.mxu1  ;;  %1477 = vmatpush.bf16.msra.mxu2 %v3745_v46 }
 0x125   : > { %1478 = vmatpush.bf16.msra.mxu2 %v3737_v10  ;;  %v3823_v10 = vld [vmem:[%s7107_s8 + $0x78] sm:$0xf0] }
 0x126   : > { %v3826_v14 = vor.u32 %v4581_v7, %v3823_v10  ;;  %v3807_v7 = vld [vmem:[%s7107_s8 + $0x58] sm:$0xf0]  ;;  %v4593_v10 = vld [vmem:[%s7107_s8 + $0xd4] sm:$0xf] }
 0x127   : > { %v784_v56 = vpop.f32.mrf.mxu2  ;;  %v803_v57 = vpop.f32.mrf.mxu3 }
 0x129   : > { %v666_v58 = vpop.f32.mrf.mxu0  ;;  %v685_v59 = vpop.f32.mrf.mxu1  ;;  %1479 = vmatpush.bf16.msra.mxu2 %v3729_v21  ;;  %v4598_v21 = vld [vmem:[%s7107_s8 + $0xf4] sm:$0xf0] }
 0x12a   : > { %v5349_v60 = vadd.f32 %v784_v56, %v666_v58  ;;  %v5351_v61 = vadd.f32 %v803_v57, %v685_v59 }
 0x131   : > { %v5353_v62 = vpop.f32.mrf.mxu0 }
 0x139   : > { %v1050_v2 = vpop.f32.mrf.mxu0 }
 0x13a   : > { %v1051_v31 = vadd.f32 %v1050_v2, %v980_v15  ;;  %v4542_v2 = vld [vmem:[%s7106_s7 + $0x34] sm:$0xf0] }
 0x13b   : > { %v3661_v4 = vor.u32 %v4542_v2, %v3660_v1  ;;  %v5552_v1 = vpop.f32.mrf.mxu2  ;;  %v3568_v2 = vld [vmem:[%s7111_s12 + $0x1] ss:$8 sm:$0x3] }
 0x13c   : > { %v1060_v51 = vmax.f32 %v1051_v31, 0.0  ;;  %v4555_v31 = vld [vmem:[%s7106_s7 + $0xa4] sm:$0xf]  ;;  %v1086_v24 = vperm.slane %v3568_v2, 1 }
 0x13d   : > { %1422 = vmatpush.bf16.msrb.mxu3 %v3661_v4  ;;  %v3721_v36 = vor.u32 %v4555_v31, %v3718_v34  ;;  %v1085_v4 = vperm.slane %v3568_v2, 0  ;;  %v4578_v2 = vld [vmem:[%s7107_s8 + $0x54] sm:$0xf0] }
 0x13f   : > { %1480 = vmatpush.bf16.msra.mxu2 %v3721_v36 }
 0x141   : > { %v1052_v38 = vpop.f32.mrf.mxu0  ;;  %1423 = vmatpush.bf16.msrb.mxu3 %v3653_v16  ;;  %v3813_v16 = vld [vmem:[%s7107_s8 + $0x60] sm:$0xf] }
 0x142   : > { %v1053_v41 = vadd.f32 %v1052_v38, %v980_v15  ;;  %v3717_v38 = vor.u32 %v4556_v37, %v3716_v35 }
 0x144   : > { %v1061_v52 = vmax.f32 %v1053_v41, 0.0  ;;  %v4535_v41 = vld [vmem:[%s7106_s7 + $0x4] sm:$0xf]  ;;  %1442 = vmatpush.bf16.msra.mxu0 %v3717_v38 }
 0x145   : > { %1424 = vmatpush.bf16.msrb.mxu3 %v3645_v28  ;;  %v3641_v46 = vor.u32 %v4535_v41, %v3638_v45  ;;  %v4595_v28 = vld [vmem:[%s7107_s8 + $0xe4] sm:$0xf] }
 0x146   : > { %v1064_v54 = vpack.c.bf16 %v1061_v52, %v1060_v51  ;;  %v3708_v51 = vld [vmem:[%s7106_s7 + $0x90] sm:$0xf]  ;;  %v3713_v52 = vor.u32 %v4553_v47, %v3710_v50 }
 0x148   : > { %1177 = vmatmul.bf16.vlgmr.msrb.gmra.mxu1 %v1064_v54  ;;  %1196 = vmatmul.bf16.vlgmr.msrb.gmra.mxu2 %v1064_v54  ;;  %v3709_v54 = vor.u32 %v4554_v53, %v3708_v51 }
 0x149   : > { %v1055_v55 = vpop.f32.mrf.mxu0  ;;  %1425 = vmatpush.bf16.msrb.mxu3 %v3637_v42  ;;  %1481 = vmatpush.bf16.msra.mxu2 %v3713_v52 }
 0x14a   : > { %v1056_v56 = vadd.f32 %v1055_v55, %v980_v15  ;;  %1443 = vmatpush.bf16.msra.mxu0 %v3709_v54  ;;  %v4551_v55 = vld [vmem:[%s7106_s7 + $0x84] sm:$0xf] }
 0x14c   : > { %v1062_v58 = vmax.f32 %v1056_v56, 0.0  ;;  %v3702_v56 = vld [vmem:[%s7106_s7 + $0x88] sm:$0xf0] }
 0x14d   : > { %1705 = vmatpush.bf16.msra.mxu3 %v3822_v9  ;;  %v3810_v9 = vor.u32 %v4577_v6, %v3807_v7  ;;  %v3839_v6 = vld [vmem:[%s7107_s8 + $0x98] sm:$0xf0]  ;;  %v3765_v7 = vld [vmem:[%s7107_s8] sm:$0xf] }
 0x151   : > { %v1057_v57 = vpop.f32.mrf.mxu0 }
 0x152   : > { %v1058_v59 = vadd.f32 %v1057_v57, %v980_v15  ;;  %v4539_v15 = vld [vmem:[%s7106_s7 + $0x24] sm:$0xf]  ;;  %v3700_v57 = vld [vmem:[%s7106_s7 + $0x80] sm:$0xf] }
 0x153   : > { %v3657_v18 = vor.u32 %v4539_v15, %v3654_v17  ;;  %v3890_v15 = vor.u32 %v4597_v11, %v3887_v12  ;;  %v4580_v17 = vld [vmem:[%s7107_s8 + $0x64] sm:$0xf0]  ;;  %v3871_v11 = vld [vmem:[%s7107_s8 + $0xd8] sm:$0xf0]  ;;  %v3797_v12 = vld [vmem:[%s7107_s8 + $0x40] sm:$0xf] }
 0x154   : > { %v1063_v63 = vmax.f32 %v1058_v59, 0.0  ;;  %v4552_v59 = vld [vmem:[%s7106_s7 + $0x84] sm:$0xf0]  ;;  %v3814_v20 = vor.u32 %v4580_v17, %v3813_v16  ;;  %v4594_v16 = vld [vmem:[%s7107_s8 + $0xd4] sm:$0xf0] }
 0x155   : > { %1461 = vmatpush.bf16.msra.mxu1 %v3657_v18  ;;  %v3885_v18 = vld [vmem:[%s7107_s8 + $0xf0] sm:$0xf] }
 0x156   : > { %v1065_v0 = vpack.c.bf16 %v1063_v63, %v1062_v58  ;;  %v3705_v58 = vor.u32 %v4551_v55, %v3702_v56  ;;  %v3701_v63 = vor.u32 %v4552_v59, %v3700_v57  ;;  %v3886_v26 = vor.u32 %v4598_v21, %v3885_v18  ;;  %1706 = vmatpush.bf16.msra.mxu3 %v3814_v20  ;;  %v3799_v20 = vld [vmem:[%s7107_s8 + $0x48] sm:$0xf0] }
 0x158   : > { %1201 = vmatmul.bf16.gmra.mxu2 %v1065_v0  ;;  %1182 = vmatmul.bf16.gmra.mxu1 %v1065_v0  ;;  %v5550_v0 = vpop.f32.mrf.mxu1 }
 0x159   : > { %1462 = vmatpush.bf16.msra.mxu1 %v3649_v30  ;;  %1482 = vmatpush.bf16.msra.mxu2 %v3705_v58  ;;  %v3882_v30 = vor.u32 %v4595_v28, %v3879_v29  ;;  %v4592_v28 = vld [vmem:[%s7107_s8 + $0xc4] sm:$0xf0] }
 0x15a   : > { %1444 = vmatpush.bf16.msra.mxu0 %v3701_v63  ;;  %v3805_v63 = vld [vmem:[%s7107_s8 + $0x50] sm:$0xf] }
 0x15d   : > { %1463 = vmatpush.bf16.msra.mxu1 %v3641_v46  ;;  %1762 = vmatpush.bf16.msrb.mxu2 %v3890_v15  ;;  %v3869_v15 = vld [vmem:[%s7107_s8 + $0xd0] sm:$0xf] }
 0x15e   : > { %1724 = vmatpush.bf16.msrb.mxu0 %v3886_v26  ;;  %v3870_v18 = vor.u32 %v4594_v16, %v3869_v15  ;;  %v4574_v26 = vld [vmem:[%s7107_s8 + $0x34] sm:$0xf0]  ;;  %v3767_v15 = vld [vmem:[%s7107_s8 + $0x8] sm:$0xf0] }
 0x161   : > { %1743 = vmatpush.bf16.msrb.mxu1 %v3826_v14  ;;  %1763 = vmatpush.bf16.msrb.mxu2 %v3882_v30  ;;  %v4576_v14 = vld [vmem:[%s7107_s8 + $0x44] sm:$0xf0] }
 0x162   : > { %v3798_v17 = vor.u32 %v4576_v14, %v3797_v12  ;;  %v4567_v14 = vld [vmem:[%s7107_s8 + $0x4] sm:$0xf] }
 0x163   : > { %v3770_v16 = vor.u32 %v4567_v14, %v3767_v15 }
 0x165   : > { %1744 = vmatpush.bf16.msrb.mxu1 %v3818_v27  ;;  %v3861_v27 = vld [vmem:[%s7107_s8 + $0xc0] sm:$0xf] }
 0x166   : > { %v3862_v30 = vor.u32 %v4592_v28, %v3861_v27 }
 0x169   : > { %1745 = vmatpush.bf16.msrb.mxu1 %v3810_v9  ;;  %v4568_v9 = vld [vmem:[%s7107_s8 + $0x4] sm:$0xf0] }
 0x16a   : > { %v3766_v12 = vor.u32 %v4568_v9, %v3765_v7 }
 0x1c5   : > { %v1178_v3 = vpop.f32.mrf.mxu1 }
 0x1c6   : > { %v1179_v13 = vadd.f32 %v1178_v3, %v1085_v4  ;;  %v3877_v3 = vld [vmem:[%s7107_s8 + $0xe0] sm:$0xf] }
 0x1c8   : > { %v1207_v31 = vmax.f32 %v1179_v13, 0.0  ;;  %v3874_v13 = vor.u32 %v4593_v10, %v3871_v11  ;;  %v3837_v10 = vld [vmem:[%s7107_s8 + $0x90] sm:$0xf]  ;;  %v4586_v11 = vld [vmem:[%s7107_s8 + $0x94] sm:$0xf0] }
 0x1ca   : > { %1764 = vmatpush.bf16.msrb.mxu2 %v3874_v13  ;;  %v3838_v13 = vor.u32 %v4586_v11, %v3837_v10 }
 0x1cb   : > { %v1197_v8 = vpop.f32.mrf.mxu2 }
 0x1cc   : > { %v1198_v35 = vadd.f32 %v1197_v8, %v1086_v24  ;;  %v3878_v8 = vor.u32 %v4596_v5, %v3877_v3  ;;  %v3775_v3 = vld [vmem:[%s7107_s8 + $0x18] sm:$0xf0]  ;;  %v4585_v5 = vld [vmem:[%s7107_s8 + $0x94] sm:$0xf] }
 0x1cd   : > { %v1180_v19 = vpop.f32.mrf.mxu1 }
 0x1ce   : > { %v1181_v25 = vadd.f32 %v1180_v19, %v1085_v4  ;;  %v1208_v40 = vmax.f32 %v1198_v35, 0.0  ;;  %1725 = vmatpush.bf16.msrb.mxu0 %v3878_v8  ;;  %v4575_v19 = vld [vmem:[%s7107_s8 + $0x44] sm:$0xf]  ;;  %v3842_v8 = vor.u32 %v4585_v5, %v3839_v6 }
 0x1cf   : > { %v3802_v21 = vor.u32 %v4575_v19, %v3799_v20  ;;  %v3829_v19 = vld [vmem:[%s7107_s8 + $0x80] sm:$0xf] }
 0x1d0   : > { %v1209_v34 = vmax.f32 %v1181_v25, 0.0  ;;  %v3866_v25 = vor.u32 %v4591_v22, %v3863_v23  ;;  %v5749_v23 = vpop.f32.mrf.mxu3 }
 0x1d1   : > { %1746 = vmatpush.bf16.msrb.mxu1 %v3802_v21  ;;  %v4584_v21 = vld [vmem:[%s7107_s8 + $0x84] sm:$0xf0] }
 0x1d2   : > { %v1215_v36 = vpack.c.bf16 %v1209_v34, %v1207_v31  ;;  %1726 = vmatpush.bf16.msrb.mxu0 %v3870_v18  ;;  %v4573_v31 = vld [vmem:[%s7107_s8 + $0x34] sm:$0xf]  ;;  %v3791_v34 = vld [vmem:[%s7107_s8 + $0x38] sm:$0xf0]  ;;  %1765 = vmatpush.bf16.msrb.mxu2 %v3866_v25  ;;  %v3831_v18 = vld [vmem:[%s7107_s8 + $0x88] sm:$0xf0]  ;;  %v3830_v22 = vor.u32 %v4584_v21, %v3829_v19 }
 0x1d3   : > { %v1199_v37 = vpop.f32.mrf.mxu2  ;;  %v3794_v35 = vor.u32 %v4573_v31, %v3791_v34  ;;  %v3633_v25 = vld [vmem:[%s7111_s12 + $0x2] ss:$8 sm:$0x3]  ;;  %v3762_v19 = vld [vmem:[%s7111_s12 + $0x18] ss:$8 sm:$0x3] }
 0x1d4   : > { %v1200_v38 = vadd.f32 %v1199_v37, %v1086_v24  ;;  %1426 = vmatmul.bf16.vlgmr.msrb.gmra.mxu3 %v1215_v36  ;;  %1464 = vmatmul.bf16.vlgmr.msra.gmra.mxu1 %v1215_v36  ;;  %v4589_v36 = vld [vmem:[%s7107_s8 + $0xb4] sm:$0xf]  ;;  %v3855_v37 = vld [vmem:[%s7107_s8 + $0xb8] sm:$0xf0]  ;;  %v1254_v28 = vperm.slane %v3633_v25, 0  ;;  %v1255_v34 = vperm.slane %v3633_v25, 1 }
 0x1d5   : > { %v1183_v39 = vpop.f32.mrf.mxu1  ;;  %1747 = vmatpush.bf16.msrb.mxu1 %v3794_v35 }
 0x1d6   : > { %v1210_v41 = vmax.f32 %v1200_v38, 0.0  ;;  %v1184_v45 = vadd.f32 %v1183_v39, %v1085_v4  ;;  %1727 = vmatpush.bf16.msrb.mxu0 %v3862_v30  ;;  %v3781_v38 = vld [vmem:[%s7107_s8 + $0x20] sm:$0xf]  ;;  %v3858_v39 = vor.u32 %v4589_v36, %v3855_v37 }
 0x1d8   : > { %v1216_v42 = vpack.c.bf16 %v1210_v41, %v1208_v40  ;;  %v1211_v50 = vmax.f32 %v1184_v45, 0.0  ;;  %v4572_v40 = vld [vmem:[%s7107_s8 + $0x24] sm:$0xf0]  ;;  %v3853_v41 = vld [vmem:[%s7107_s8 + $0xb0] sm:$0xf]  ;;  %1766 = vmatpush.bf16.msrb.mxu2 %v3858_v39 }
 0x1d9   : > { %v3782_v45 = vor.u32 %v4572_v40, %v3781_v38 }
 0x1da   : > { %1445 = vmatmul.bf16.vlgmr.msra.gmra.mxu0 %v1216_v42  ;;  %1483 = vmatmul.bf16.vlgmr.msra.gmra.mxu2 %v1216_v42  ;;  %v4590_v42 = vld [vmem:[%s7107_s8 + $0xb4] sm:$0xf0] }
 0x1db   : > { %v1202_v46 = vpop.f32.mrf.mxu2 }
 0x1dc   : > { %v1203_v52 = vadd.f32 %v1202_v46, %v1086_v24  ;;  %v3854_v46 = vor.u32 %v4590_v42, %v3853_v41 }
 0x1dd   : > { %v1185_v47 = vpop.f32.mrf.mxu1 }
 0x1de   : > { %v1186_v51 = vadd.f32 %v1185_v47, %v1085_v4  ;;  %v1212_v56 = vmax.f32 %v1203_v52, 0.0  ;;  %v3806_v4 = vor.u32 %v4578_v2, %v3805_v63  ;;  %v4571_v47 = vld [vmem:[%s7107_s8 + $0x24] sm:$0xf]  ;;  %1728 = vmatpush.bf16.msrb.mxu0 %v3854_v46  ;;  %v4569_v2 = vld [vmem:[%s7107_s8 + $0x14] sm:$0xf] }
 0x1df   : > { %v4587_v52 = vld [vmem:[%s7107_s8 + $0xa4] sm:$0xf] }
 0x1e0   : > { %v1213_v53 = vmax.f32 %v1186_v51, 0.0  ;;  %1707 = vmatpush.bf16.msra.mxu3 %v3806_v4  ;;  %v3778_v4 = vor.u32 %v4569_v2, %v3775_v3 }
 0x1e2   : > { %v1217_v54 = vpack.c.bf16 %v1213_v53, %v1211_v50  ;;  %v3783_v50 = vld [vmem:[%s7107_s8 + $0x28] sm:$0xf0] }
 0x1e3   : > { %v1204_v55 = vpop.f32.mrf.mxu2  ;;  %v3786_v51 = vor.u32 %v4571_v47, %v3783_v50  ;;  %v3847_v53 = vld [vmem:[%s7107_s8 + $0xa8] sm:$0xf0] }
 0x1e4   : > { %v1205_v57 = vadd.f32 %v1204_v55, %v1086_v24  ;;  %1431 = vmatmul.bf16.gmra.mxu3 %v1217_v54  ;;  %1469 = vmatmul.bf16.gmra.mxu1 %v1217_v54  ;;  %v3789_v24 = vld [vmem:[%s7107_s8 + $0x30] sm:$0xf]  ;;  %v3850_v55 = vor.u32 %v4587_v52, %v3847_v53 }
 0x1e5   : > { %1708 = vmatpush.bf16.msra.mxu3 %v3798_v17  ;;  %v3790_v29 = vor.u32 %v4574_v26, %v3789_v24  ;;  %v3773_v54 = vld [vmem:[%s7107_s8 + $0x10] sm:$0xf]  ;;  %1748 = vmatpush.bf16.msrb.mxu1 %v3786_v51  ;;  %v4583_v17 = vld [vmem:[%s7107_s8 + $0x84] sm:$0xf] }
 0x1e6   : > { %v1214_v58 = vmax.f32 %v1205_v57, 0.0  ;;  %v3845_v57 = vld [vmem:[%s7107_s8 + $0xa0] sm:$0xf]  ;;  %1767 = vmatpush.bf16.msrb.mxu2 %v3850_v55  ;;  %v3834_v20 = vor.u32 %v4583_v17, %v3831_v18 }
 0x1e8   : > { %v1218_v59 = vpack.c.bf16 %v1214_v58, %v1212_v56  ;;  %v4570_v56 = vld [vmem:[%s7107_s8 + $0x14] sm:$0xf0]  ;;  %v4588_v58 = vld [vmem:[%s7107_s8 + $0xa4] sm:$0xf0] }
 0x1e9   : > { %1709 = vmatpush.bf16.msra.mxu3 %v3790_v29  ;;  %v3846_v63 = vor.u32 %v4588_v58, %v3845_v57  ;;  %1749 = vmatpush.bf16.msrb.mxu1 %v3778_v4 }
 0x1ea   : > { %1488 = vmatmul.bf16.gmra.mxu2 %v1218_v59  ;;  %1450 = vmatmul.bf16.gmra.mxu0 %v1218_v59  ;;  %v3774_v59 = vor.u32 %v4570_v56, %v3773_v54 }
 0x1eb   : > { %1729 = vmatpush.bf16.msrb.mxu0 %v3846_v63  ;;  %1768 = vmatpush.bf16.msrb.mxu2 %v3842_v8 }
 0x1ed   : > { %1710 = vmatpush.bf16.msra.mxu3 %v3782_v45  ;;  %1750 = vmatpush.bf16.msrb.mxu1 %v3770_v16 }
 0x1ef   : > { %1730 = vmatpush.bf16.msrb.mxu0 %v3838_v13  ;;  %1769 = vmatpush.bf16.msrb.mxu2 %v3834_v20  ;;  %v1541_v20 = vperm.slane %v3762_v19, 0 }
 0x1f1   : > { %1711 = vmatpush.bf16.msra.mxu3 %v3774_v59 }
 0x1f3   : > { %1731 = vmatpush.bf16.msrb.mxu0 %v3830_v22  ;;  %v1542_v22 = vperm.slane %v3762_v19, 1 }
 0x1f5   : > { %1712 = vmatpush.bf16.msra.mxu3 %v3766_v12 }
 0x251   : > { %v1465_v24 = vpop.f32.mrf.mxu1 }
 0x252   : > { %v1466_v39 = vadd.f32 %v1465_v24, %v1255_v34 }
 0x257   : > { %v1427_v26 = vpop.f32.mrf.mxu3  ;;  %v1446_v27 = vpop.f32.mrf.mxu0 }
 0x258   : > { %v1428_v29 = vadd.f32 %v1427_v26, %v1254_v28 }
 0x259   : > { %v1467_v30 = vpop.f32.mrf.mxu1 }
 0x25a   : > { %v1447_v37 = vadd.f32 %v1446_v27, %v1428_v29  ;;  %v1468_v42 = vadd.f32 %v1467_v30, %v1255_v34 }
 0x25c   : > { %v1494_v41 = vmax.f32 %v1447_v37, 0.0 }
 0x25d   : > { %v1484_v31 = vpop.f32.mrf.mxu2 }
 0x25e   : > { %v1485_v45 = vadd.f32 %v1484_v31, %v1466_v39 }
 0x25f   : > { %v1429_v35 = vpop.f32.mrf.mxu3  ;;  %v1448_v36 = vpop.f32.mrf.mxu0 }
 0x260   : > { %v1430_v38 = vadd.f32 %v1429_v35, %v1254_v28  ;;  %v1495_v55 = vmax.f32 %v1485_v45, 0.0 }
 0x261   : > { %v1470_v47 = vpop.f32.mrf.mxu1 }
 0x262   : > { %v1449_v40 = vadd.f32 %v1448_v36, %v1430_v38  ;;  %v1471_v2 = vadd.f32 %v1470_v47, %v1255_v34  ;;  %v801_v47 = vadd.f32 %v5325_v44, %v5335_v49 }
 0x264   : > { %v1496_v46 = vmax.f32 %v1449_v40, 0.0 }
 0x265   : > { %v1486_v50 = vpop.f32.mrf.mxu2 }
 0x266   : > { %v1502_v51 = vpack.c.bf16 %v1496_v46, %v1494_v41  ;;  %v1487_v52 = vadd.f32 %v1486_v50, %v1468_v42  ;;  %v3525_v42 = vld [vmem:[%s7111_s12 + $0x3] ss:$8 sm:$0x3]  ;;  %v782_v46 = vadd.f32 %v5323_v43, %v5333_v48 }
 0x267   : > { %v1432_v53 = vpop.f32.mrf.mxu3  ;;  %v1451_v54 = vpop.f32.mrf.mxu0 }
 0x268   : > { %v1497_v56 = vmax.f32 %v1487_v52, 0.0  ;;  %1713 = vmatmul.bf16.vlgmr.msra.gmra.mxu3 %v1502_v51  ;;  %1751 = vmatmul.bf16.vlgmr.msrb.gmra.mxu1 %v1502_v51  ;;  %v1433_v58 = vadd.f32 %v1432_v53, %v1254_v28  ;;  %v811_v52 = vperm.slane %v3525_v42, 0  ;;  %v812_v53 = vperm.slane %v3525_v42, 1 }
 0x269   : > { %v1472_v3 = vpop.f32.mrf.mxu1 }
 0x26a   : > { %v1503_v57 = vpack.c.bf16 %v1497_v56, %v1495_v55  ;;  %v1452_v63 = vadd.f32 %v1451_v54, %v1433_v58  ;;  %v1473_v10 = vadd.f32 %v1472_v3, %v1255_v34  ;;  %v5766_v58 = vadd.f32 %v812_v53, %v801_v47 }
 0x26c   : > { %1732 = vmatmul.bf16.vlgmr.msrb.gmra.mxu0 %v1503_v57  ;;  %1770 = vmatmul.bf16.vlgmr.msrb.gmra.mxu2 %v1503_v57  ;;  %v1498_v7 = vmax.f32 %v1452_v63, 0.0  ;;  %v5764_v57 = vadd.f32 %v811_v52, %v782_v46 }
 0x26d   : > { %v1489_v59 = vpop.f32.mrf.mxu2 }
 0x26e   : > { %v1490_v8 = vadd.f32 %v1489_v59, %v1471_v2  ;;  %v826_v43 = vadd.f32 %v5766_v58, %v5764_v57 }
 0x26f   : > { %v1434_v4 = vpop.f32.mrf.mxu3  ;;  %v1453_v5 = vpop.f32.mrf.mxu0 }
 0x270   : > { %v1435_v6 = vadd.f32 %v1434_v4, %v1254_v28  ;;  %v1499_v13 = vmax.f32 %v1490_v8, 0.0 }
 0x272   : > { %v1454_v9 = vadd.f32 %v1453_v5, %v1435_v6  ;;  %v5771_v5 = vadd.f32 %v811_v52, %v5349_v60  ;;  %v5774_v6 = vadd.f32 %v812_v53, %v5351_v61  ;;  %v4884_v61 = vmov 256.0  }
 0x273   : > { %4800 = vrcp.f32 %v4884_v61 }
 0x274   : > { %v1500_v11 = vmax.f32 %v1454_v9, 0.0 }
 0x275   : > { %v1491_v12 = vpop.f32.mrf.mxu2 }
 0x276   : > { %v1492_v14 = vadd.f32 %v1491_v12, %v1473_v10  ;;  %v1504_v15 = vpack.c.bf16 %v1500_v11, %v1498_v7  ;;  %v829_v10 = vadd.f32 %v5774_v6, %v5771_v5  ;;  %v5779_v12 = vadd.f32 %v811_v52, %v5301_v32 }
 0x278   : > { %v1501_v16 = vmax.f32 %v1492_v14, 0.0  ;;  %1718 = vmatmul.bf16.gmra.mxu3 %v1504_v15  ;;  %1756 = vmatmul.bf16.gmra.mxu1 %v1504_v15 }
 0x279   : > { %v4801_v14 = vpop.eup %4800 }
 0x27a   : > { %v1505_v17 = vpack.c.bf16 %v1501_v16, %v1499_v13  ;;  %v5782_v13 = vadd.f32 %v812_v53, %v5303_v33  ;;  %v836_v15 = vmul.f32 256.0, %v4801_v14  ;;  %vm840_vm12 = vweird.f32 %v4801_v14 }
 0x27c   : > { %1775 = vmatmul.bf16.gmra.mxu2 %v1505_v17  ;;  %1737 = vmatmul.bf16.gmra.mxu0 %v1505_v17  ;;  %v823_v60 = vadd.f32 %v5782_v13, %v5779_v12  ;;  %v837_v16 = vsub.f32 1.0, %v836_v15  ;;  %v4668_v15 = vld [vmem:[%s7109_s10 + $0xac] sm:$0xf] }
 0x27e   : > { %v838_v17 = vmul.f32 %v4801_v14, %v837_v16  ;;  %v3981_v16 = vld [vmem:[%s7109_s10 + $0xb4] sm:$0xf0] }
 0x2e5   : > { %v1752_v18 = vpop.f32.mrf.mxu1 }
 0x2e6   : > { %v1753_v26 = vadd.f32 %v1752_v18, %v1542_v22  ;;  %v839_v18 = vadd.f32 %v4801_v14, %v838_v17 }
 0x2e8   : > { %v5786_v19 = vsel %vm840_vm12, %v4801_v14, %v839_v18  ;;  %v4693_v14 = vld [vmem:[%s7109_s10 + $0x170] sm:$0xf0]  ;;  %v3984_v18 = vor.u32 %v4668_v15, %v3981_v16  ;;  %v4656_v16 = vld [vmem:[%s7109_s10 + $0x4c] sm:$0xf] }
 0x2e9   : > { %v1733_v21 = vpop.f32.mrf.mxu0  ;;  %v4681_v15 = vld [vmem:[%s7109_s10 + $0x110] sm:$0xf0] }
 0x2ea   : > { %2357 = vmatpush.bf16.msra.mxu1 %v3984_v18 }
 0x2eb   : > { %v1714_v24 = vpop.f32.mrf.mxu3 }
 0x2ec   : > { %v1715_v25 = vadd.f32 %v1714_v24, %v1541_v20 }
 0x2ed   : > { %v1754_v27 = vpop.f32.mrf.mxu1 }
 0x2ee   : > { %v1734_v29 = vadd.f32 %v1733_v21, %v1715_v25  ;;  %v1755_v37 = vadd.f32 %v1754_v27, %v1542_v22  ;;  %v787_v25 = vadd.f32 %v5552_v1, %v5353_v62 }
 0x2ef   : > { %v1771_v28 = vpop.f32.mrf.mxu2 }
 0x2f0   : > { %v1772_v30 = vadd.f32 %v1771_v28, %v1753_v26  ;;  %v806_v26 = vadd.f32 %v5749_v23, %v5550_v0 }
 0x2f1   : > { %v1735_v31 = vpop.f32.mrf.mxu0 }
 0x2f2   : > { %v1781_v34 = vadd.f32 %v1772_v30, %v1734_v29 }
 0x2f3   : > { %v1716_v35 = vpop.f32.mrf.mxu3 }
 0x2f4   : > { %v1717_v36 = vadd.f32 %v1716_v35, %v1541_v20  ;;  %1782 = vadd.xlane.f32.xlu2 %v1781_v34  ;;  %v5806_v34 = vadd.f32 %v811_v52, %v787_v25  ;;  %v5808_v35 = vadd.f32 %v812_v53, %v806_v26  ;;  %v4666_v25 = vld [vmem:[%s7109_s10 + $0x98] sm:$0xf0]  ;;  %v4063_v26 = vld [vmem:[%s7109_s10 + $0x150] sm:$0xf] }
 0x2f5   : > { %v1757_v39 = vpop.f32.mrf.mxu1 }
 0x2f6   : > { %v1736_v40 = vadd.f32 %v1735_v31, %v1717_v36  ;;  %v1758_v55 = vadd.f32 %v1757_v39, %v1542_v22  ;;  %v832_v1 = vadd.f32 %v5808_v35, %v5806_v34 }
 0x2f7   : > { %v1773_v38 = vpop.f32.mrf.mxu2 }
 0x2f8   : > { %v1774_v41 = vadd.f32 %v1773_v38, %v1755_v37 }
 0x2f9   : > { %v1738_v45 = vpop.f32.mrf.mxu0 }
 0x2fa   : > { %v1784_v50 = vadd.f32 %v1774_v41, %v1736_v40 }
 0x2fb   : > { %v1719_v51 = vpop.f32.mrf.mxu3 }
 0x2fc   : > { %1785 = vadd.xlane.f32.xlu0 %v1784_v50  ;;  %v1720_v54 = vadd.f32 %v1719_v51, %v1541_v20 }
 0x2fd   : > { %v1759_v2 = vpop.f32.mrf.mxu1 }
 0x2fe   : > { %v1739_v56 = vadd.f32 %v1738_v45, %v1720_v54  ;;  %v1760_v4 = vadd.f32 %v1759_v2, %v1542_v22 }
 0x2ff   : > { %v1776_v59 = vpop.f32.mrf.mxu2 }
 0x300   : > { %v1777_v63 = vadd.f32 %v1776_v59, %v1758_v55 }
 0x301   : > { %v1740_v48 = vpop.f32.mrf.mxu0 }
 0x302   : > { %v1787_v3 = vadd.f32 %v1777_v63, %v1739_v56 }
 0x303   : > { %v1721_v44 = vpop.f32.mrf.mxu3 }
 0x304   : > { %1788 = vadd.xlane.f32.xlu1 %v1787_v3  ;;  %827 = vadd.xlane.f32.xlu0 %v826_v43  ;;  %v1722_v49 = vadd.f32 %v1721_v44, %v1541_v20 }
 0x306   : > { %v1741_v7 = vadd.f32 %v1740_v48, %v1722_v49 }
 0x307   : > { %v1778_v8 = vpop.f32.mrf.mxu2 }
 0x308   : > { %v1779_v9 = vadd.f32 %v1778_v8, %v1760_v4 }
 0x30a   : > { %v1790_v11 = vadd.f32 %v1779_v9, %v1741_v7 }
 0x30c   : > { %830 = vadd.xlane.f32.xlu0 %v829_v10  ;;  %1791 = vadd.xlane.f32.xlu2 %v1790_v11 }
 0x314   : > { %824 = vadd.xlane.f32.xlu2 %v823_v60  ;;  %v4075_v60 = vld [vmem:[%s7109_s10 + $0x168] sm:$0xf] }
 0x315   : > { %v4076_v17 = vor.u32 %v4693_v14, %v4075_v60  ;;  %v4657_v60 = vld [vmem:[%s7109_s10 + $0x50] sm:$0xf0] }
 0x317   : > { %2338 = vmatpush.bf16.msra.mxu0 %v4076_v17  ;;  %v3933_v17 = vld [vmem:[%s7109_s10 + $0x54] sm:$0xf0] }
 0x367   : > { %v1783_v20 = vpop.xlane.xlu2 %1782 }
 0x368   : > { %v1793_v32 = vmul.f32 %v1783_v20, %v5786_v19  ;;  %v4692_v20 = vld [vmem:[%s7109_s10 + $0x16c] sm:$0xf] }
 0x36a   : > { %v5789_v21 = vsub.f32 %v1734_v29, %v1793_v32  ;;  %v5791_v33 = vsub.f32 %v1772_v30, %v1793_v32  ;;  %v4077_v32 = vld [vmem:[%s7109_s10 + $0x174] sm:$0xf0] }
 0x36c   : > { %v1805_v22 = vmul.f32 %v5789_v21, %v5789_v21  ;;  %v1806_v24 = vmul.f32 %v5791_v33, %v5791_v33 }
 0x36e   : > { %v1813_v27 = vadd.f32 %v1806_v24, %v1805_v22  ;;  %v4080_v22 = vor.u32 %v4692_v20, %v4077_v32  ;;  %v3967_v24 = vld [vmem:[%s7109_s10 + $0x90] sm:$0xf]  ;;  %v3936_v20 = vor.u32 %v4656_v16, %v3933_v17  ;;  %v4680_v32 = vld [vmem:[%s7109_s10 + $0x10c] sm:$0xf] }
 0x36f   : > { %v1786_v28 = vpop.xlane.xlu0 %1785 }
 0x370   : > { %v1794_v31 = vmul.f32 %v1786_v28, %v5786_v19  ;;  %1814 = vadd.xlane.f32.xlu1 %v1813_v27  ;;  %2376 = vmatpush.bf16.msra.mxu2 %v4080_v22  ;;  %v3968_v27 = vor.u32 %v4666_v25, %v3967_v24  ;;  %v4690_v28 = vld [vmem:[%s7109_s10 + $0x158] sm:$0xf0]  ;;  %v4029_v22 = vld [vmem:[%s7109_s10 + $0x114] sm:$0xf0]  ;;  %v3919_v25 = vld [vmem:[%s7109_s10 + $0x30] sm:$0xf] }
 0x371   : > { %v4032_v24 = vor.u32 %v4680_v32, %v4029_v22  ;;  %v4670_v32 = vld [vmem:[%s7109_s10 + $0xb8] sm:$0xf0]  ;;  %v4083_v22 = vld [vmem:[%s7109_s10 + $0x170] sm:$0xf] }
 0x372   : > { %v5802_v29 = vsub.f32 %v1736_v40, %v1794_v31  ;;  %v5804_v30 = vsub.f32 %v1774_v41, %v1794_v31  ;;  %v4665_v31 = vld [vmem:[%s7109_s10 + $0x94] sm:$0xf] }
 0x374   : > { %v1807_v36 = vmul.f32 %v5802_v29, %v5802_v29  ;;  %v1808_v62 = vmul.f32 %v5804_v30, %v5804_v30 }
 0x376   : > { %v1816_v0 = vadd.f32 %v1808_v62, %v1807_v36  ;;  %v3969_v36 = vld [vmem:[%s7109_s10 + $0x9c] sm:$0xf0]  ;;  %v4064_v62 = vor.u32 %v4690_v28, %v4063_v26  ;;  %v4654_v26 = vld [vmem:[%s7109_s10 + $0x38] sm:$0xf0] }
 0x377   : > { %v1789_v23 = vpop.xlane.xlu1 %1788  ;;  %v828_v37 = vpop.xlane.xlu0 %827  ;;  %v3920_v28 = vor.u32 %v4654_v26, %v3919_v25 }
 0x378   : > { %v1795_v38 = vmul.f32 %v1789_v23, %v5786_v19  ;;  %1817 = vadd.xlane.f32.xlu2 %v1816_v0  ;;  %833 = vadd.xlane.f32.xlu1 %v832_v1  ;;  %v843_v39 = vmul.f32 %v5786_v19, %v828_v37  ;;  %v3972_v0 = vor.u32 %v4665_v31, %v3969_v36  ;;  %v4689_v1 = vld [vmem:[%s7109_s10 + $0x154] sm:$0xf]  ;;  %v4065_v23 = vld [vmem:[%s7109_s10 + $0x15c] sm:$0xf0]  ;;  %v4678_v31 = vld [vmem:[%s7109_s10 + $0xf8] sm:$0xf0] }
 0x379   : > { %v4068_v37 = vor.u32 %v4689_v1, %v4065_v23  ;;  %2339 = vmatpush.bf16.msra.mxu0 %v4064_v62  ;;  %v4653_v36 = vld [vmem:[%s7109_s10 + $0x34] sm:$0xf]  ;;  %v3921_v62 = vld [vmem:[%s7109_s10 + $0x3c] sm:$0xf0] }
 0x37a   : > { %v5818_v40 = vsub.f32 %v1739_v56, %v1795_v38  ;;  %v5820_v41 = vsub.f32 %v1777_v63, %v1795_v38  ;;  %v5827_v46 = vsub.f32 %v5764_v57, %v843_v39  ;;  %v5830_v47 = vsub.f32 %v5766_v58, %v843_v39  ;;  %2358 = vmatpush.bf16.msra.mxu1 %v3972_v0  ;;  %v3955_v38 = vld [vmem:[%s7109_s10 + $0x78] sm:$0xf]  ;;  %v4663_v39 = vld [vmem:[%s7109_s10 + $0x80] sm:$0xf0]  ;;  %v4677_v23 = vld [vmem:[%s7109_s10 + $0xf4] sm:$0xf] }
 0x37b   : > { %2377 = vmatpush.bf16.msra.mxu2 %v4068_v37  ;;  %v3924_v1 = vor.u32 %v4653_v36, %v3921_v62  ;;  %v4017_v37 = vld [vmem:[%s7109_s10 + $0xfc] sm:$0xf0]  ;;  %v4171_v36 = vld [vmem:[%s7108_s9 + $0xa8] sm:$0xf] }
 0x37c   : > { %v1809_v42 = vmul.f32 %v5818_v40, %v5818_v40  ;;  %v1810_v45 = vmul.f32 %v5820_v41, %v5820_v41  ;;  %v856_v54 = vmul.f32 %v5827_v46, %v5827_v46  ;;  %v857_v57 = vmul.f32 %v5830_v47, %v5830_v47 }
 0x37e   : > { %v1819_v50 = vadd.f32 %v1810_v45, %v1809_v42  ;;  %v865_v43 = vadd.f32 %v857_v57, %v856_v54  ;;  %v4051_v42 = vld [vmem:[%s7109_s10 + $0x138] sm:$0xf]  ;;  %v3956_v45 = vor.u32 %v4663_v39, %v3955_v38  ;;  %v4053_v57 = vld [vmem:[%s7109_s10 + $0x144] sm:$0xf0]  ;;  %v4020_v38 = vor.u32 %v4677_v23, %v4017_v37 }
 0x37f   : > { %v831_v51 = vpop.xlane.xlu0 %830  ;;  %v1792_v52 = vpop.xlane.xlu2 %1791 }
 0x380   : > { %v1796_v53 = vmul.f32 %v1792_v52, %v5786_v19  ;;  %1820 = vadd.xlane.f32.xlu2 %v1819_v50  ;;  %v844_v55 = vmul.f32 %v5786_v19, %v831_v51  ;;  %v4687_v50 = vld [vmem:[%s7109_s10 + $0x140] sm:$0xf0]  ;;  %v4662_v51 = vld [vmem:[%s7109_s10 + $0x7c] sm:$0xf]  ;;  %v3957_v52 = vld [vmem:[%s7109_s10 + $0x84] sm:$0xf0] }
 0x381   : > { %v3960_v54 = vor.u32 %v4662_v51, %v3957_v52 }
 0x382   : > { %v5836_v56 = vsub.f32 %v1741_v7, %v1796_v53  ;;  %v5838_v59 = vsub.f32 %v1779_v9, %v1796_v53  ;;  %v5847_v2 = vsub.f32 %v5771_v5, %v844_v55  ;;  %v5850_v3 = vsub.f32 %v5774_v6, %v844_v55  ;;  %v4686_v55 = vld [vmem:[%s7109_s10 + $0x13c] sm:$0xf] }
 0x383   : > { %v4052_v53 = vor.u32 %v4687_v50, %v4051_v42  ;;  %2359 = vmatpush.bf16.msra.mxu1 %v3960_v54  ;;  %v3907_v42 = vld [vmem:[%s7109_s10 + $0x18] sm:$0xf]  ;;  %v4650_v54 = vld [vmem:[%s7109_s10 + $0x1c] sm:$0xf] }
 0x384   : > { %v1811_v58 = vmul.f32 %v5836_v56, %v5836_v56  ;;  %v1812_v63 = vmul.f32 %v5838_v59, %v5838_v59  ;;  %v858_v5 = vmul.f32 %v5847_v2, %v5847_v2  ;;  %v859_v6 = vmul.f32 %v5850_v3, %v5850_v3  ;;  %v4003_v50 = vld [vmem:[%s7109_s10 + $0xd8] sm:$0xf] }
 0x385   : > { %2340 = vmatpush.bf16.msra.mxu0 %v4052_v53  ;;  %v4675_v53 = vld [vmem:[%s7109_s10 + $0xe0] sm:$0xf0] }
 0x386   : > { %v1822_v44 = vadd.f32 %v1812_v63, %v1811_v58  ;;  %v868_v10 = vadd.f32 %v859_v6, %v858_v5  ;;  %v4056_v58 = vor.u32 %v4686_v55, %v4053_v57  ;;  %v3943_v63 = vld [vmem:[%s7109_s10 + $0x60] sm:$0xf]  ;;  %v4659_v5 = vld [vmem:[%s7109_s10 + $0x64] sm:$0xf]  ;;  %v3945_v6 = vld [vmem:[%s7109_s10 + $0x6c] sm:$0xf0]  ;;  %v4004_v57 = vor.u32 %v4675_v53, %v4003_v50 }
 0x387   : > { %v825_v48 = vpop.xlane.xlu2 %824  ;;  %v3909_v55 = vld [vmem:[%s7109_s10 + $0x24] sm:$0xf0]  ;;  %v3891_v53 = vld [vmem:[%s7111_s12 + $0x6] ss:$8 sm:$0x3] }
 0x388   : > { %v842_v49 = vmul.f32 %v5786_v19, %v825_v48  ;;  %866 = vadd.xlane.f32.xlu2 %v865_v43  ;;  %1823 = vadd.xlane.f32.xlu0 %v1822_v44  ;;  %v4660_v43 = vld [vmem:[%s7109_s10 + $0x68] sm:$0xf0]  ;;  %v4039_v44 = vld [vmem:[%s7109_s10 + $0x120] sm:$0xf] }
 0x389   : > { %2378 = vmatpush.bf16.msra.mxu2 %v4056_v58  ;;  %v3944_v48 = vor.u32 %v4660_v43, %v3943_v63  ;;  %v3912_v58 = vor.u32 %v4650_v54, %v3909_v55  ;;  %v4674_v63 = vld [vmem:[%s7109_s10 + $0xdc] sm:$0xf]  ;;  %v4005_v43 = vld [vmem:[%s7109_s10 + $0xe4] sm:$0xf0] }
 0x38a   : > { %v5854_v4 = vsub.f32 %v5779_v12, %v842_v49  ;;  %v5857_v7 = vsub.f32 %v5782_v13, %v842_v49  ;;  %v3979_v12 = vld [vmem:[%s7109_s10 + $0xa8] sm:$0xf]  ;;  %v4669_v13 = vld [vmem:[%s7109_s10 + $0xb0] sm:$0xf0]  ;;  %v4684_v49 = vld [vmem:[%s7109_s10 + $0x128] sm:$0xf0] }
 0x38b   : > { %v3980_v61 = vor.u32 %v4669_v13, %v3979_v12  ;;  %v3931_v13 = vld [vmem:[%s7109_s10 + $0x48] sm:$0xf] }
 0x38c   : > { %v854_v8 = vmul.f32 %v5854_v4, %v5854_v4  ;;  %v855_v9 = vmul.f32 %v5857_v7, %v5857_v7  ;;  %v3932_v14 = vor.u32 %v4657_v60, %v3931_v13  ;;  %v4671_v60 = vld [vmem:[%s7109_s10 + $0xc4] sm:$0xf] }
 0x38d   : > { %2319 = vmatpush.bf16.msrb.mxu3 %v3980_v61  ;;  %v4027_v61 = vld [vmem:[%s7109_s10 + $0x108] sm:$0xf] }
 0x38e   : > { %v862_v11 = vadd.f32 %v855_v9, %v854_v8  ;;  %v4040_v8 = vor.u32 %v4684_v49, %v4039_v44  ;;  %v3948_v9 = vor.u32 %v4659_v5, %v3945_v6  ;;  %v4028_v18 = vor.u32 %v4681_v15, %v4027_v61  ;;  %v3895_v49 = vld [vmem:[%s7109_s10] sm:$0xf]  ;;  %v4648_v5 = vld [vmem:[%s7109_s10 + $0x8] sm:$0xf0]  ;;  %v3993_v61 = vld [vmem:[%s7109_s10 + $0xcc] sm:$0xf0] }
 0x38f   : > { %v3991_v6 = vld [vmem:[%s7109_s10 + $0xc0] sm:$0xf] }
 0x390   : > { %869 = vadd.xlane.f32.xlu0 %v868_v10  ;;  %863 = vadd.xlane.f32.xlu1 %v862_v11  ;;  %v4683_v10 = vld [vmem:[%s7109_s10 + $0x124] sm:$0xf]  ;;  %v4041_v11 = vld [vmem:[%s7109_s10 + $0x12c] sm:$0xf0] }
 0x391   : > { %2320 = vmatpush.bf16.msrb.mxu3 %v3968_v27  ;;  %v4044_v12 = vor.u32 %v4683_v10, %v4041_v11  ;;  %2341 = vmatpush.bf16.msra.mxu0 %v4040_v8  ;;  %v4015_v27 = vld [vmem:[%s7109_s10 + $0xf0] sm:$0xf]  ;;  %v3896_v8 = vor.u32 %v4648_v5, %v3895_v49  ;;  %v4647_v10 = vld [vmem:[%s7109_s10 + $0x4] sm:$0xf]  ;;  %v4618_v49 = vld [vmem:[%s7108_s9 + $0x98] sm:$0xf0] }
 0x392   : > { %2360 = vmatpush.bf16.msra.mxu1 %v3948_v9  ;;  %v4016_v0 = vor.u32 %v4678_v31, %v4015_v27  ;;  %v4672_v9 = vld [vmem:[%s7109_s10 + $0xc8] sm:$0xf0]  ;;  %v3897_v11 = vld [vmem:[%s7109_s10 + $0xc] sm:$0xf0]  ;;  %v4694_v31 = vld [vmem:[%s7109_s10 + $0x178] sm:$0xf0] }
 0x393   : > { %2379 = vmatpush.bf16.msra.mxu2 %v4044_v12  ;;  %v3992_v12 = vor.u32 %v4672_v9, %v3991_v6  ;;  %v3900_v13 = vor.u32 %v4647_v10, %v3897_v11  ;;  %v4255_v5 = vld [vmem:[%s7108_s9 + $0x150] sm:$0xf]  ;;  %v4642_v6 = vld [vmem:[%s7108_s9 + $0x158] sm:$0xf0]  ;;  %v3963_v11 = vld [vmem:[%s7109_s10 + $0x80] sm:$0xf] }
 0x394   : > { %v4256_v10 = vor.u32 %v4642_v6, %v4255_v5  ;;  %v3939_v6 = vld [vmem:[%s7109_s10 + $0x50] sm:$0xf] }
 0x395   : > { %2321 = vmatpush.bf16.msrb.mxu3 %v3956_v45  ;;  %2342 = vmatpush.bf16.msra.mxu0 %v4028_v18  ;;  %v4651_v45 = vld [vmem:[%s7109_s10 + $0x20] sm:$0xf0] }
 0x396   : > { %2361 = vmatpush.bf16.msra.mxu1 %v3936_v20  ;;  %v3908_v52 = vor.u32 %v4651_v45, %v3907_v42  ;;  %v3987_v20 = vld [vmem:[%s7109_s10 + $0xb0] sm:$0xf]  ;;  %v3975_v45 = vld [vmem:[%s7109_s10 + $0x98] sm:$0xf] }
 0x397   : > { %2380 = vmatpush.bf16.msra.mxu2 %v4032_v24 }
 0x399   : > { %2322 = vmatpush.bf16.msrb.mxu3 %v3944_v48  ;;  %2343 = vmatpush.bf16.msra.mxu0 %v4016_v0  ;;  %v4008_v48 = vor.u32 %v4674_v63, %v4005_v43  ;;  %v4084_v0 = vor.u32 %v4694_v31, %v4083_v22  ;;  %v4159_v63 = vld [vmem:[%s7108_s9 + $0x90] sm:$0xf]  ;;  %v4243_v22 = vld [vmem:[%s7108_s9 + $0x138] sm:$0xf] }
 0x39a   : > { %2362 = vmatpush.bf16.msra.mxu1 %v3924_v1  ;;  %v4645_v1 = vld [vmem:[%s7108_s9 + $0x170] sm:$0xf0]  ;;  %v4160_v9 = vor.u32 %v4618_v49, %v4159_v63 }
 0x39b   : > { %2381 = vmatpush.bf16.msra.mxu2 %v4020_v38 }
 0x39d   : > { %2323 = vmatpush.bf16.msrb.mxu3 %v3932_v14  ;;  %2344 = vmatpush.bf16.msra.mxu0 %v4004_v57  ;;  %v3996_v14 = vor.u32 %v4671_v60, %v3993_v61 }
 0x39e   : > { %2363 = vmatpush.bf16.msra.mxu1 %v3912_v58  ;;  %v4691_v58 = vld [vmem:[%s7109_s10 + $0x160] sm:$0xf0] }
 0x39f   : > { %2382 = vmatpush.bf16.msra.mxu2 %v4008_v48 }
 0x3a1   : > { %2324 = vmatpush.bf16.msrb.mxu3 %v3920_v28  ;;  %2345 = vmatpush.bf16.msra.mxu0 %v3992_v12  ;;  %v3988_v28 = vor.u32 %v4670_v32, %v3987_v20  ;;  %v4664_v12 = vld [vmem:[%s7109_s10 + $0x88] sm:$0xf0]  ;;  %v4147_v20 = vld [vmem:[%s7108_s9 + $0x78] sm:$0xf]  ;;  %v4615_v32 = vld [vmem:[%s7108_s9 + $0x80] sm:$0xf0] }
 0x3a2   : > { %2364 = vmatpush.bf16.msra.mxu1 %v3900_v13  ;;  %v3964_v61 = vor.u32 %v4664_v12, %v3963_v11  ;;  %v4148_v31 = vor.u32 %v4615_v32, %v4147_v20  ;;  %v4633_v20 = vld [vmem:[%s7108_s9 + $0x110] sm:$0xf0] }
 0x3a3   : > { %2383 = vmatpush.bf16.msra.mxu2 %v3996_v14  ;;  %v4059_v14 = vld [vmem:[%s7109_s10 + $0x140] sm:$0xf] }
 0x3a5   : > { %2325 = vmatpush.bf16.msrb.mxu3 %v3908_v52  ;;  %2414 = vmatpush.bf16.msrb.mxu0 %v4084_v0  ;;  %v4071_v52 = vld [vmem:[%s7109_s10 + $0x158] sm:$0xf] }
 0x3a6   : > { %v4072_v48 = vor.u32 %v4691_v58, %v4071_v52 }
 0x3a9   : > { %2326 = vmatpush.bf16.msrb.mxu3 %v3896_v8  ;;  %2415 = vmatpush.bf16.msrb.mxu0 %v4072_v48 }
 0x3ad   : > { %2395 = vmatpush.bf16.msra.mxu3 %v3988_v28  ;;  %v6165_v28 = vperm.slane %v3891_v53, 0 }
 0x3e3   : > { %v1815_v39 = vpop.xlane.xlu1 %1814 }
 0x3e4   : > { %v1825_v51 = vmul.f32 %v1815_v39, %v5786_v19 }
 0x3e6   : > { %v6036_v44 = vadd.f32 1e-05, %v1825_v51  ;;  %v4667_v51 = vld [vmem:[%s7109_s10 + $0xa0] sm:$0xf0] }
 0x3e7   : > { %v3976_v57 = vor.u32 %v4667_v51, %v3975_v45 }
 0x3e8   : > { %4802 = vrsqrt.f32 %v6036_v44  ;;  %vm1839_vm14 = vweird.f32 %v6036_v44 }
 0x3e9   : > { %2396 = vmatpush.bf16.msra.mxu3 %v3976_v57  ;;  %v4636_v57 = vld [vmem:[%s7108_s9 + $0x128] sm:$0xf0] }
 0x3eb   : > { %v834_v15 = vpop.xlane.xlu1 %833  ;;  %v1818_v16 = vpop.xlane.xlu2 %1817 }
 0x3ec   : > { %v845_v17 = vmul.f32 %v5786_v19, %v834_v15  ;;  %v1826_v18 = vmul.f32 %v1818_v16, %v5786_v19  ;;  %v4688_v15 = vld [vmem:[%s7109_s10 + $0x148] sm:$0xf0] }
 0x3ed   : > { %2397 = vmatpush.bf16.msra.mxu3 %v3964_v61 }
 0x3ee   : > { %v6074_v24 = vpop.eup %4802  ;;  %v6077_v25 = vsub.f32 %v5806_v34, %v845_v17  ;;  %v6080_v26 = vsub.f32 %v5808_v35, %v845_v17  ;;  %v6082_v27 = vadd.f32 1e-05, %v1826_v18  ;;  %v4621_v34 = vld [vmem:[%s7108_s9 + $0xb0] sm:$0xf0]  ;;  %v4267_v35 = vld [vmem:[%s7108_s9 + $0x168] sm:$0xf]  ;;  %v4060_v18 = vor.u32 %v4688_v15, %v4059_v14 }
 0x3ef   : > { %v1834_v62 = vmul.f32 %v6074_v24, %v6036_v44  ;;  %v4172_v39 = vor.u32 %v4621_v34, %v4171_v36  ;;  %v4268_v42 = vor.u32 %v4645_v1, %v4267_v35  ;;  %vm1840_vm13 = vweird.f32 %v6074_v24  ;;  %v3892_v44 = vld [vmem:[%s7111_s12 + $0x7] ss:$8 sm:$0x3]  ;;  %v3951_v35 = vld [vmem:[%s7109_s10 + $0x68] sm:$0xf] }
 0x3f0   : > { %4804 = vrsqrt.f32 %v6082_v27  ;;  %v860_v23 = vmul.f32 %v6077_v25, %v6077_v25  ;;  %v861_v37 = vmul.f32 %v6080_v26, %v6080_v26  ;;  %vm1841_vm15 = vmor %vm1839_vm14, %vm1840_vm13  ;;  %v4639_v36 = vld [vmem:[%s7108_s9 + $0x140] sm:$0xf0]  ;;  %v4661_v1 = vld [vmem:[%s7109_s10 + $0x70] sm:$0xf0]  ;;  %2416 = vmatpush.bf16.msrb.mxu0 %v4060_v18  ;;  %vm1849_vm1 = vweird.f32 %v6082_v27 }
 0x3f1   : > { %v1835_v38 = vmul.f32 %v6074_v24, %v1834_v62  ;;  %2689 = vmatpush.bf16.msrb.mxu1 %v4172_v39  ;;  %2708 = vmatpush.bf16.msrb.mxu2 %v4268_v42  ;;  %v4244_v34 = vor.u32 %v4639_v36, %v4243_v22  ;;  %v4612_v39 = vld [vmem:[%s7108_s9 + $0x68] sm:$0xf0]  ;;  %v6196_v42 = vperm.slane %v3891_v53, 1  ;;  %v4682_v14 = vld [vmem:[%s7109_s10 + $0x118] sm:$0xf0] }
 0x3f2   : > { %v871_v50 = vadd.f32 %v861_v37, %v860_v23  ;;  %v4047_v23 = vld [vmem:[%s7109_s10 + $0x128] sm:$0xf]  ;;  %v3952_v37 = vor.u32 %v4661_v1, %v3951_v35  ;;  %v4655_v36 = vld [vmem:[%s7109_s10 + $0x40] sm:$0xf0] }
 0x3f3   : > { %v1836_v54 = vmul.f32 0.5, %v1835_v38  ;;  %v1821_v55 = vpop.xlane.xlu2 %1820  ;;  %v4135_v38 = vld [vmem:[%s7108_s9 + $0x60] sm:$0xf]  ;;  %v4123_v15 = vld [vmem:[%s7108_s9 + $0x48] sm:$0xf] }
 0x3f4   : > { %v1827_v43 = vmul.f32 %v1821_v55, %v5786_v19  ;;  %872 = vadd.xlane.f32.xlu1 %v871_v50  ;;  %v4231_v55 = vld [vmem:[%s7108_s9 + $0x120] sm:$0xf]  ;;  %2398 = vmatpush.bf16.msra.mxu3 %v3952_v37  ;;  %v4219_v18 = vld [vmem:[%s7108_s9 + $0x108] sm:$0xf]  ;;  %v4679_v1 = vld [vmem:[%s7109_s10 + $0x100] sm:$0xf0] }
 0x3f5   : > { %v1837_v8 = vsub.f32 1.5, %v1836_v54  ;;  %2690 = vmatpush.bf16.msrb.mxu1 %v4160_v9  ;;  %2709 = vmatpush.bf16.msrb.mxu2 %v4256_v10  ;;  %v4136_v54 = vor.u32 %v4612_v39, %v4135_v38  ;;  %v4232_v5 = vor.u32 %v4636_v57, %v4231_v55  ;;  %v4606_v38 = vld [vmem:[%s7108_s9 + $0x38] sm:$0xf0]  ;;  %v4207_v39 = vld [vmem:[%s7108_s9 + $0xf0] sm:$0xf] }
 0x3f6   : > { %v6142_v13 = vpop.eup %4804  ;;  %v6144_v60 = vadd.f32 1e-05, %v1827_v43  ;;  %v6207_v43 = vperm.slane %v3892_v44, 0  ;;  %v3915_v55 = vld [vmem:[%s7109_s10 + $0x20] sm:$0xf] }
 0x3f7   : > { %v1838_v16 = vmul.f32 %v6074_v24, %v1837_v8  ;;  %v1844_v17 = vmul.f32 %v6142_v13, %v6082_v27  ;;  %vm1850_vm0 = vweird.f32 %v6142_v13  ;;  %v4652_v57 = vld [vmem:[%s7109_s10 + $0x28] sm:$0xf0] }
 0x3f8   : > { %4806 = vrsqrt.f32 %v6144_v60  ;;  %vm1851_vm2 = vmor %vm1849_vm1, %vm1850_vm0  ;;  %vm1859_vm3 = vweird.f32 %v6144_v60 }
 0x3f9   : > { %v1842_v62 = vsel %vm1841_vm15, %v6074_v24, %v1838_v16  ;;  %v1845_v0 = vmul.f32 %v6142_v13, %v1844_v17  ;;  %v4685_v24 = vld [vmem:[%s7109_s10 + $0x130] sm:$0xf0]  ;;  %2691 = vmatpush.bf16.msrb.mxu1 %v4148_v31  ;;  %2710 = vmatpush.bf16.msrb.mxu2 %v4244_v34  ;;  %v6244_v17 = vperm.slane %v3892_v44, 1  ;;  %v3927_v44 = vld [vmem:[%s7109_s10 + $0x38] sm:$0xf] }
 0x3fa   : > { %v4048_v52 = vor.u32 %v4685_v24, %v4047_v23  ;;  %v1873_v58 = vmul.f32 %v1842_v62, %v5789_v21  ;;  %v1874_v48 = vmul.f32 %v1842_v62, %v5791_v33  ;;  %v4658_v21 = vld [vmem:[%s7109_s10 + $0x58] sm:$0xf0]  ;;  %v4035_v33 = vld [vmem:[%s7109_s10 + $0x110] sm:$0xf]  ;;  %v4609_v16 = vld [vmem:[%s7108_s9 + $0x50] sm:$0xf0]  ;;  %v4220_v24 = vor.u32 %v4633_v20, %v4219_v18 }
 0x3fb   : > { %v1846_v45 = vmul.f32 0.5, %v1845_v0  ;;  %v1824_v50 = vpop.xlane.xlu0 %1823  ;;  %v867_v51 = vpop.xlane.xlu2 %866  ;;  %v3940_v61 = vor.u32 %v4658_v21, %v3939_v6  ;;  %v4036_v34 = vor.u32 %v4682_v14, %v4035_v33  ;;  %v4124_v35 = vor.u32 %v4609_v16, %v4123_v15  ;;  %v4111_v23 = vld [vmem:[%s7108_s9 + $0x30] sm:$0xf] }
 0x3fc   : > { %v1828_v53 = vmul.f32 %v1824_v50, %v5786_v19  ;;  %v875_v63 = vmul.f32 %v867_v51, %v5786_v19  ;;  %2417 = vmatpush.bf16.msrb.mxu0 %v4048_v52  ;;  %v1888_v27 = vmul.f32 %v6165_v28, %v1873_v58  ;;  %v1889_v32 = vmul.f32 %v6196_v42, %v1874_v48 }
 0x3fd   : > { %v1847_v49 = vsub.f32 1.5, %v1846_v45  ;;  %2692 = vmatpush.bf16.msrb.mxu1 %v4136_v54  ;;  %2711 = vmatpush.bf16.msrb.mxu2 %v4232_v5  ;;  %v4630_v54 = vld [vmem:[%s7108_s9 + $0xf8] sm:$0xf0]  ;;  %v4676_v5 = vld [vmem:[%s7109_s10 + $0xe8] sm:$0xf0] }
 0x3fe   : > { %v6217_v8 = vpop.eup %4806  ;;  %v6219_v9 = vadd.f32 1e-05, %v1828_v53  ;;  %v6221_v10 = vadd.f32 1e-05, %v875_v63  ;;  %2399 = vmatpush.bf16.msra.mxu3 %v3940_v61  ;;  %v1903_v53 = vadd.f32 %v6207_v43, %v1888_v27  ;;  %v4112_v63 = vor.u32 %v4606_v38, %v4111_v23  ;;  %v4099_v27 = vld [vmem:[%s7108_s9 + $0x18] sm:$0xf] }
 0x3ff   : > { %v1848_v11 = vmul.f32 %v6142_v13, %v1847_v49  ;;  %v1854_v12 = vmul.f32 %v6217_v8, %v6144_v60  ;;  %vm1860_vm4 = vweird.f32 %v6217_v8  ;;  %v4208_v48 = vor.u32 %v4630_v54, %v4207_v39  ;;  %v4011_v49 = vld [vmem:[%s7109_s10 + $0xe0] sm:$0xf]  ;;  %v4195_v60 = vld [vmem:[%s7108_s9 + $0xd8] sm:$0xf]  ;;  %v4673_v23 = vld [vmem:[%s7109_s10 + $0xd0] sm:$0xf0] }
 0x400   : > { %4808 = vrsqrt.f32 %v6219_v9  ;;  %2418 = vmatpush.bf16.msrb.mxu0 %v4036_v34  ;;  %vm1861_vm5 = vmor %vm1859_vm3, %vm1860_vm4  ;;  %v4012_v20 = vor.u32 %v4676_v5, %v4011_v49  ;;  %v4600_v38 = vld [vmem:[%s7108_s9 + $0x8] sm:$0xf0]  ;;  %vm1869_vm7 = vweird.f32 %v6219_v9  ;;  %vm898_vm12 = vweird.f32 %v6221_v10 }
 0x401   : > { %v1852_v22 = vsel %vm1851_vm2, %v6142_v13, %v1848_v11  ;;  %v1855_v31 = vmul.f32 %v6217_v8, %v1854_v12  ;;  %4810 = vrsqrt.f32 %v6221_v10  ;;  %v4023_v13 = vld [vmem:[%s7109_s10 + $0xf8] sm:$0xf]  ;;  %2693 = vmatpush.bf16.msrb.mxu1 %v4124_v35  ;;  %2712 = vmatpush.bf16.msrb.mxu2 %v4220_v24  ;;  %v1904_v11 = vadd.f32 %v6244_v17, %v1889_v32  ;;  %v4603_v32 = vld [vmem:[%s7108_s9 + $0x20] sm:$0xf0] }
 0x402   : > { %v1875_v62 = vmul.f32 %v1852_v22, %v5802_v29  ;;  %v1876_v0 = vmul.f32 %v1852_v22, %v5804_v30  ;;  %v3928_v30 = vor.u32 %v4655_v36, %v3927_v44  ;;  %v4024_v52 = vor.u32 %v4679_v1, %v4023_v13  ;;  %v4627_v22 = vld [vmem:[%s7108_s9 + $0xe0] sm:$0xf0]  ;;  %v3999_v1 = vld [vmem:[%s7109_s10 + $0xc8] sm:$0xf] }
 0x403   : > { %v1856_v37 = vmul.f32 0.5, %v1855_v31  ;;  %v864_v29 = vpop.xlane.xlu1 %863  ;;  %v3916_v12 = vor.u32 %v4652_v57, %v3915_v55  ;;  %v1987_v36 = vmax.f32 %v1903_v53, 0.0  ;;  %v1988_v13 = vmax.f32 %v1904_v11, 0.0  ;;  %v4173_v53 = vld [vmem:[%s7108_s9 + $0xb4] sm:$0xf0] }
 0x404   : > { %v1890_v45 = vmul.f32 %v6165_v28, %v1875_v62  ;;  %v1891_v50 = vmul.f32 %v6196_v42, %v1876_v0  ;;  %v874_v51 = vmul.f32 %v864_v29, %v5786_v19  ;;  %2400 = vmatpush.bf16.msra.mxu3 %v3928_v30  ;;  %2419 = vmatpush.bf16.msrb.mxu0 %v4024_v52  ;;  %v3903_v62 = vld [vmem:[%s7109_s10 + $0x8] sm:$0xf]  ;;  %v4649_v0 = vld [vmem:[%s7109_s10 + $0x10] sm:$0xf0]  ;;  %v4644_v11 = vld [vmem:[%s7108_s9 + $0x16c] sm:$0xf] }
 0x405   : > { %v1857_v58 = vsub.f32 1.5, %v1856_v37  ;;  %2694 = vmatpush.bf16.msrb.mxu1 %v4112_v63  ;;  %2713 = vmatpush.bf16.msrb.mxu2 %v4208_v48  ;;  %v4100_v24 = vor.u32 %v4603_v32, %v4099_v27  ;;  %v4196_v30 = vor.u32 %v4627_v22, %v4195_v60  ;;  %v3904_v55 = vor.u32 %v4649_v0, %v3903_v62  ;;  %v4617_v27 = vld [vmem:[%s7108_s9 + $0x94] sm:$0xf]  ;;  %v4257_v22 = vld [vmem:[%s7108_s9 + $0x15c] sm:$0xf0] }
 0x406   : > { %v6299_v6 = vpop.eup %4808  ;;  %v6301_v21 = vadd.f32 1e-05, %v874_v51  ;;  %v1905_v33 = vadd.f32 %v6207_v43, %v1890_v45  ;;  %v1906_v16 = vadd.f32 %v6244_v17, %v1891_v50  ;;  %v4183_v50 = vld [vmem:[%s7108_s9 + $0xc0] sm:$0xf]  ;;  %v4624_v51 = vld [vmem:[%s7108_s9 + $0xc8] sm:$0xf0] }
 0x407   : > { %v6305_v61 = vpop.eup %4810  ;;  %v1858_v14 = vmul.f32 %v6217_v8, %v1857_v58  ;;  %v1864_v15 = vmul.f32 %v6299_v6, %v6219_v9  ;;  %vm1870_vm6 = vweird.f32 %v6299_v6  ;;  %v4620_v58 = vld [vmem:[%s7108_s9 + $0xac] sm:$0xf]  ;;  %v4184_v5 = vor.u32 %v4624_v51, %v4183_v50  ;;  %v4611_v50 = vld [vmem:[%s7108_s9 + $0x64] sm:$0xf] }
 0x408   : > { %v893_v18 = vmul.f32 %v6305_v61, %v6221_v10  ;;  %4812 = vrsqrt.f32 %v6301_v21  ;;  %2401 = vmatpush.bf16.msra.mxu3 %v3916_v12  ;;  %v1990_v29 = vmax.f32 %v1906_v16, 0.0  ;;  %2420 = vmatpush.bf16.msrb.mxu0 %v4012_v20  ;;  %vm1871_vm8 = vmor %vm1869_vm7, %vm1870_vm6  ;;  %v4269_v12 = vld [vmem:[%s7108_s9 + $0x174] sm:$0xf0]  ;;  %v4176_v16 = vor.u32 %v4620_v58, %v4173_v53  ;;  %v4635_v10 = vld [vmem:[%s7108_s9 + $0x124] sm:$0xf] }
 0x409   : > { %v1862_v31 = vsel %vm1861_vm5, %v6217_v8, %v1858_v14  ;;  %v1865_v44 = vmul.f32 %v6299_v6, %v1864_v15  ;;  %v1989_v8 = vmax.f32 %v1905_v33, 0.0  ;;  %2695 = vmatpush.bf16.msrb.mxu1 %v4100_v24  ;;  %2714 = vmatpush.bf16.msrb.mxu2 %v4196_v30  ;;  %vm899_vm10 = vweird.f32 %v6305_v61 }
 0x40a   : > { %v1877_v34 = vmul.f32 %v1862_v31, %v5818_v40  ;;  %v894_v35 = vmul.f32 %v6305_v61, %v893_v18  ;;  %v4087_v40 = vld [vmem:[%s7108_s9] sm:$0xf]  ;;  %v1878_v39 = vmul.f32 %v1862_v31, %v5820_v41  ;;  %v6362_v54 = vpack.c.bf16 %v1990_v29, %v1988_v13  ;;  %vm900_vm14 = vmor %vm898_vm12, %vm899_vm10 }
 0x40b   : > { %v1866_v37 = vmul.f32 0.5, %v1865_v44  ;;  %v6354_v45 = vpack.c.bf16 %v1989_v8, %v1987_v36  ;;  %v4000_v41 = vor.u32 %v4673_v23, %v3999_v1  ;;  %v4088_v57 = vor.u32 %v4600_v38, %v4087_v40  ;;  %v4161_v18 = vld [vmem:[%s7108_s9 + $0x9c] sm:$0xf0] }
 0x40c   : > { %v895_v49 = vmul.f32 0.5, %v894_v35  ;;  %2346 = vmatmul.bf16.vlgmr.msra.gmra.mxu0 %v6362_v54  ;;  %2384 = vmatmul.bf16.vlgmr.msra.gmra.mxu2 %v6362_v54  ;;  %v1892_v9 = vmul.f32 %v6165_v28, %v1877_v34  ;;  %v1893_v15 = vmul.f32 %v6196_v42, %v1878_v39  ;;  %v4272_v36 = vor.u32 %v4644_v11, %v4269_v12  ;;  %v4614_v34 = vld [vmem:[%s7108_s9 + $0x7c] sm:$0xf]  ;;  %v4149_v35 = vld [vmem:[%s7108_s9 + $0x84] sm:$0xf0] }
 0x40d   : > { %v1867_v52 = vsub.f32 1.5, %v1866_v37  ;;  %2327 = vmatmul.bf16.vlgmr.msrb.gmra.mxu3 %v6354_v45  ;;  %2365 = vmatmul.bf16.vlgmr.msra.gmra.mxu1 %v6354_v45  ;;  %v4245_v37 = vld [vmem:[%s7108_s9 + $0x144] sm:$0xf0]  ;;  %vm888_vm11 = vweird.f32 %v6301_v21  ;;  %v4152_v24 = vor.u32 %v4614_v34, %v4149_v35  ;;  %v4626_v35 = vld [vmem:[%s7108_s9 + $0xdc] sm:$0xf] }
 0x40e   : > { %v4813_v63 = vpop.eup %4812  ;;  %2402 = vmatpush.bf16.msra.mxu3 %v3904_v55  ;;  %2421 = vmatpush.bf16.msrb.mxu0 %v4000_v41  ;;  %v896_v31 = vsub.f32 1.5, %v895_v49  ;;  %v1907_v44 = vadd.f32 %v6207_v43, %v1892_v9  ;;  %v1908_v8 = vadd.f32 %v6244_v17, %v1893_v15  ;;  %v4233_v55 = vld [vmem:[%s7108_s9 + $0x12c] sm:$0xf0]  ;;  %v3526_v41 = vld [vmem:[%s7111_s12 + $0x4] ss:$8 sm:$0x3] }
 0x40f   : > { %v1868_v48 = vmul.f32 %v6299_v6, %v1867_v52  ;;  %v883_v33 = vmul.f32 %v4813_v63, %v6301_v21  ;;  %2696 = vmatpush.bf16.msrb.mxu1 %v4088_v57  ;;  %2715 = vmatpush.bf16.msrb.mxu2 %v4184_v5  ;;  %vm889_vm9 = vweird.f32 %v4813_v63  ;;  %v4137_v21 = vld [vmem:[%s7108_s9 + $0x6c] sm:$0xf0]  ;;  %v4236_v49 = vor.u32 %v4635_v10, %v4233_v55  ;;  %v4608_v9 = vld [vmem:[%s7108_s9 + $0x4c] sm:$0xf]  ;;  %v4125_v5 = vld [vmem:[%s7108_s9 + $0x54] sm:$0xf0] }
 0x410   : > { %v897_v29 = vmul.f32 %v6305_v61, %v896_v31  ;;  %vm890_vm13 = vmor %vm888_vm11, %vm889_vm9  ;;  %v1992_v38 = vmax.f32 %v1908_v8, 0.0  ;;  %v6466_v11 = vperm.slane %v3526_v41, 1  ;;  %v4128_v15 = vor.u32 %v4608_v9, %v4125_v5  ;;  %v4197_v8 = vld [vmem:[%s7108_s9 + $0xe4] sm:$0xf0]  ;;  %v4179_v10 = vld [vmem:[%s7108_s9 + $0xb0] sm:$0xf] }
 0x411   : > { %v1872_v14 = vsel %vm1871_vm8, %v6299_v6, %v1868_v48  ;;  %v884_v60 = vmul.f32 %v4813_v63, %v883_v33  ;;  %v4641_v6 = vld [vmem:[%s7108_s9 + $0x154] sm:$0xf]  ;;  %v6455_v33 = vperm.slane %v3526_v41, 0  ;;  %v4622_v41 = vld [vmem:[%s7108_s9 + $0xb8] sm:$0xf0] }
 0x412   : > { %v1879_v20 = vmul.f32 %v1872_v14, %v5836_v56  ;;  %v1880_v32 = vmul.f32 %v1872_v14, %v5838_v59  ;;  %2727 = vmatpush.bf16.msrb.mxu3 %v4176_v16  ;;  %v4164_v59 = vor.u32 %v4617_v27, %v4161_v18  ;;  %2746 = vmatpush.bf16.msra.mxu0 %v4272_v36  ;;  %v4113_v18 = vld [vmem:[%s7108_s9 + $0x3c] sm:$0xf0]  ;;  %v4619_v9 = vld [vmem:[%s7108_s9 + $0xa0] sm:$0xf0] }
 0x413   : > { %v885_v62 = vmul.f32 0.5, %v884_v60  ;;  %v4260_v13 = vor.u32 %v4641_v6, %v4257_v22  ;;  %v901_v57 = vsel %vm900_vm14, %v6305_v61, %v897_v29  ;;  %v4629_v60 = vld [vmem:[%s7108_s9 + $0xf4] sm:$0xf]  ;;  %v4209_v6 = vld [vmem:[%s7108_s9 + $0xfc] sm:$0xf0] }
 0x414   : > { %v1894_v0 = vmul.f32 %v6165_v28, %v1879_v20  ;;  %v1895_v56 = vmul.f32 %v6196_v42, %v1880_v32  ;;  %v4638_v42 = vld [vmem:[%s7108_s9 + $0x13c] sm:$0xf]  ;;  %v924_v61 = vmul.f32 %v901_v57, %v5827_v46  ;;  %v925_v12 = vmul.f32 %v901_v57, %v5830_v47  ;;  %v3527_v46 = vld [vmem:[%s7111_s12 + $0x5] ss:$8 sm:$0x3] }
 0x415   : > { %v886_v1 = vsub.f32 1.5, %v885_v62  ;;  %v4248_v39 = vor.u32 %v4638_v42, %v4245_v37  ;;  %v4605_v47 = vld [vmem:[%s7108_s9 + $0x34] sm:$0xf]  ;;  %v6483_v32 = vperm.slane %v3527_v46, 0  ;;  %v6492_v31 = vperm.slane %v3527_v46, 1 }
 0x416   : > { %v1909_v23 = vadd.f32 %v6207_v43, %v1894_v0  ;;  %v1910_v28 = vadd.f32 %v6244_v17, %v1895_v56  ;;  %2728 = vmatpush.bf16.msrb.mxu3 %v4164_v59  ;;  %v1991_v43 = vmax.f32 %v1907_v44, 0.0  ;;  %2747 = vmatpush.bf16.msra.mxu0 %v4260_v13  ;;  %v939_v20 = vmul.f32 %v6455_v33, %v924_v61  ;;  %v4602_v56 = vld [vmem:[%s7108_s9 + $0x1c] sm:$0xf]  ;;  %v4101_v59 = vld [vmem:[%s7108_s9 + $0x24] sm:$0xf0] }
 0x417   : > { %v887_v30 = vmul.f32 %v4813_v63, %v886_v1  ;;  %v940_v22 = vmul.f32 %v6466_v11, %v925_v12  ;;  %v4116_v36 = vor.u32 %v4605_v47, %v4113_v18  ;;  %v4212_v0 = vor.u32 %v4629_v60, %v4209_v6  ;;  %v4599_v37 = vld [vmem:[%s7108_s9 + $0x4] sm:$0xf]  ;;  %v4089_v29 = vld [vmem:[%s7108_s9 + $0xc] sm:$0xf0]  ;;  %v4251_v5 = vld [vmem:[%s7108_s9 + $0x140] sm:$0xf] }
 0x418   : > { %v1993_v40 = vmax.f32 %v1909_v23, 0.0  ;;  %v1994_v17 = vmax.f32 %v1910_v28, 0.0  ;;  %v954_v34 = vadd.f32 %v6483_v32, %v939_v20  ;;  %v4104_v23 = vor.u32 %v4602_v56, %v4101_v59  ;;  %v4640_v61 = vld [vmem:[%s7108_s9 + $0x148] sm:$0xf0]  ;;  %v4155_v12 = vld [vmem:[%s7108_s9 + $0x80] sm:$0xf] }
 0x419   : > { %v891_v51 = vsel %vm890_vm13, %v4813_v63, %v887_v30  ;;  %v4140_v63 = vor.u32 %v4611_v50, %v4137_v21  ;;  %v955_v13 = vadd.f32 %v6492_v31, %v940_v22  ;;  %v4200_v42 = vor.u32 %v4626_v35, %v4197_v8  ;;  %v4623_v30 = vld [vmem:[%s7108_s9 + $0xc4] sm:$0xf]  ;;  %v870_v21 = vpop.xlane.xlu0 %869  ;;  %v4616_v46 = vld [vmem:[%s7108_s9 + $0x88] sm:$0xf0]  ;;  %v4143_v47 = vld [vmem:[%s7108_s9 + $0x68] sm:$0xf] }
 0x41a   : > { %v6433_v52 = vpack.c.bf16 %v1993_v40, %v1991_v43  ;;  %v6445_v58 = vpack.c.bf16 %v1994_v17, %v1992_v38  ;;  %2729 = vmatpush.bf16.msrb.mxu3 %v4152_v24  ;;  %v922_v53 = vmul.f32 %v891_v51, %v5854_v4  ;;  %v923_v48 = vmul.f32 %v891_v51, %v5857_v7  ;;  %v4632_v4 = vld [vmem:[%s7108_s9 + $0x10c] sm:$0xf]  ;;  %v4221_v7 = vld [vmem:[%s7108_s9 + $0x114] sm:$0xf0]  ;;  %v4185_v43 = vld [vmem:[%s7108_s9 + $0xcc] sm:$0xf0] }
 0x41b   : > { %2748 = vmatpush.bf16.msra.mxu0 %v4248_v39  ;;  %v4224_v27 = vor.u32 %v4632_v4, %v4221_v7  ;;  %v1913_v24 = vmax.f32 %v954_v34, 0.0  ;;  %v1914_v40 = vmax.f32 %v955_v13, 0.0  ;;  %v4092_v38 = vor.u32 %v4599_v37, %v4089_v29  ;;  %v4613_v18 = vld [vmem:[%s7108_s9 + $0x70] sm:$0xf0]  ;;  %v4131_v34 = vld [vmem:[%s7108_s9 + $0x50] sm:$0xf] }
 0x41c   : > { %2351 = vmatmul.bf16.gmra.mxu0 %v6445_v58  ;;  %2389 = vmatmul.bf16.gmra.mxu2 %v6445_v58  ;;  %v937_v14 = vmul.f32 %v6455_v33, %v922_v53  ;;  %v938_v16 = vmul.f32 %v6466_v11, %v923_v48  ;;  %v4188_v50 = vor.u32 %v4623_v30, %v4185_v43  ;;  %v4263_v53 = vld [vmem:[%s7108_s9 + $0x158] sm:$0xf]  ;;  %v4203_v30 = vld [vmem:[%s7108_s9 + $0xe0] sm:$0xf]  ;;  %v4628_v43 = vld [vmem:[%s7108_s9 + $0xe8] sm:$0xf0] }
 0x41d   : > { %2332 = vmatmul.bf16.gmra.mxu3 %v6433_v52  ;;  %2370 = vmatmul.bf16.gmra.mxu1 %v6433_v52  ;;  %v876_v51 = vmul.f32 %v870_v21, %v5786_v19  ;;  %v4180_v57 = vor.u32 %v4622_v41, %v4179_v10  ;;  %v4167_v48 = vld [vmem:[%s7108_s9 + $0x98] sm:$0xf]  ;;  %v4144_v6 = vor.u32 %v4613_v18, %v4143_v47  ;;  %v4604_v21 = vld [vmem:[%s7108_s9 + $0x28] sm:$0xf0]  ;;  %v4095_v41 = vld [vmem:[%s7108_s9 + $0x8] sm:$0xf] }
 0x41e   : > { %2730 = vmatpush.bf16.msrb.mxu3 %v4140_v63  ;;  %v952_v44 = vadd.f32 %v6483_v32, %v937_v14  ;;  %v953_v62 = vadd.f32 %v6492_v31, %v938_v16  ;;  %v4643_v63 = vld [vmem:[%s7108_s9 + $0x160] sm:$0xf0]  ;;  %v4168_v7 = vor.u32 %v4619_v9, %v4167_v48  ;;  %v4252_v14 = vor.u32 %v4640_v61, %v4251_v5  ;;  %v4239_v16 = vld [vmem:[%s7108_s9 + $0x128] sm:$0xf]  ;;  %v4215_v13 = vld [vmem:[%s7108_s9 + $0xf8] sm:$0xf] }
 0x41f   : > { %2749 = vmatpush.bf16.msra.mxu0 %v4236_v49  ;;  %2765 = vmatpush.bf16.msra.mxu1 %v4180_v57  ;;  %v4264_v49 = vor.u32 %v4643_v63, %v4263_v53  ;;  %v4601_v57 = vld [vmem:[%s7108_s9 + $0x10] sm:$0xf0] }
 0x420   : > { %v1911_v1 = vmax.f32 %v952_v44, 0.0  ;;  %v1912_v28 = vmax.f32 %v953_v62, 0.0  ;;  %v4227_v62 = vld [vmem:[%s7108_s9 + $0x110] sm:$0xf] }
 0x422   : > { %2731 = vmatpush.bf16.msrb.mxu3 %v4128_v15  ;;  %v6522_v17 = vpack.c.bf16 %v1913_v24, %v1911_v1  ;;  %v6524_v39 = vpack.c.bf16 %v1914_v40, %v1912_v28  ;;  %v4156_v15 = vor.u32 %v4616_v46, %v4155_v12  ;;  %v4631_v1 = vld [vmem:[%s7108_s9 + $0x100] sm:$0xf0]  ;;  %v4107_v40 = vld [vmem:[%s7108_s9 + $0x20] sm:$0xf] }
 0x423   : > { %2750 = vmatpush.bf16.msra.mxu0 %v4224_v27  ;;  %2766 = vmatpush.bf16.msra.mxu1 %v4168_v7  ;;  %v4637_v27 = vld [vmem:[%s7108_s9 + $0x130] sm:$0xf0]  ;;  %v4216_v28 = vor.u32 %v4631_v1, %v4215_v13  ;;  %v4323_v13 = vld [vmem:[%s7110_s11 + $0x58] sm:$0xf0] }
 0x424   : > { %v4240_v60 = vor.u32 %v4637_v27, %v4239_v16  ;;  %v4337_v27 = vld [vmem:[%s7110_s11 + $0x70] sm:$0xf] }
 0x426   : > { %2732 = vmatpush.bf16.msrb.mxu3 %v4116_v36 }
 0x427   : > { %2751 = vmatpush.bf16.msra.mxu0 %v4212_v0  ;;  %2767 = vmatpush.bf16.msra.mxu1 %v4156_v15  ;;  %v4634_v0 = vld [vmem:[%s7108_s9 + $0x118] sm:$0xf0] }
 0x428   : > { %v4228_v59 = vor.u32 %v4634_v0, %v4227_v62 }
 0x42a   : > { %2733 = vmatpush.bf16.msrb.mxu3 %v4104_v23  ;;  %v4119_v23 = vld [vmem:[%s7108_s9 + $0x38] sm:$0xf] }
 0x42b   : > { %2752 = vmatpush.bf16.msra.mxu0 %v4200_v42  ;;  %2768 = vmatpush.bf16.msra.mxu1 %v4144_v6  ;;  %v4607_v42 = vld [vmem:[%s7108_s9 + $0x40] sm:$0xf0]  ;;  %v4708_v6 = vld [vmem:[%s7110_s11 + $0x64] sm:$0xf0] }
 0x42c   : > { %2422 = vmatmul.bf16.vlgmr.msrb.gmra.mxu0 %v6362_v54  ;;  %2716 = vmatmul.bf16.vlgmr.msrb.gmra.mxu2 %v6524_v39  ;;  %v4275_v54 = vld [vmem:[%s7108_s9 + $0x170] sm:$0xf]  ;;  %v4120_v37 = vor.u32 %v4607_v42, %v4119_v23  ;;  %v4704_v42 = vld [vmem:[%s7110_s11 + $0x44] sm:$0xf0] }
 0x42d   : > { %2403 = vmatmul.bf16.vlgmr.msra.gmra.mxu3 %v6354_v45  ;;  %2697 = vmatmul.bf16.vlgmr.msrb.gmra.mxu1 %v6522_v17  ;;  %v6535_v45 = vadd.f32 1e-05, %v876_v51 }
 0x42e   : > { %2734 = vmatpush.bf16.msrb.mxu3 %v4092_v38 }
 0x42f   : > { %2753 = vmatpush.bf16.msra.mxu0 %v4188_v50  ;;  %4814 = vrsqrt.f32 %v6535_v45  ;;  %vm908_vm0 = vweird.f32 %v6535_v45  ;;  %v4204_v50 = vor.u32 %v4628_v43, %v4203_v30 }
 0x43c   : > { %2427 = vmatmul.bf16.gmra.mxu0 %v6445_v58  ;;  %v6550_v58 = vpop.eup %4814 }
 0x43d   : > { %2408 = vmatmul.bf16.gmra.mxu3 %v6433_v52  ;;  %v4646_v52 = vld [vmem:[%s7108_s9 + $0x178] sm:$0xf0]  ;;  %v903_v4 = vmul.f32 %v6550_v58, %v6535_v45  ;;  %vm909_vm15 = vweird.f32 %v6550_v58  ;;  %v4108_v45 = vor.u32 %v4604_v21, %v4107_v40  ;;  %v4701_v21 = vld [vmem:[%s7110_s11 + $0x34] sm:$0xf] }
 0x43e   : > { %v4276_v55 = vor.u32 %v4646_v52, %v4275_v54  ;;  %vm910_vm1 = vmor %vm908_vm0, %vm909_vm15  ;;  %v4191_v54 = vld [vmem:[%s7108_s9 + $0xc8] sm:$0xf]  ;;  %v4625_v52 = vld [vmem:[%s7108_s9 + $0xd0] sm:$0xf0] }
 0x43f   : > { %v904_v20 = vmul.f32 %v6550_v58, %v903_v4 }
 0x440   : > { %2784 = vmatpush.bf16.msra.mxu2 %v4276_v55  ;;  %v4192_v55 = vor.u32 %v4625_v52, %v4191_v54  ;;  %v4307_v52 = vld [vmem:[%s7110_s11 + $0x38] sm:$0xf0] }
 0x441   : > { %v905_v22 = vmul.f32 0.5, %v904_v20 }
 0x443   : > { %v906_v35 = vsub.f32 1.5, %v905_v22  ;;  %v4707_v22 = vld [vmem:[%s7110_s11 + $0x64] sm:$0xf] }
 0x444   : > { %2785 = vmatpush.bf16.msra.mxu2 %v4264_v49 }
 0x445   : > { %v907_v29 = vmul.f32 %v6550_v58, %v906_v35 }
 0x447   : > { %v911_v51 = vsel %vm910_vm1, %v6550_v58, %v907_v29  ;;  %v4096_v58 = vor.u32 %v4601_v57, %v4095_v41  ;;  %v4315_v29 = vld [vmem:[%s7110_s11 + $0x48] sm:$0xf0]  ;;  %v4297_v41 = vld [vmem:[%s7110_s11 + $0x20] sm:$0xf]  ;;  %v4700_v57 = vld [vmem:[%s7110_s11 + $0x24] sm:$0xf0] }
 0x448   : > { %2786 = vmatpush.bf16.msra.mxu2 %v4252_v14  ;;  %v926_v53 = vmul.f32 %v911_v51, %v5847_v2  ;;  %v927_v63 = vmul.f32 %v911_v51, %v5850_v3 }
 0x44a   : > { %v941_v5 = vmul.f32 %v6455_v33, %v926_v53  ;;  %v942_v61 = vmul.f32 %v6466_v11, %v927_v63  ;;  %v4298_v53 = vor.u32 %v4700_v57, %v4297_v41  ;;  %v4299_v63 = vld [vmem:[%s7110_s11 + $0x28] sm:$0xf0]  ;;  %v4716_v41 = vld [vmem:[%s7110_s11 + $0xa4] sm:$0xf0] }
 0x44c   : > { %2754 = vmatmul.bf16.vlgmr.msra.gmra.mxu0 %v6524_v39  ;;  %2787 = vmatpush.bf16.msra.mxu2 %v4240_v60  ;;  %v956_v2 = vadd.f32 %v6483_v32, %v941_v5  ;;  %v957_v3 = vadd.f32 %v6492_v31, %v942_v61  ;;  %v4329_v60 = vld [vmem:[%s7110_s11 + $0x60] sm:$0xf]  ;;  %v4289_v5 = vld [vmem:[%s7110_s11 + $0x10] sm:$0xf]  ;;  %v4698_v61 = vld [vmem:[%s7110_s11 + $0x14] sm:$0xf0] }
 0x44d   : > { %2735 = vmatmul.bf16.vlgmr.msrb.gmra.mxu3 %v6522_v17  ;;  %v4330_v0 = vor.u32 %v4708_v6, %v4329_v60  ;;  %v4393_v60 = vld [vmem:[%s7110_s11 + $0xe0] sm:$0xf]  ;;  %v4724_v6 = vld [vmem:[%s7110_s11 + $0xe4] sm:$0xf0] }
 0x44e   : > { %v1915_v47 = vmax.f32 %v956_v2, 0.0 }
 0x450   : > { %2788 = vmatpush.bf16.msra.mxu2 %v4228_v59  ;;  %v4321_v59 = vld [vmem:[%s7110_s11 + $0x50] sm:$0xf] }
 0x454   : > { %2789 = vmatpush.bf16.msra.mxu2 %v4216_v28  ;;  %v4313_v28 = vld [vmem:[%s7110_s11 + $0x40] sm:$0xf] }
 0x458   : > { %2790 = vmatpush.bf16.msra.mxu2 %v4204_v50  ;;  %v4702_v50 = vld [vmem:[%s7110_s11 + $0x34] sm:$0xf0] }
 0x45c   : > { %2791 = vmatpush.bf16.msra.mxu2 %v4192_v55  ;;  %v4310_v55 = vor.u32 %v4701_v21, %v4307_v52 }
 0x467   : > { %v873_v44 = vpop.xlane.xlu1 %872 }
 0x468   : > { %v877_v36 = vmul.f32 %v873_v44, %v5786_v19  ;;  %v4610_v19 = vld [vmem:[%s7108_s9 + $0x58] sm:$0xf0]  ;;  %v4331_v44 = vld [vmem:[%s7110_s11 + $0x68] sm:$0xf0] }
 0x469   : > { %v4132_v8 = vor.u32 %v4610_v19, %v4131_v34  ;;  %v4706_v34 = vld [vmem:[%s7110_s11 + $0x54] sm:$0xf0]  ;;  %v4705_v19 = vld [vmem:[%s7110_s11 + $0x54] sm:$0xf] }
 0x46a   : > { %v881_v56 = vadd.f32 1e-05, %v877_v36  ;;  %v4326_v23 = vor.u32 %v4705_v19, %v4323_v13  ;;  %v4722_v19 = vld [vmem:[%s7110_s11 + $0xd4] sm:$0xf0]  ;;  %v4720_v13 = vld [vmem:[%s7110_s11 + $0xc4] sm:$0xf0] }
 0x46b   : > { %2769 = vmatpush.bf16.msra.mxu1 %v4132_v8  ;;  %v4322_v8 = vor.u32 %v4706_v34, %v4321_v59 }
 0x46c   : > { %4816 = vrsqrt.f32 %v881_v56  ;;  %vm918_vm3 = vweird.f32 %v881_v56 }
 0x46f   : > { %2770 = vmatpush.bf16.msra.mxu1 %v4120_v37  ;;  %v4703_v37 = vld [vmem:[%s7110_s11 + $0x44] sm:$0xf] }
 0x470   : > { %v4318_v30 = vor.u32 %v4703_v37, %v4315_v29 }
 0x472   : > { %v4817_v24 = vpop.eup %4816 }
 0x473   : > { %v913_v38 = vmul.f32 %v4817_v24, %v881_v56  ;;  %2771 = vmatpush.bf16.msra.mxu1 %v4108_v45  ;;  %vm919_vm2 = vweird.f32 %v4817_v24  ;;  %v4334_v56 = vor.u32 %v4707_v22, %v4331_v44  ;;  %v4394_v44 = vor.u32 %v4724_v6, %v4393_v60 }
 0x474   : > { %vm920_vm4 = vmor %vm918_vm3, %vm919_vm2 }
 0x475   : > { %v914_v10 = vmul.f32 %v4817_v24, %v913_v38  ;;  %v4305_v38 = vld [vmem:[%s7110_s11 + $0x30] sm:$0xf] }
 0x476   : > { %v4306_v54 = vor.u32 %v4702_v50, %v4305_v38  ;;  %v4718_v38 = vld [vmem:[%s7110_s11 + $0xb4] sm:$0xf0] }
 0x477   : > { %v915_v48 = vmul.f32 0.5, %v914_v10  ;;  %2772 = vmatpush.bf16.msra.mxu1 %v4096_v58  ;;  %v4699_v58 = vld [vmem:[%s7110_s11 + $0x24] sm:$0xf] }
 0x479   : > { %v916_v49 = vsub.f32 1.5, %v915_v48  ;;  %v4302_v48 = vor.u32 %v4699_v58, %v4299_v63 }
 0x47b   : > { %v917_v9 = vmul.f32 %v4817_v24, %v916_v49 }
 0x47d   : > { %v921_v4 = vsel %vm920_vm4, %v4817_v24, %v917_v9  ;;  %v4314_v24 = vor.u32 %v4704_v42, %v4313_v28 }
 0x47e   : > { %v928_v7 = vmul.f32 %v921_v4, %v6077_v25  ;;  %v929_v12 = vmul.f32 %v921_v4, %v6080_v26  ;;  %v4710_v25 = vld [vmem:[%s7110_s11 + $0x74] sm:$0xf0]  ;;  %v4709_v26 = vld [vmem:[%s7110_s11 + $0x74] sm:$0xf]  ;;  %v4290_v4 = vor.u32 %v4698_v61, %v4289_v5  ;;  %v4353_v5 = vld [vmem:[%s7110_s11 + $0x90] sm:$0xf] }
 0x47f   : > { %v4338_v18 = vor.u32 %v4710_v25, %v4337_v27  ;;  %v4714_v61 = vld [vmem:[%s7110_s11 + $0x94] sm:$0xf0] }
 0x480   : > { %v943_v46 = vmul.f32 %v6455_v33, %v928_v7  ;;  %v944_v14 = vmul.f32 %v6466_v11, %v929_v12  ;;  %v1916_v33 = vmax.f32 %v957_v3, 0.0  ;;  %v4339_v11 = vld [vmem:[%s7110_s11 + $0x78] sm:$0xf0]  ;;  %v4281_v3 = vld [vmem:[%s7110_s11] sm:$0xf] }
 0x481   : > { %v4342_v20 = vor.u32 %v4709_v26, %v4339_v11  ;;  %3137 = vmatpush.bf16.msra.mxu3 %v4338_v18  ;;  %v4291_v7 = vld [vmem:[%s7110_s11 + $0x18] sm:$0xf0] }
 0x482   : > { %v958_v15 = vadd.f32 %v6483_v32, %v943_v46  ;;  %v959_v16 = vadd.f32 %v6492_v31, %v944_v14  ;;  %v4696_v46 = vld [vmem:[%s7110_s11 + $0x4] sm:$0xf0]  ;;  %v4695_v14 = vld [vmem:[%s7110_s11 + $0x4] sm:$0xf] }
 0x483   : > { %3194 = vmatpush.bf16.msrb.mxu2 %v4342_v20 }
 0x484   : > { %v1917_v32 = vmax.f32 %v958_v15, 0.0  ;;  %v1918_v31 = vmax.f32 %v959_v16, 0.0  ;;  %v4282_v15 = vor.u32 %v4696_v46, %v4281_v3  ;;  %v4283_v16 = vld [vmem:[%s7110_s11 + $0x8] sm:$0xf0]  ;;  %v4712_v3 = vld [vmem:[%s7110_s11 + $0x84] sm:$0xf0] }
 0x485   : > { %3138 = vmatpush.bf16.msra.mxu3 %v4330_v0  ;;  %v4286_v27 = vor.u32 %v4695_v14, %v4283_v16 }
 0x486   : > { %v6680_v36 = vpack.c.bf16 %v1917_v32, %v1915_v47  ;;  %v6682_v62 = vpack.c.bf16 %v1918_v31, %v1916_v33  ;;  %v4401_v32 = vld [vmem:[%s7110_s11 + $0xf0] sm:$0xf]  ;;  %v4726_v31 = vld [vmem:[%s7110_s11 + $0xf4] sm:$0xf0] }
 0x487   : > { %3195 = vmatpush.bf16.msrb.mxu2 %v4334_v56  ;;  %v4402_v20 = vor.u32 %v4726_v31, %v4401_v32 }
 0x488   : > { %2702 = vmatmul.bf16.gmra.mxu1 %v6680_v36  ;;  %2721 = vmatmul.bf16.gmra.mxu2 %v6682_v62 }
 0x489   : > { %2740 = vmatmul.bf16.gmra.mxu3 %v6680_v36  ;;  %2759 = vmatmul.bf16.gmra.mxu0 %v6682_v62  ;;  %v6700_v1 = vpop.f32.mrf.mxu0 }
 0x48a   : > { %v2366_v35 = vpop.f32.mrf.mxu1  ;;  %3139 = vmatpush.bf16.msra.mxu3 %v4322_v8  ;;  %3156 = vmatpush.bf16.msrb.mxu0 %v4402_v20  ;;  %v4377_v8 = vld [vmem:[%s7110_s11 + $0xc0] sm:$0xf] }
 0x48b   : > { %3196 = vmatpush.bf16.msrb.mxu2 %v4326_v23  ;;  %v4378_v28 = vor.u32 %v4720_v13, %v4377_v8  ;;  %v4403_v13 = vld [vmem:[%s7110_s11 + $0xf8] sm:$0xf0] }
 0x48e   : > { %3140 = vmatpush.bf16.msra.mxu3 %v4314_v24  ;;  %3157 = vmatpush.bf16.msrb.mxu0 %v4394_v44  ;;  %v6817_v24 = vld [vmem:[%s7111_s12 + $0x19] ss:$8 sm:$0x7] }
 0x48f   : > { %v2385_v40 = vpop.f32.mrf.mxu2  ;;  %3197 = vmatpush.bf16.msrb.mxu2 %v4318_v30  ;;  %v6828_v52 = vperm.slane %v6817_v24, 0  ;;  %v6860_v60 = vperm.slane %v6817_v24, 1 }
 0x490   : > { %v6714_v43 = vpop.f32.mrf.mxu3  ;;  %v6725_v51 = vadd.f32 %v2385_v40, %v2366_v35  ;;  %v4369_v40 = vld [vmem:[%s7110_s11 + $0xb0] sm:$0xf] }
 0x491   : > { %v6732_v10 = vpop.f32.mrf.mxu0  ;;  %v2348_v29 = vadd.f32 %v6700_v1, %v6714_v43  ;;  %v4370_v21 = vor.u32 %v4718_v38, %v4369_v40  ;;  %v4740_v40 = vld [vmem:[%s7110_s11 + $0x164] sm:$0xf0]  ;;  %v4723_v38 = vld [vmem:[%s7110_s11 + $0xe4] sm:$0xf] }
 0x492   : > { %v6727_v45 = vpop.f32.mrf.mxu1  ;;  %3141 = vmatpush.bf16.msra.mxu3 %v4306_v54 }
 0x493   : > { %3198 = vmatpush.bf16.msrb.mxu2 %v4310_v55  ;;  %v4361_v55 = vld [vmem:[%s7110_s11 + $0xa0] sm:$0xf] }
 0x496   : > { %3142 = vmatpush.bf16.msra.mxu3 %v4298_v53  ;;  %v4362_v53 = vor.u32 %v4716_v41, %v4361_v55  ;;  %v4449_v41 = vld [vmem:[%s7110_s11 + $0x150] sm:$0xf] }
 0x497   : > { %v6750_v9 = vpop.f32.mrf.mxu2  ;;  %3199 = vmatpush.bf16.msrb.mxu2 %v4302_v48 }
 0x498   : > { %2773 = vmatmul.bf16.vlgmr.msra.gmra.mxu1 %v6522_v17  ;;  %2792 = vmatmul.bf16.vlgmr.msra.gmra.mxu2 %v6524_v39  ;;  %v6748_v49 = vpop.f32.mrf.mxu3  ;;  %v4697_v17 = vld [vmem:[%s7110_s11 + $0x14] sm:$0xf]  ;;  %v2388_v31 = vadd.f32 %v6750_v9, %v6727_v45  ;;  %v4742_v45 = vld [vmem:[%s7110_s11 + $0x174] sm:$0xf0] }
 0x499   : > { %v2352_v12 = vpop.f32.mrf.mxu0  ;;  %v4294_v2 = vor.u32 %v4697_v17, %v4291_v7  ;;  %v2350_v1 = vadd.f32 %v6732_v10, %v6748_v49  ;;  %v4725_v9 = vld [vmem:[%s7110_s11 + $0xf4] sm:$0xf] }
 0x49a   : > { %v2371_v39 = vpop.f32.mrf.mxu1  ;;  %3143 = vmatpush.bf16.msra.mxu3 %v4290_v4  ;;  %v4354_v4 = vor.u32 %v4714_v61, %v4353_v5  ;;  %v4451_v5 = vld [vmem:[%s7110_s11 + $0x158] sm:$0xf0] }
 0x49b   : > { %3200 = vmatpush.bf16.msrb.mxu2 %v4294_v2  ;;  %v4345_v2 = vld [vmem:[%s7110_s11 + $0x80] sm:$0xf] }
 0x49e   : > { %3144 = vmatpush.bf16.msra.mxu3 %v4282_v15  ;;  %v4346_v15 = vor.u32 %v4712_v3, %v4345_v2  ;;  %v4735_v3 = vld [vmem:[%s7110_s11 + $0x144] sm:$0xf] }
 0x49f   : > { %v2390_v47 = vpop.f32.mrf.mxu2  ;;  %3201 = vmatpush.bf16.msrb.mxu2 %v4286_v27 }
 0x4a0   : > { %v2333_v25 = vpop.f32.mrf.mxu3  ;;  %v6778_v33 = vadd.f32 %v2390_v47, %v2371_v39 }
 0x4a1   : > { %v6776_v26 = vadd.f32 %v2352_v12, %v2333_v25  ;;  %v2354_v11 = vpop.f32.mrf.mxu0 }
 0x4a2   : > { %v2373_v18 = vpop.f32.mrf.mxu1 }
 0x4a7   : > { %v2392_v56 = vpop.f32.mrf.mxu2 }
 0x4a8   : > { %2778 = vmatmul.bf16.gmra.mxu1 %v6680_v36  ;;  %2797 = vmatmul.bf16.gmra.mxu2 %v6682_v62  ;;  %v2335_v22 = vpop.f32.mrf.mxu3  ;;  %v6796_v59 = vadd.f32 %v2392_v56, %v2373_v18  ;;  %v4385_v62 = vld [vmem:[%s7110_s11 + $0xd0] sm:$0xf] }
 0x4a9   : > { %v6794_v0 = vadd.f32 %v2354_v11, %v2335_v22  ;;  %v2423_v34 = vpop.f32.mrf.mxu0  ;;  %v4386_v35 = vor.u32 %v4722_v19, %v4385_v62 }
 0x4aa   : > { %v2698_v36 = vpop.f32.mrf.mxu1 }
 0x4ab   : > { %3158 = vmatpush.bf16.msrb.mxu0 %v4386_v35  ;;  %v2699_v50 = vadd.f32 %v2698_v36, %v2348_v29 }
 0x4af   : > { %v2717_v37 = vpop.f32.mrf.mxu2  ;;  %3159 = vmatpush.bf16.msrb.mxu0 %v4378_v28  ;;  %v4741_v28 = vld [vmem:[%s7110_s11 + $0x174] sm:$0xf] }
 0x4b0   : > { %v2404_v23 = vpop.f32.mrf.mxu3  ;;  %v2718_v43 = vadd.f32 %v2717_v37, %v2699_v50  ;;  %v4467_v37 = vld [vmem:[%s7110_s11 + $0x178] sm:$0xf0] }
 0x4b1   : > { %v6810_v42 = vadd.f32 %v2423_v34, %v2404_v23  ;;  %v2425_v30 = vpop.f32.mrf.mxu0  ;;  %v4406_v23 = vor.u32 %v4725_v9, %v4403_v13  ;;  %v6885_v29 = vor.u32 %v4741_v28, %v4467_v37  ;;  %v4730_v13 = vld [vmem:[%s7110_s11 + $0x114] sm:$0xf0]  ;;  %v4355_v37 = vld [vmem:[%s7110_s11 + $0x98] sm:$0xf0] }
 0x4b2   : > { %v2700_v54 = vpop.f32.mrf.mxu1  ;;  %v2812_v10 = vadd.f32 %v6828_v52, %v2718_v43  ;;  %v4459_v43 = vld [vmem:[%s7110_s11 + $0x168] sm:$0xf0] }
 0x4b3   : > { %3160 = vmatpush.bf16.msrb.mxu0 %v4370_v21  ;;  %v2701_v57 = vadd.f32 %v2700_v54, %v2350_v1  ;;  %3213 = vmatpush.bf16.msrb.mxu3 %v4406_v23  ;;  %v4395_v21 = vld [vmem:[%s7110_s11 + $0xe8] sm:$0xf0]  ;;  %v4739_v1 = vld [vmem:[%s7110_s11 + $0x164] sm:$0xf]  ;;  %v4713_v23 = vld [vmem:[%s7110_s11 + $0x94] sm:$0xf] }
 0x4b4   : > { %v2824_v7 = vmax.f32 %v2812_v10, 0.0  ;;  %v4398_v54 = vor.u32 %v4723_v38, %v4395_v21  ;;  %v6906_v55 = vor.u32 %v4739_v1, %v4459_v43  ;;  %v4419_v38 = vld [vmem:[%s7110_s11 + $0x118] sm:$0xf0]  ;;  %v4409_v21 = vld [vmem:[%s7110_s11 + $0x100] sm:$0xf] }
 0x4b5   : > { %v4711_v1 = vld [vmem:[%s7110_s11 + $0x84] sm:$0xf] }
 0x4b7   : > { %v2719_v48 = vpop.f32.mrf.mxu2  ;;  %3161 = vmatpush.bf16.msrb.mxu0 %v4362_v53  ;;  %3214 = vmatpush.bf16.msrb.mxu3 %v4398_v54  ;;  %v4728_v54 = vld [vmem:[%s7110_s11 + $0x104] sm:$0xf0] }
 0x4b8   : > { %v2406_v58 = vpop.f32.mrf.mxu3  ;;  %v2720_v49 = vadd.f32 %v2719_v48, %v2701_v57  ;;  %v4738_v57 = vld [vmem:[%s7110_s11 + $0x154] sm:$0xf0]  ;;  %v4387_v48 = vld [vmem:[%s7110_s11 + $0xd8] sm:$0xf0] }
 0x4b9   : > { %v6836_v63 = vadd.f32 %v2425_v30, %v2406_v58  ;;  %v2428_v39 = vpop.f32.mrf.mxu0  ;;  %v4457_v30 = vld [vmem:[%s7110_s11 + $0x160] sm:$0xf]  ;;  %v4721_v58 = vld [vmem:[%s7110_s11 + $0xd4] sm:$0xf]  ;;  %v4450_v53 = vor.u32 %v4738_v57, %v4449_v41  ;;  %v4410_v41 = vor.u32 %v4728_v54, %v4409_v21  ;;  %v4347_v57 = vld [vmem:[%s7110_s11 + $0x88] sm:$0xf0] }
 0x4ba   : > { %v2815_v17 = vadd.f32 %v6828_v52, %v2720_v49  ;;  %v4458_v50 = vor.u32 %v4740_v40, %v4457_v30  ;;  %v4390_v10 = vor.u32 %v4721_v58, %v4387_v48  ;;  %v4737_v49 = vld [vmem:[%s7110_s11 + $0x154] sm:$0xf]  ;;  %v4358_v30 = vor.u32 %v4713_v23, %v4355_v37 }
 0x4bb   : > { %3162 = vmatpush.bf16.msrb.mxu0 %v4354_v4  ;;  %v6927_v61 = vor.u32 %v4737_v49, %v4451_v5  ;;  %v4719_v4 = vld [vmem:[%s7110_s11 + $0xc4] sm:$0xf]  ;;  %v4729_v40 = vld [vmem:[%s7110_s11 + $0x114] sm:$0xf]  ;;  %v4350_v48 = vor.u32 %v4711_v1, %v4347_v57  ;;  %v4411_v49 = vld [vmem:[%s7110_s11 + $0x108] sm:$0xf0] }
 0x4bc   : > { %v2827_v12 = vmax.f32 %v2815_v17, 0.0  ;;  %3215 = vmatpush.bf16.msrb.mxu3 %v4390_v10  ;;  %v4441_v17 = vld [vmem:[%s7110_s11 + $0x140] sm:$0xf]  ;;  %v4727_v10 = vld [vmem:[%s7110_s11 + $0x104] sm:$0xf] }
 0x4be   : > { %v2836_v46 = vpack.c.bf16 %v2827_v12, %v2824_v7  ;;  %v4379_v12 = vld [vmem:[%s7110_s11 + $0xc8] sm:$0xf0] }
 0x4bf   : > { %3163 = vmatpush.bf16.msrb.mxu0 %v4346_v15  ;;  %v4382_v2 = vor.u32 %v4719_v4, %v4379_v12  ;;  %v4433_v15 = vld [vmem:[%s7110_s11 + $0x130] sm:$0xf] }
 0x4c0   : > { %v2409_v14 = vpop.f32.mrf.mxu3  ;;  %3145 = vmatmul.bf16.vlgmr.msra.gmra.mxu3 %v2836_v46  ;;  %3202 = vmatmul.bf16.vlgmr.msrb.gmra.mxu2 %v2836_v46  ;;  %v4443_v46 = vld [vmem:[%s7110_s11 + $0x148] sm:$0xf0] }
 0x4c1   : > { %v6852_v16 = vadd.f32 %v2428_v39, %v2409_v14  ;;  %v2430_v27 = vpop.f32.mrf.mxu0  ;;  %v4736_v39 = vld [vmem:[%s7110_s11 + $0x144] sm:$0xf0]  ;;  %v6948_v14 = vor.u32 %v4735_v3, %v4443_v46  ;;  %3216 = vmatpush.bf16.msrb.mxu3 %v4382_v2 }
 0x4c2   : > { %v4442_v7 = vor.u32 %v4736_v39, %v4441_v17  ;;  %v4414_v17 = vor.u32 %v4727_v10, %v4411_v49 }
 0x4c3   : > { %3232 = vmatpush.bf16.msra.mxu0 %v6885_v29 }
 0x4c7   : > { %3233 = vmatpush.bf16.msra.mxu0 %v6906_v55 }
 0x4c8   : > { %v2411_v25 = vpop.f32.mrf.mxu3 }
 0x4c9   : > { %v6854_v47 = vadd.f32 %v2430_v27, %v2411_v25  ;;  %v2755_v18 = vpop.f32.mrf.mxu0  ;;  %v4734_v27 = vld [vmem:[%s7110_s11 + $0x134] sm:$0xf0]  ;;  %v4717_v25 = vld [vmem:[%s7110_s11 + $0xb4] sm:$0xf] }
 0x4cb   : > { %3234 = vmatpush.bf16.msra.mxu0 %v6927_v61 }
 0x4cf   : > { %3235 = vmatpush.bf16.msra.mxu0 %v6948_v14 }
 0x4d0   : > { %v2736_v11 = vpop.f32.mrf.mxu3 }
 0x4d1   : > { %v2737_v32 = vadd.f32 %v2736_v11, %v6725_v51  ;;  %v2757_v44 = vpop.f32.mrf.mxu0  ;;  %v4465_v51 = vld [vmem:[%s7110_s11 + $0x170] sm:$0xf]  ;;  %v4371_v11 = vld [vmem:[%s7110_s11 + $0xb8] sm:$0xf0] }
 0x4d2   : > { %v4466_v8 = vor.u32 %v4742_v45, %v4465_v51  ;;  %v4427_v51 = vld [vmem:[%s7110_s11 + $0x128] sm:$0xf0] }
 0x4d3   : > { %v2756_v20 = vadd.f32 %v2755_v18, %v2737_v32  ;;  %v4434_v18 = vor.u32 %v4734_v27, %v4433_v15  ;;  %v4374_v32 = vor.u32 %v4717_v25, %v4371_v11 }
 0x4d4   : > { %3175 = vmatpush.bf16.msrb.mxu1 %v4466_v8  ;;  %v4417_v8 = vld [vmem:[%s7110_s11 + $0x110] sm:$0xf] }
 0x4d5   : > { %v2813_v56 = vadd.f32 %v6860_v60, %v2756_v20  ;;  %v4435_v20 = vld [vmem:[%s7110_s11 + $0x138] sm:$0xf0]  ;;  %3217 = vmatpush.bf16.msrb.mxu3 %v4374_v32  ;;  %v4418_v28 = vor.u32 %v4730_v13, %v4417_v8 }
 0x4d7   : > { %v2825_v62 = vmax.f32 %v2813_v56, 0.0  ;;  %v4715_v56 = vld [vmem:[%s7110_s11 + $0xa4] sm:$0xf] }
 0x4d8   : > { %v2738_v6 = vpop.f32.mrf.mxu3  ;;  %3176 = vmatpush.bf16.msrb.mxu1 %v4458_v50  ;;  %v4422_v50 = vor.u32 %v4729_v40, %v4419_v38 }
 0x4d9   : > { %v2739_v22 = vadd.f32 %v2738_v6, %v2388_v31  ;;  %v4733_v31 = vld [vmem:[%s7110_s11 + $0x134] sm:$0xf]  ;;  %v4425_v6 = vld [vmem:[%s7110_s11 + $0x120] sm:$0xf] }
 0x4db   : > { %v2758_v34 = vadd.f32 %v2757_v44, %v2739_v22  ;;  %v6972_v22 = vor.u32 %v4733_v31, %v4435_v20  ;;  %v4732_v44 = vld [vmem:[%s7110_s11 + $0x124] sm:$0xf0] }
 0x4dc   : > { %3177 = vmatpush.bf16.msrb.mxu1 %v4450_v53 }
 0x4dd   : > { %v2816_v36 = vadd.f32 %v6860_v60, %v2758_v34  ;;  %v4363_v34 = vld [vmem:[%s7110_s11 + $0xa8] sm:$0xf0]  ;;  %3236 = vmatpush.bf16.msra.mxu0 %v6972_v22 }
 0x4df   : > { %v2828_v19 = vmax.f32 %v2816_v36, 0.0  ;;  %v4426_v36 = vor.u32 %v4732_v44, %v4425_v6 }
 0x4e0   : > { %3178 = vmatpush.bf16.msrb.mxu1 %v4442_v7 }
 0x4e1   : > { %v6864_v35 = vpack.c.bf16 %v2828_v19, %v2825_v62  ;;  %v4366_v62 = vor.u32 %v4715_v56, %v4363_v34  ;;  %v4731_v19 = vld [vmem:[%s7110_s11 + $0x124] sm:$0xf]  ;;  %v2808_v34 = vperm.slane %v6817_v24, 2 }
 0x4e2   : > { %v6990_v9 = vor.u32 %v4731_v19, %v4427_v51 }
 0x4e3   : > { %3164 = vmatmul.bf16.vlgmr.msrb.gmra.mxu0 %v6864_v35  ;;  %3218 = vmatpush.bf16.msrb.mxu3 %v4366_v62 }
 0x4e4   : > { %3179 = vmatpush.bf16.msrb.mxu1 %v4434_v18  ;;  %3237 = vmatpush.bf16.msra.mxu0 %v6990_v9 }
 0x4e7   : > { %3219 = vmatpush.bf16.msrb.mxu3 %v4358_v30 }
 0x4e8   : > { %3180 = vmatpush.bf16.msrb.mxu1 %v4426_v36  ;;  %3238 = vmatpush.bf16.msra.mxu0 %v4422_v50 }
 0x4eb   : > { %3220 = vmatpush.bf16.msrb.mxu3 %v4350_v48 }
 0x4ec   : > { %3181 = vmatpush.bf16.msrb.mxu1 %v4418_v28  ;;  %3239 = vmatpush.bf16.msra.mxu0 %v4414_v17 }
 0x4f0   : > { %3182 = vmatpush.bf16.msrb.mxu1 %v4410_v41 }
 0x4f4   : > { %4745 = vmatpush.bf16.msra.mxu1 %v6885_v29 }
 0x4f8   : > { %4746 = vmatpush.bf16.msra.mxu1 %v6906_v55 }
 0x4fc   : > { %4747 = vmatpush.bf16.msra.mxu1 %v6927_v61 }
 0x500   : > { %4748 = vmatpush.bf16.msra.mxu1 %v6948_v14 }
 0x504   : > { %4749 = vmatpush.bf16.msra.mxu1 %v6972_v22 }
 0x505   : > { %v2703_v45 = vpop.f32.mrf.mxu1 }
 0x506   : > { %v2760_v58 = vpop.f32.mrf.mxu0  ;;  %v2704_v39 = vadd.f32 %v2703_v45, %v6776_v26 }
 0x508   : > { %4750 = vmatpush.bf16.msra.mxu1 %v6990_v9 }
 0x50b   : > { %v2722_v43 = vpop.f32.mrf.mxu2 }
 0x50c   : > { %v2741_v53 = vpop.f32.mrf.mxu3  ;;  %v2723_v7 = vadd.f32 %v2722_v43, %v2704_v39  ;;  %4751 = vmatpush.bf16.msra.mxu1 %v4422_v50 }
 0x50d   : > { %v2705_v5 = vpop.f32.mrf.mxu1  ;;  %v2742_v4 = vadd.f32 %v2741_v53, %v6778_v33 }
 0x50e   : > { %v2706_v12 = vadd.f32 %v2705_v5, %v6794_v0  ;;  %v2818_v46 = vadd.f32 %v6828_v52, %v2723_v7  ;;  %v2762_v18 = vpop.f32.mrf.mxu0 }
 0x50f   : > { %v2761_v2 = vadd.f32 %v2760_v58, %v2742_v4 }
 0x510   : > { %v2830_v0 = vmax.f32 %v2818_v46, 0.0  ;;  %4752 = vmatpush.bf16.msra.mxu1 %v4414_v17 }
 0x511   : > { %v2819_v33 = vadd.f32 %v6860_v60, %v2761_v2 }
 0x513   : > { %v2724_v3 = vpop.f32.mrf.mxu2  ;;  %v2831_v20 = vmax.f32 %v2819_v33, 0.0 }
 0x514   : > { %v2725_v15 = vadd.f32 %v2724_v3, %v2706_v12  ;;  %v2743_v27 = vpop.f32.mrf.mxu3 }
 0x515   : > { %v2744_v25 = vadd.f32 %v2743_v27, %v6796_v59  ;;  %v2774_v26 = vpop.f32.mrf.mxu1 }
 0x516   : > { %v2821_v29 = vadd.f32 %v6828_v52, %v2725_v15  ;;  %v2775_v52 = vadd.f32 %v2774_v26, %v6810_v42 }
 0x517   : > { %v2763_v11 = vadd.f32 %v2762_v18, %v2744_v25 }
 0x518   : > { %v2833_v32 = vmax.f32 %v2821_v29, 0.0 }
 0x519   : > { %v2822_v55 = vadd.f32 %v6860_v60, %v2763_v11 }
 0x51a   : > { %v2839_v31 = vpack.c.bf16 %v2833_v32, %v2830_v0 }
 0x51b   : > { %v2834_v6 = vmax.f32 %v2822_v55, 0.0  ;;  %v2793_v44 = vpop.f32.mrf.mxu2 }
 0x51c   : > { %3150 = vmatmul.bf16.gmra.mxu3 %v2839_v31  ;;  %3207 = vmatmul.bf16.gmra.mxu2 %v2839_v31  ;;  %v2794_v61 = vadd.f32 %v2793_v44, %v2775_v52 }
 0x51d   : > { %v2776_v59 = vpop.f32.mrf.mxu1  ;;  %v2840_v56 = vpack.c.bf16 %v2834_v6, %v2831_v20 }
 0x51e   : > { %v2777_v60 = vadd.f32 %v2776_v59, %v6836_v63  ;;  %v2814_v36 = vadd.f32 %v2808_v34, %v2794_v61 }
 0x51f   : > { %3169 = vmatmul.bf16.gmra.mxu0 %v2840_v56 }
 0x520   : > { %v2826_v45 = vmax.f32 %v2814_v36, 0.0 }
 0x523   : > { %v2795_v14 = vpop.f32.mrf.mxu2 }
 0x524   : > { %v2796_v62 = vadd.f32 %v2795_v14, %v2777_v60 }
 0x525   : > { %v2779_v19 = vpop.f32.mrf.mxu1 }
 0x526   : > { %v2817_v51 = vadd.f32 %v2808_v34, %v2796_v62  ;;  %v2780_v24 = vadd.f32 %v2779_v19, %v6852_v16 }
 0x528   : > { %v2829_v8 = vmax.f32 %v2817_v51, 0.0 }
 0x52a   : > { %v2838_v13 = vpack.c.bf16 %v2829_v8, %v2826_v45 }
 0x52b   : > { %v2798_v42 = vpop.f32.mrf.mxu2 }
 0x52c   : > { %3183 = vmatmul.bf16.vlgmr.msrb.gmra.mxu1 %v2838_v13  ;;  %3221 = vmatmul.bf16.vlgmr.msrb.gmra.mxu3 %v6864_v35  ;;  %v2799_v63 = vadd.f32 %v2798_v42, %v2780_v24 }
 0x52d   : > { %v2781_v22 = vpop.f32.mrf.mxu1 }
 0x52e   : > { %v2782_v9 = vadd.f32 %v2781_v22, %v6854_v47  ;;  %v2820_v28 = vadd.f32 %v2808_v34, %v2799_v63  ;;  %v4278_v47 = vld [vmem:[%s7111_s12 + $0x1a] ss:$8 sm:$0x3] }
 0x52f   : > { %3240 = vmatmul.bf16.vlgmr.msra.gmra.mxu0 %v2838_v13  ;;  %v2893_v41 = vperm.slane %v4278_v47, 0  ;;  %v2894_v5 = vperm.slane %v4278_v47, 1 }
 0x530   : > { %v2832_v40 = vmax.f32 %v2820_v28, 0.0 }
 0x533   : > { %v2800_v23 = vpop.f32.mrf.mxu2 }
 0x534   : > { %v2801_v37 = vadd.f32 %v2800_v23, %v2782_v9 }
 0x536   : > { %v2823_v30 = vadd.f32 %v2808_v34, %v2801_v37 }
 0x538   : > { %v2835_v38 = vmax.f32 %v2823_v30, 0.0 }
 0x53a   : > { %v2841_v50 = vpack.c.bf16 %v2835_v38, %v2832_v40 }
 0x53c   : > { %3188 = vmatmul.bf16.gmra.mxu1 %v2841_v50  ;;  %3226 = vmatmul.bf16.gmra.mxu3 %v2840_v56 }
 0x543   : > { %v3146_v21 = vpop.f32.mrf.mxu3  ;;  %v3203_v10 = vpop.f32.mrf.mxu2 }
 0x544   : > { %v3147_v58 = vadd.f32 %v3146_v21, %v2893_v41  ;;  %v3204_v4 = vadd.f32 %v3203_v10, %v2894_v5 }
 0x54b   : > { %v3148_v54 = vpop.f32.mrf.mxu3  ;;  %v3205_v26 = vpop.f32.mrf.mxu2 }
 0x54c   : > { %3245 = vmatmul.bf16.vlgmr.msra.gmra.mxu1 %v2841_v50  ;;  %v3149_v7 = vadd.f32 %v3148_v54, %v2893_v41  ;;  %v3206_v11 = vadd.f32 %v3205_v26, %v2894_v5 }
 0x560   : > { %v3165_v35 = vpop.f32.mrf.mxu0 }
 0x561   : > { %v3166_v48 = vadd.f32 %v3165_v35, %v3147_v58 }
 0x568   : > { %v3167_v16 = vpop.f32.mrf.mxu0 }
 0x569   : > { %v3168_v3 = vadd.f32 %v3167_v16, %v3149_v7 }
 0x59c   : > { %v3170_v1 = vpop.f32.mrf.mxu0 }
 0x59f   : > { %v3151_v43 = vpop.f32.mrf.mxu3  ;;  %v3208_v34 = vpop.f32.mrf.mxu2 }
 0x5a0   : > { %v3152_v18 = vadd.f32 %v3151_v43, %v2893_v41  ;;  %v3209_v19 = vadd.f32 %v3208_v34, %v2894_v5 }
 0x5a2   : > { %v3171_v55 = vadd.f32 %v3170_v1, %v3152_v18 }
 0x5a4   : > { %v3172_v57 = vpop.f32.mrf.mxu0 }
 0x5a7   : > { %v3153_v53 = vpop.f32.mrf.mxu3  ;;  %v3210_v13 = vpop.f32.mrf.mxu2 }
 0x5a8   : > { %v3154_v59 = vadd.f32 %v3153_v53, %v2893_v41  ;;  %v3211_v22 = vadd.f32 %v3210_v13, %v2894_v5 }
 0x5a9   : > { %v3184_v49 = vpop.f32.mrf.mxu1 }
 0x5aa   : > { %v3185_v17 = vadd.f32 %v3184_v49, %v3166_v48  ;;  %v3173_v61 = vadd.f32 %v3172_v57, %v3154_v59 }
 0x5ac   : > { %v3251_v39 = vmax.f32 %v3185_v17, 0.0  ;;  %v3241_v12 = vpop.f32.mrf.mxu0 }
 0x5ae   : > { %3259 = vst [vmem:[%s7055_s15] sm:$0xff] %v3251_v39 }
 0x5af   : > { %v3222_v2 = vpop.f32.mrf.mxu3 }
 0x5b0   : > { %v3223_v46 = vadd.f32 %v3222_v2, %v3204_v4 }
 0x5b1   : > { %v3186_v15 = vpop.f32.mrf.mxu1 }
 0x5b2   : > { %v3242_v27 = vadd.f32 %v3241_v12, %v3223_v46  ;;  %v3187_v25 = vadd.f32 %v3186_v15, %v3168_v3 }
 0x5b4   : > { %v3252_v29 = vmax.f32 %v3242_v27, 0.0  ;;  %v3253_v33 = vmax.f32 %v3187_v25, 0.0  ;;  %v3243_v31 = vpop.f32.mrf.mxu0 }
 0x5b6   : > { %3260 = vst [vmem:[%s7055_s15 + $0x8] sm:$0xff] %v3252_v29 }
 0x5b7   : > { %3261 = vst [vmem:[%s7055_s15 + $0x10] sm:$0xff] %v3253_v33  ;;  %v3224_v0 = vpop.f32.mrf.mxu3 }
 0x5b8   : > { %v3225_v32 = vadd.f32 %v3224_v0, %v3206_v11 }
 0x5b9   : > { %v3189_v20 = vpop.f32.mrf.mxu1 }
 0x5ba   : > { %v3244_v6 = vadd.f32 %v3243_v31, %v3225_v32  ;;  %v3190_v44 = vadd.f32 %v3189_v20, %v3171_v55 }
 0x5bc   : > { %v3254_v56 = vmax.f32 %v3244_v6, 0.0  ;;  %v3255_v52 = vmax.f32 %v3190_v44, 0.0 }
 0x5be   : > { %3262 = vst [vmem:[%s7055_s15 + $0x18] sm:$0xff] %v3254_v56 }
 0x5bf   : > { %3263 = vst [vmem:[%s7055_s15 + $0x20] sm:$0xff] %v3255_v52  ;;  %v3227_v36 = vpop.f32.mrf.mxu3 }
 0x5c0   : > { %v3228_v51 = vadd.f32 %v3227_v36, %v3209_v19 }
 0x5c1   : > { %v3191_v60 = vpop.f32.mrf.mxu1 }
 0x5c2   : > { %v3192_v14 = vadd.f32 %v3191_v60, %v3173_v61 }
 0x5c4   : > { %v3257_v62 = vmax.f32 %v3192_v14, 0.0 }
 0x5c6   : > { %3265 = vst [vmem:[%s7055_s15 + $0x30] sm:$0xff] %v3257_v62 }
 0x5c7   : > { %v3229_v24 = vpop.f32.mrf.mxu3 }
 0x5c8   : > { %v3230_v63 = vadd.f32 %v3229_v24, %v3211_v22 }
 0x5c9   : > { %v3246_v45 = vpop.f32.mrf.mxu1 }
 0x5ca   : > { %v3247_v8 = vadd.f32 %v3246_v45, %v3228_v51 }
 0x5cc   : > { %v3256_v42 = vmax.f32 %v3247_v8, 0.0 }
 0x5ce   : > { %3264 = vst [vmem:[%s7055_s15 + $0x28] sm:$0xff] %v3256_v42 }
 0x5d1   : > { %v3248_v9 = vpop.f32.mrf.mxu1 }
 0x5d2   : > { %v3249_v23 = vadd.f32 %v3248_v9, %v3230_v63 }
 0x5d4   : > { %v3258_v28 = vmax.f32 %v3249_v23, 0.0 }
 0x5d6   : > { %3266 = vst [vmem:[%s7055_s15 + $0x38] sm:$0xff] %v3258_v28 }
 0x5d7   : > { %4845 = shalt.err (!%p4842_p3)
}
 0x5d8   : > { %s4885_s17 = smov 256   ;;  %s4886_s15 = smov 16  }
 0x5d9   : > { %4753 = dma.vmem_to_hbm [thread:$0]  (%p4995_p5), %s3282_s21, 1024, %s3284_s22, %s3268_s29, %s4885_s17, %s4885_s17, %s4886_s15  }
 0x5da PF: > { %s7127_s25 = sld [smem:[#allocation7_spill]] }
 0x5db   : > { %s7128_s28 = sld [smem:[#allocation5_spill]] }
 0x5e0   : > { %p4759_p4 = scmp.ge.s32.totalorder %s7127_s25, 2 }
 0x5e1   : > { %s3298_s14 = sand.u32 1, %s7128_s28  }
 0x5e2   : > { %p4756_p7 = pnand %p4759_p4, %p4999_p6  ;;  %s3299_s20 = scalar_lea.sflag [#allocation3], %s3298_s14 }
 0x5e4   : > { %p4757_p8 = pneg %p4756_p7 }
 0x5e6   : > { %4863 = dma.done.wait (%p4757_p8), %s3299_s20, 1024  }
 0x5e7   : > { %4865 = vsyncadd (%p4757_p8), %s3299_s20, 4294966272  ;;  %s7130_s28 = sld [smem:[#allocation8_spill]]  ;;  %s7133_s25 = smov %s4872_s26 }
 0x5e8   : > { %s7131_s23 = sld [smem:[#allocation6_spill]] }
 0x5e9   : > { %s7132_s27 = sld [smem:[#allocation9_spill]] }
 0x5ed   : > { %p23_p9 = scmp.ge.s32.totalorder %s7130_s28, 4  }
 0x5ee   : > { %s7134_s26 = smov %s7131_s23 }
 0x5ef   :  { %25 = sbr.rel (!%p23_p9) target bundleno = 3 (0x3), region = 123 }
 0x5f4   :  { %3305 = vsyncpa [#allocation3], 1 }
 0x5f5   :  { %3307 = vsyncpa [#allocation3 + $0x1], 1 }

</bundles_post_ra>
